<compile_context>
chip_gen: v7x
topology: tpu7x:2x2x1
jax: 0.10.0
libtpu: 0.0.40
codegen_flags: <defaults>
</compile_context>

<pallas_src>
import functools

import jax
import jax.numpy as jnp
import numpy as np
from jax.experimental import pallas as pl
from jax.experimental.pallas import tpu as pltpu

EPS = 1e-5  # torch.nn.InstanceNorm2d default eps (affine=False, biased variance)


def _round_up(v, m):
    return (v + m - 1) // m * m


def _residual_block_kernel(x_ref, w1_ref, w2_ref, m_ref, brd_ref, o_ref,
                           *, H, W, Wpp, P):
    """One grid step = IMGS packed images, full residual block, all in registers.

    x_ref   : (1, BC, P)    zero-bordered images on the padded grid, flat row stride Wpp
    w*_ref  : (BC, 9*BC)    block-diagonal folded conv weights (tap-major columns)
    m_ref   : (1, P)        1.0 at interior pixels (for the InstanceNorm statistics)
    brd_ref : (6, P)        top, bottom, left, right, 1-top-bot, 1-lef-rig indicators
    o_ref   : (1, BC, P)    output in the same padded flat layout
    """
    HB = 2 * Wpp                        # in-register zero halo (multiple of 128)
    inv_n = 1.0 / float(H * W)
    taps = [(kh - 1) * Wpp + (kw - 1) for kh in range(3) for kw in range(3)]

    x = x_ref[0].astype(jnp.float32)                      # (BC, P)
    m = m_ref[...]                                        # (1, P)
    top, bot = brd_ref[0:1, :], brd_ref[1:2, :]
    lef, rig = brd_ref[2:3, :], brd_ref[3:4, :]
    rowc, colc = brd_ref[4:5, :], brd_ref[5:6, :]
    w1 = w1_ref[...].astype(jnp.float32)                  # hoisted, loaded once
    w2 = w2_ref[...].astype(jnp.float32)

    BC = x.shape[0]
    zhalo = jnp.zeros((BC, HB), jnp.float32)

    def ext(a):
        # Zero-extend so every shifted read is a plain static slice (no wrap, no roll).
        return jnp.concatenate([zhalo, a, zhalo], axis=1)        # (BC, P + 2*HB)

    def reflect_fill(a):
        # ReflectionPad2d(1) on the padded grid: border rows pull from +-2 rows,
        # border cols from +-2 cols (rows first, then cols -> correct corners).
        ae = ext(a)
        up2 = ae[:, HB + 2 * Wpp: HB + 2 * Wpp + P]              # a[p + 2*Wpp]
        dn2 = ae[:, HB - 2 * Wpp: HB - 2 * Wpp + P]              # a[p - 2*Wpp]
        ar = a * rowc + up2 * top + dn2 * bot
        are = ext(ar)
        ls = are[:, HB + 2: HB + 2 + P]                          # ar[p + 2]
        rs = are[:, HB - 2: HB - 2 + P]                          # ar[p - 2]
        return ar * colc + ls * lef + rs * rig

    def conv3x3(src, w):
        # One folded matmul: stack the 9 shifted patches along the contraction dim.
        se = ext(src)
        rhs = jnp.concatenate([se[:, HB + d: HB + d + P] for d in taps], axis=0)
        return jnp.dot(w, rhs, preferred_element_type=jnp.float32)   # (BC, P) f32

    def inorm(acc):
        # Per-(image, channel) stats over the H*W interior pixels only.
        am = acc * m                                             # reused for both sums
        mean = jnp.sum(am, axis=1, keepdims=True) * inv_n
        mean_sq = jnp.sum(am * acc, axis=1, keepdims=True) * inv_n
        var = mean_sq - mean * mean                              # one-pass, biased
        return (acc - mean) * jax.lax.rsqrt(var + EPS)

    # stage 1: refpad -> conv -> IN -> ReLU   (garbage outside interior is masked)
    xp = reflect_fill(x)
    y = jnp.maximum(inorm(conv3x3(xp, w1)), 0.0)
    # stage 2: refpad -> conv -> IN -> + residual
    yp = reflect_fill(y)
    z = inorm(conv3x3(yp, w2))
    o_ref[0] = (x + z).astype(o_ref.dtype)


def _fold_weights(w, imgs):
    """(3,3,Cin,Cout) [kh,kw,cin,cout] -> block-diagonal (imgs*Cout, 9*imgs*Cin)."""
    C = w.shape[-1]
    wt = jnp.transpose(w, (0, 1, 3, 2)).reshape(9, C, C)        # (tap, cout, cin)
    eye = jnp.eye(imgs, dtype=w.dtype)
    return jnp.einsum("ij,tab->iatjb", eye, wt).reshape(imgs * C, 9 * imgs * C)


def residual_block_forward(x_nchw, w1, b1, w2, b2):
    """Pallas implementation of Residual_Block.forward.

    x_nchw : (N, C, H, W) float32
    w1, w2 : (3, 3, C, C) conv weights, layout [kh, kw, cin, cout]
    b1, b2 : (C,) conv biases -- unused: InstanceNorm2d(affine=False) cancels any
             per-channel constant exactly, so the bias is dead compute.
    """
    del b1, b2
    N, C, H, W = x_nchw.shape
    Hp = H + 2
    Wpp = _round_up(W + 2, 128)          # lane-aligned flat row stride
    P = Hp * Wpp                         # flat padded-grid length (multiple of 128)

    imgs = min(max(1, 8 // C), N)        # pack images to fill the 8 f32 sublanes
    if N % imgs != 0:
        imgs = 1
    ng, bc = N // imgs, imgs * C

    # Single constant pad: rows at stride Wpp with a 1-pixel zero border (the reflect
    # values are filled in-kernel).  The reshapes below are free (layout-compatible).
    x_flat = jnp.pad(x_nchw, ((0, 0), (0, 0), (1, 1), (1, Wpp - 1 - W)))
    x_pack = x_flat.reshape(N, C, P).reshape(ng, bc, P)

    w1f = _fold_weights(w1, imgs)
    w2f = _fold_weights(w2, imgs)

    # Host-side constant masks (tiny: 7 rows of length P).
    p = np.arange(P)
    r, c = p // Wpp, p % Wpp
    interior = (((r >= 1) & (r <= H) & (c >= 1) & (c <= W))
                .astype(np.float32)[None, :])
    top = (r == 0).astype(np.float32)
    bot = (r == Hp - 1).astype(np.float32)
    lef = (c == 0).astype(np.float32)
    rig = (c == W + 1).astype(np.float32)
    border = np.stack([top, bot, lef, rig, 1.0 - top - bot, 1.0 - lef - rig])

    kernel = functools.partial(_residual_block_kernel, H=H, W=W, Wpp=Wpp, P=P)
    out = pl.pallas_call(
        kernel,
        out_shape=jax.ShapeDtypeStruct((ng, bc, P), x_nchw.dtype),
        grid=(ng,),
        in_specs=[
            pl.BlockSpec((1, bc, P), lambda g: (g, 0, 0)),
            pl.BlockSpec((bc, 9 * bc), lambda g: (0, 0)),
            pl.BlockSpec((bc, 9 * bc), lambda g: (0, 0)),
            pl.BlockSpec((1, P), lambda g: (0, 0)),
            pl.BlockSpec((6, P), lambda g: (0, 0)),
        ],
        out_specs=pl.BlockSpec((1, bc, P), lambda g: (g, 0, 0)),
        compiler_params=pltpu.CompilerParams(dimension_semantics=("parallel",)),
    )(x_pack, w1f, w2f, jnp.asarray(interior), jnp.asarray(border))

    # De-pad (layout glue only; in the full generator keep the padded layout between
    # chained residual blocks and de-pad once at the end).
    return out.reshape(N, C, Hp, Wpp)[:, :, 1:H + 1, 1:W + 1]


def reference_forward(x_nchw, w1, b1, w2, b2):
    """Pure-JAX reference mirroring the PyTorch module semantics (NCHW)."""
    def refpad(t):
        return jnp.pad(t, ((0, 0), (0, 0), (1, 1), (1, 1)), mode="reflect")

    def conv(t, w_khkwio, b):
        w_oihw = jnp.transpose(w_khkwio, (3, 2, 0, 1))   # -> (Cout, Cin, kh, kw)
        out = jax.lax.conv_general_dilated(
            t, w_oihw, window_strides=(1, 1), padding="VALID",
            dimension_numbers=("NCHW", "OIHW", "NCHW"))
        return out + b[None, :, None, None]

    def inorm(t):
        m = jnp.mean(t, axis=(2, 3), keepdims=True)
        v = jnp.mean(jnp.square(t - m), axis=(2, 3), keepdims=True)
        return (t - m) * jax.lax.rsqrt(v + EPS)

    y = jnp.maximum(inorm(conv(refpad(x_nchw), w1, b1)), 0.0)
    z = inorm(conv(refpad(y), w2, b2))
    return x_nchw + z


if __name__ == "__main__":
    N, C, H, W = 2, 4, 16, 16  # small shapes; input_dim = C = 4

    key = jax.random.PRNGKey(0)
    kx, kw1, kb1, kw2, kb2 = jax.random.split(key, 5)
    x = jax.random.normal(kx, (N, C, H, W), dtype=jnp.float32)
    w1 = jax.random.normal(kw1, (3, 3, C, C), dtype=jnp.float32) * 0.2
    b1 = jax.random.normal(kb1, (C,), dtype=jnp.float32) * 0.1
    w2 = jax.random.normal(kw2, (3, 3, C, C), dtype=jnp.float32) * 0.2
    b2 = jax.random.normal(kb2, (C,), dtype=jnp.float32) * 0.1

    out = jax.block_until_ready(residual_block_forward(x, w1, b1, w2, b2))
    ref = jax.block_until_ready(reference_forward(x, w1, b1, w2, b2))

    assert out.shape == (N, C, H, W) and out.dtype == jnp.float32
    np.testing.assert_allclose(np.asarray(out), np.asarray(ref), rtol=1e-4, atol=2e-4)
    print("KERNEL_OK")
</pallas_src>

<mosaic_0001>
module attributes {stable_mosaic.version = 11 : i64} {
  func.func @_residual_block_kernel(%arg0: i32, %arg1: memref<1x8x2304xf32, #tpu.memory_space<vmem>>, %arg2: memref<8x72xf32, #tpu.memory_space<vmem>>, %arg3: memref<8x72xf32, #tpu.memory_space<vmem>>, %arg4: memref<1x2304xf32, #tpu.memory_space<vmem>>, %arg5: memref<6x2304xf32, #tpu.memory_space<vmem>>, %arg6: memref<1x8x2304xf32, #tpu.memory_space<vmem>>) attributes {dimension_semantics = [#tpu.dimension_semantics<parallel>], iteration_bounds = array<i64: 1>, scalar_prefetch = 0 : i64, scratch_operands = 0 : i64, tpu.core_type = #tpu.core_type<tc>, window_params = [{transform_indices = @transform_0, window_bounds = array<i64: 1, 8, 2304>}, {pipeline_mode = #tpu.pipeline_mode<synchronous>, transform_indices = @transform_1, window_bounds = array<i64: 8, 72>}, {pipeline_mode = #tpu.pipeline_mode<synchronous>, transform_indices = @transform_2, window_bounds = array<i64: 8, 72>}, {pipeline_mode = #tpu.pipeline_mode<synchronous>, transform_indices = @transform_3, window_bounds = array<i64: 1, 2304>}, {pipeline_mode = #tpu.pipeline_mode<synchronous>, transform_indices = @transform_4, window_bounds = array<i64: 6, 2304>}, {transform_indices = @transform_5, window_bounds = array<i64: 1, 8, 2304>}]} {
    %c0 = arith.constant 0 : index
    %c0_0 = arith.constant 0 : index
    %c0_1 = arith.constant 0 : index
    %0 = vector.load %arg1[%c0, %c0_0, %c0_1] : memref<1x8x2304xf32, #tpu.memory_space<vmem>>, vector<1x8x2304xf32>
    %1 = vector.shape_cast %0 : vector<1x8x2304xf32> to vector<8x2304xf32>
    %c0_2 = arith.constant 0 : index
    %c0_3 = arith.constant 0 : index
    %2 = vector.load %arg4[%c0_2, %c0_3] : memref<1x2304xf32, #tpu.memory_space<vmem>>, vector<1x2304xf32>
    %c0_4 = arith.constant 0 : index
    %c0_5 = arith.constant 0 : index
    %3 = vector.load %arg5[%c0_4, %c0_5] : memref<6x2304xf32, #tpu.memory_space<vmem>>, vector<1x2304xf32>
    %c1 = arith.constant 1 : index
    %c0_6 = arith.constant 0 : index
    %4 = vector.load %arg5[%c1, %c0_6] : memref<6x2304xf32, #tpu.memory_space<vmem>>, vector<1x2304xf32>
    %c2 = arith.constant 2 : index
    %c0_7 = arith.constant 0 : index
    %5 = vector.load %arg5[%c2, %c0_7] : memref<6x2304xf32, #tpu.memory_space<vmem>>, vector<1x2304xf32>
    %c3 = arith.constant 3 : index
    %c0_8 = arith.constant 0 : index
    %6 = vector.load %arg5[%c3, %c0_8] : memref<6x2304xf32, #tpu.memory_space<vmem>>, vector<1x2304xf32>
    %c4 = arith.constant 4 : index
    %c0_9 = arith.constant 0 : index
    %7 = vector.load %arg5[%c4, %c0_9] : memref<6x2304xf32, #tpu.memory_space<vmem>>, vector<1x2304xf32>
    %c5 = arith.constant 5 : index
    %c0_10 = arith.constant 0 : index
    %8 = vector.load %arg5[%c5, %c0_10] : memref<6x2304xf32, #tpu.memory_space<vmem>>, vector<1x2304xf32>
    %c0_11 = arith.constant 0 : index
    %c0_12 = arith.constant 0 : index
    %9 = vector.load %arg2[%c0_11, %c0_12] : memref<8x72xf32, #tpu.memory_space<vmem>>, vector<8x72xf32>
    %c0_13 = arith.constant 0 : index
    %c0_14 = arith.constant 0 : index
    %10 = vector.load %arg3[%c0_13, %c0_14] : memref<8x72xf32, #tpu.memory_space<vmem>>, vector<8x72xf32>
    %cst = arith.constant 0.000000e+00 : f32
    %11 = vector.broadcast %cst : f32 to vector<8x256xf32>
    %12 = tpu.concatenate %11, %1, %11 in 1 : vector<8x256xf32>, vector<8x2304xf32>, vector<8x256xf32> -> vector<8x2816xf32>
    %13 = vector.extract_strided_slice %12 {offsets = [0, 512], sizes = [8, 2304], strides = [1, 1]} : vector<8x2816xf32> to vector<8x2304xf32>
    %14 = vector.extract_strided_slice %12 {offsets = [0, 0], sizes = [8, 2304], strides = [1, 1]} : vector<8x2816xf32> to vector<8x2304xf32>
    %15 = vector.broadcast %7 : vector<1x2304xf32> to vector<8x2304xf32>
    %16 = arith.mulf %1, %15 : vector<8x2304xf32>
    %17 = vector.broadcast %3 : vector<1x2304xf32> to vector<8x2304xf32>
    %18 = arith.mulf %13, %17 : vector<8x2304xf32>
    %19 = arith.addf %16, %18 : vector<8x2304xf32>
    %20 = vector.broadcast %4 : vector<1x2304xf32> to vector<8x2304xf32>
    %21 = arith.mulf %14, %20 : vector<8x2304xf32>
    %22 = arith.addf %19, %21 : vector<8x2304xf32>
    %23 = tpu.concatenate %11, %22, %11 in 1 : vector<8x256xf32>, vector<8x2304xf32>, vector<8x256xf32> -> vector<8x2816xf32>
    %24 = vector.extract_strided_slice %23 {offsets = [0, 258], sizes = [8, 2304], strides = [1, 1]} : vector<8x2816xf32> to vector<8x2304xf32>
    %25 = vector.extract_strided_slice %23 {offsets = [0, 254], sizes = [8, 2304], strides = [1, 1]} : vector<8x2816xf32> to vector<8x2304xf32>
    %26 = vector.broadcast %8 : vector<1x2304xf32> to vector<8x2304xf32>
    %27 = arith.mulf %22, %26 : vector<8x2304xf32>
    %28 = vector.broadcast %5 : vector<1x2304xf32> to vector<8x2304xf32>
    %29 = arith.mulf %24, %28 : vector<8x2304xf32>
    %30 = arith.addf %27, %29 : vector<8x2304xf32>
    %31 = vector.broadcast %6 : vector<1x2304xf32> to vector<8x2304xf32>
    %32 = arith.mulf %25, %31 : vector<8x2304xf32>
    %33 = arith.addf %30, %32 : vector<8x2304xf32>
    %34 = tpu.concatenate %11, %33, %11 in 1 : vector<8x256xf32>, vector<8x2304xf32>, vector<8x256xf32> -> vector<8x2816xf32>
    %35 = vector.extract_strided_slice %34 {offsets = [0, 127], sizes = [8, 2304], strides = [1, 1]} : vector<8x2816xf32> to vector<8x2304xf32>
    %36 = vector.extract_strided_slice %34 {offsets = [0, 128], sizes = [8, 2304], strides = [1, 1]} : vector<8x2816xf32> to vector<8x2304xf32>
    %37 = vector.extract_strided_slice %34 {offsets = [0, 129], sizes = [8, 2304], strides = [1, 1]} : vector<8x2816xf32> to vector<8x2304xf32>
    %38 = vector.extract_strided_slice %34 {offsets = [0, 255], sizes = [8, 2304], strides = [1, 1]} : vector<8x2816xf32> to vector<8x2304xf32>
    %39 = vector.extract_strided_slice %34 {offsets = [0, 256], sizes = [8, 2304], strides = [1, 1]} : vector<8x2816xf32> to vector<8x2304xf32>
    %40 = vector.extract_strided_slice %34 {offsets = [0, 257], sizes = [8, 2304], strides = [1, 1]} : vector<8x2816xf32> to vector<8x2304xf32>
    %41 = vector.extract_strided_slice %34 {offsets = [0, 383], sizes = [8, 2304], strides = [1, 1]} : vector<8x2816xf32> to vector<8x2304xf32>
    %42 = vector.extract_strided_slice %34 {offsets = [0, 384], sizes = [8, 2304], strides = [1, 1]} : vector<8x2816xf32> to vector<8x2304xf32>
    %43 = vector.extract_strided_slice %34 {offsets = [0, 385], sizes = [8, 2304], strides = [1, 1]} : vector<8x2816xf32> to vector<8x2304xf32>
    %44 = tpu.concatenate %35, %36, %37, %38, %39, %40, %41, %42, %43 in 0 : vector<8x2304xf32>, vector<8x2304xf32>, vector<8x2304xf32>, vector<8x2304xf32>, vector<8x2304xf32>, vector<8x2304xf32>, vector<8x2304xf32>, vector<8x2304xf32>, vector<8x2304xf32> -> vector<72x2304xf32>
    %cst_15 = arith.constant dense<0.000000e+00> : vector<8x2304xf32>
    %45 = tpu.matmul %9, %44, %cst_15 {dimension_numbers = #tpu.dot_dimension_numbers<[1], [0], [0], [1], [0, 0, 1, 1], [], []>} : vector<8x72xf32>, vector<72x2304xf32>, vector<8x2304xf32> -> vector<8x2304xf32>
    %46 = vector.broadcast %2 : vector<1x2304xf32> to vector<8x2304xf32>
    %47 = arith.mulf %45, %46 : vector<8x2304xf32>
    %cst_16 = arith.constant dense<0.000000e+00> : vector<8xf32>
    %48 = vector.multi_reduction <add>, %47, %cst_16 [1] : vector<8x2304xf32> to vector<8xf32>
    %49 = vector.shape_cast %48 : vector<8xf32> to vector<8x1xf32>
    %cst_17 = arith.constant 3.906250e-03 : f32
    %50 = vector.broadcast %cst_17 : f32 to vector<8x1xf32>
    %51 = arith.mulf %49, %50 : vector<8x1xf32>
    %52 = arith.mulf %47, %45 : vector<8x2304xf32>
    %cst_18 = arith.constant dense<0.000000e+00> : vector<8xf32>
    %53 = vector.multi_reduction <add>, %52, %cst_18 [1] : vector<8x2304xf32> to vector<8xf32>
    %54 = vector.shape_cast %53 : vector<8xf32> to vector<8x1xf32>
    %cst_19 = arith.constant 3.906250e-03 : f32
    %55 = vector.broadcast %cst_19 : f32 to vector<8x1xf32>
    %56 = arith.mulf %54, %55 : vector<8x1xf32>
    %57 = arith.mulf %51, %51 : vector<8x1xf32>
    %58 = arith.subf %56, %57 : vector<8x1xf32>
    %59 = vector.broadcast %51 : vector<8x1xf32> to vector<8x2304xf32>
    %60 = arith.subf %45, %59 : vector<8x2304xf32>
    %cst_20 = arith.constant 9.99999974E-6 : f32
    %61 = vector.broadcast %cst_20 : f32 to vector<8x1xf32>
    %62 = arith.addf %58, %61 : vector<8x1xf32>
    %63 = math.rsqrt %62 : vector<8x1xf32>
    %64 = vector.broadcast %63 : vector<8x1xf32> to vector<8x2304xf32>
    %65 = arith.mulf %60, %64 : vector<8x2304xf32>
    %cst_21 = arith.constant 0.000000e+00 : f32
    %66 = vector.broadcast %cst_21 : f32 to vector<8x2304xf32>
    %67 = arith.maximumf %65, %66 : vector<8x2304xf32>
    %68 = tpu.concatenate %11, %67, %11 in 1 : vector<8x256xf32>, vector<8x2304xf32>, vector<8x256xf32> -> vector<8x2816xf32>
    %69 = vector.extract_strided_slice %68 {offsets = [0, 512], sizes = [8, 2304], strides = [1, 1]} : vector<8x2816xf32> to vector<8x2304xf32>
    %70 = vector.extract_strided_slice %68 {offsets = [0, 0], sizes = [8, 2304], strides = [1, 1]} : vector<8x2816xf32> to vector<8x2304xf32>
    %71 = vector.broadcast %7 : vector<1x2304xf32> to vector<8x2304xf32>
    %72 = arith.mulf %67, %71 : vector<8x2304xf32>
    %73 = vector.broadcast %3 : vector<1x2304xf32> to vector<8x2304xf32>
    %74 = arith.mulf %69, %73 : vector<8x2304xf32>
    %75 = arith.addf %72, %74 : vector<8x2304xf32>
    %76 = vector.broadcast %4 : vector<1x2304xf32> to vector<8x2304xf32>
    %77 = arith.mulf %70, %76 : vector<8x2304xf32>
    %78 = arith.addf %75, %77 : vector<8x2304xf32>
    %79 = tpu.concatenate %11, %78, %11 in 1 : vector<8x256xf32>, vector<8x2304xf32>, vector<8x256xf32> -> vector<8x2816xf32>
    %80 = vector.extract_strided_slice %79 {offsets = [0, 258], sizes = [8, 2304], strides = [1, 1]} : vector<8x2816xf32> to vector<8x2304xf32>
    %81 = vector.extract_strided_slice %79 {offsets = [0, 254], sizes = [8, 2304], strides = [1, 1]} : vector<8x2816xf32> to vector<8x2304xf32>
    %82 = vector.broadcast %8 : vector<1x2304xf32> to vector<8x2304xf32>
    %83 = arith.mulf %78, %82 : vector<8x2304xf32>
    %84 = vector.broadcast %5 : vector<1x2304xf32> to vector<8x2304xf32>
    %85 = arith.mulf %80, %84 : vector<8x2304xf32>
    %86 = arith.addf %83, %85 : vector<8x2304xf32>
    %87 = vector.broadcast %6 : vector<1x2304xf32> to vector<8x2304xf32>
    %88 = arith.mulf %81, %87 : vector<8x2304xf32>
    %89 = arith.addf %86, %88 : vector<8x2304xf32>
    %90 = tpu.concatenate %11, %89, %11 in 1 : vector<8x256xf32>, vector<8x2304xf32>, vector<8x256xf32> -> vector<8x2816xf32>
    %91 = vector.extract_strided_slice %90 {offsets = [0, 127], sizes = [8, 2304], strides = [1, 1]} : vector<8x2816xf32> to vector<8x2304xf32>
    %92 = vector.extract_strided_slice %90 {offsets = [0, 128], sizes = [8, 2304], strides = [1, 1]} : vector<8x2816xf32> to vector<8x2304xf32>
    %93 = vector.extract_strided_slice %90 {offsets = [0, 129], sizes = [8, 2304], strides = [1, 1]} : vector<8x2816xf32> to vector<8x2304xf32>
    %94 = vector.extract_strided_slice %90 {offsets = [0, 255], sizes = [8, 2304], strides = [1, 1]} : vector<8x2816xf32> to vector<8x2304xf32>
    %95 = vector.extract_strided_slice %90 {offsets = [0, 256], sizes = [8, 2304], strides = [1, 1]} : vector<8x2816xf32> to vector<8x2304xf32>
    %96 = vector.extract_strided_slice %90 {offsets = [0, 257], sizes = [8, 2304], strides = [1, 1]} : vector<8x2816xf32> to vector<8x2304xf32>
    %97 = vector.extract_strided_slice %90 {offsets = [0, 383], sizes = [8, 2304], strides = [1, 1]} : vector<8x2816xf32> to vector<8x2304xf32>
    %98 = vector.extract_strided_slice %90 {offsets = [0, 384], sizes = [8, 2304], strides = [1, 1]} : vector<8x2816xf32> to vector<8x2304xf32>
    %99 = vector.extract_strided_slice %90 {offsets = [0, 385], sizes = [8, 2304], strides = [1, 1]} : vector<8x2816xf32> to vector<8x2304xf32>
    %100 = tpu.concatenate %91, %92, %93, %94, %95, %96, %97, %98, %99 in 0 : vector<8x2304xf32>, vector<8x2304xf32>, vector<8x2304xf32>, vector<8x2304xf32>, vector<8x2304xf32>, vector<8x2304xf32>, vector<8x2304xf32>, vector<8x2304xf32>, vector<8x2304xf32> -> vector<72x2304xf32>
    %cst_22 = arith.constant dense<0.000000e+00> : vector<8x2304xf32>
    %101 = tpu.matmul %10, %100, %cst_22 {dimension_numbers = #tpu.dot_dimension_numbers<[1], [0], [0], [1], [0, 0, 1, 1], [], []>} : vector<8x72xf32>, vector<72x2304xf32>, vector<8x2304xf32> -> vector<8x2304xf32>
    %102 = vector.broadcast %2 : vector<1x2304xf32> to vector<8x2304xf32>
    %103 = arith.mulf %101, %102 : vector<8x2304xf32>
    %cst_23 = arith.constant dense<0.000000e+00> : vector<8xf32>
    %104 = vector.multi_reduction <add>, %103, %cst_23 [1] : vector<8x2304xf32> to vector<8xf32>
    %105 = vector.shape_cast %104 : vector<8xf32> to vector<8x1xf32>
    %cst_24 = arith.constant 3.906250e-03 : f32
    %106 = vector.broadcast %cst_24 : f32 to vector<8x1xf32>
    %107 = arith.mulf %105, %106 : vector<8x1xf32>
    %108 = arith.mulf %103, %101 : vector<8x2304xf32>
    %cst_25 = arith.constant dense<0.000000e+00> : vector<8xf32>
    %109 = vector.multi_reduction <add>, %108, %cst_25 [1] : vector<8x2304xf32> to vector<8xf32>
    %110 = vector.shape_cast %109 : vector<8xf32> to vector<8x1xf32>
    %cst_26 = arith.constant 3.906250e-03 : f32
    %111 = vector.broadcast %cst_26 : f32 to vector<8x1xf32>
    %112 = arith.mulf %110, %111 : vector<8x1xf32>
    %113 = arith.mulf %107, %107 : vector<8x1xf32>
    %114 = arith.subf %112, %113 : vector<8x1xf32>
    %115 = vector.broadcast %107 : vector<8x1xf32> to vector<8x2304xf32>
    %116 = arith.subf %101, %115 : vector<8x2304xf32>
    %cst_27 = arith.constant 9.99999974E-6 : f32
    %117 = vector.broadcast %cst_27 : f32 to vector<8x1xf32>
    %118 = arith.addf %114, %117 : vector<8x1xf32>
    %119 = math.rsqrt %118 : vector<8x1xf32>
    %120 = vector.broadcast %119 : vector<8x1xf32> to vector<8x2304xf32>
    %121 = arith.mulf %116, %120 : vector<8x2304xf32>
    %122 = arith.addf %1, %121 : vector<8x2304xf32>
    %c0_28 = arith.constant 0 : index
    %c0_29 = arith.constant 0 : index
    %c0_30 = arith.constant 0 : index
    %123 = vector.load %arg6[%c0_28, %c0_29, %c0_30] : memref<1x8x2304xf32, #tpu.memory_space<vmem>>, vector<1x8x2304xf32>
    %124 = vector.shape_cast %123 : vector<1x8x2304xf32> to vector<8x2304xf32>
    %125 = vector.shape_cast %122 : vector<8x2304xf32> to vector<1x8x2304xf32>
    tpu.vector_store %arg6[%c0_28, %c0_29, %c0_30], %125 {strides = array<i32>} : memref<1x8x2304xf32, #tpu.memory_space<vmem>>, vector<1x8x2304xf32>,
    return
  }
  func.func @transform_0(%arg0: i32) -> (i32, i32, i32) {
    %c0_i32 = arith.constant 0 : i32
    %c0_i32_0 = arith.constant 0 : i32
    %c0_i32_1 = arith.constant 0 : i32
    return %arg0, %c0_i32, %c0_i32_0 : i32, i32, i32
  }
  func.func @transform_1(%arg0: i32) -> (i32, i32) {
    %c0_i32 = arith.constant 0 : i32
    %c0_i32_0 = arith.constant 0 : i32
    %c0_i32_1 = arith.constant 0 : i32
    return %c0_i32, %c0_i32_0 : i32, i32
  }
  func.func @transform_2(%arg0: i32) -> (i32, i32) {
    %c0_i32 = arith.constant 0 : i32
    %c0_i32_0 = arith.constant 0 : i32
    %c0_i32_1 = arith.constant 0 : i32
    return %c0_i32, %c0_i32_0 : i32, i32
  }
  func.func @transform_3(%arg0: i32) -> (i32, i32) {
    %c0_i32 = arith.constant 0 : i32
    %c0_i32_0 = arith.constant 0 : i32
    %c0_i32_1 = arith.constant 0 : i32
    return %c0_i32, %c0_i32_0 : i32, i32
  }
  func.func @transform_4(%arg0: i32) -> (i32, i32) {
    %c0_i32 = arith.constant 0 : i32
    %c0_i32_0 = arith.constant 0 : i32
    %c0_i32_1 = arith.constant 0 : i32
    return %c0_i32, %c0_i32_0 : i32, i32
  }
  func.func @transform_5(%arg0: i32) -> (i32, i32, i32) {
    %c0_i32 = arith.constant 0 : i32
    %c0_i32_0 = arith.constant 0 : i32
    %c0_i32_1 = arith.constant 0 : i32
    return %arg0, %c0_i32, %c0_i32_0 : i32, i32, i32
  }
}

</mosaic_0001>

<bundles_post_ra>
// kernel: tpu_custom_call.1
= control target key start
LH: loop header
LB: loop body
LE: loop exit
PB: predicated region body
PF: predicated region fallthrough
CT: control target
= control target key end

     0   :  { %10 = vsyncpa [#allocation3], 0  ;;  %s7047_s0 = inlined_call_operand.hbm [shape: f32[1,8,2304], index: 0, kind: input, shape index: {}]   ;;  %s7048_s1 = inlined_call_operand.hbm [shape: f32[8,72], index: 1, kind: input, shape index: {}]   ;;  %s7049_s2 = inlined_call_operand.hbm [shape: f32[8,72], index: 2, kind: input, shape index: {}]   ;;  %s7050_s3 = inlined_call_operand.hbm [shape: f32[1,2304], index: 3, kind: input, shape index: {}]   ;;  %s7051_s4 = inlined_call_operand.hbm [shape: f32[6,2304], index: 4, kind: input, shape index: {}]   ;;  %s7052_s5 = inlined_call_operand.hbm [shape: f32[1,8,2304], index: 5, kind: output, shape index: {}]  }
   0x1   :  { %11 = vsyncpa [#allocation6], 0 }
   0x2   :  { %12 = vsyncpa [#allocation9], 0 }
   0x3   :  { %13 = vsyncpa [#allocation4], 0  ;;  %s4801_s18 = smov [#allocation5]   ;;  %s4802_s20 = smov [#allocation8]  }
   0x4   :  { %s30_s19 = sshll.u32 %s4801_s18, 4  ;;  %s50_s21 = sshll.u32 %s4802_s20, 4  ;;  %s31_s19 = int_to_ptr.vmem [resolvable:$true] %s30_s19  ;;  %s51_s21 = int_to_ptr.vmem [resolvable:$true] %s50_s21 }
   0x5   :  { %s4661_s24 = scalar_lea.hbm %s7048_s1, 128 }
   0x6   :  { %p4662_p0 = scmp.ne.s32.totalorder %s7048_s1, %s4661_s24  ;;  %p4665_p1 = scmp.lt.u32.totalorder %s4661_s24, %s7048_s1 }
   0x8   :  { %p4667_p2 = pnand %p4665_p1, %p4662_p0 }
   0xa   :  { %4670 = shalt.err (!%p4667_p2)
}
   0xb   :  { %s4671_s29 = scalar_lea.vmem %s31_s19, 128  ;;  %p4676_p4 = scmp.lt.s32.totalorder %s31_s19, %s31_s19 }
   0xc   :  { %p4672_p3 = scmp.ne.s32.totalorder %s31_s19, %s4671_s29  ;;  %p4677_p5 = scmp.lt.s32.totalorder %s4671_s29, %s4671_s29 }
   0xe   :  { %p4678_p6 = por %p4677_p5, %p4676_p4 }
  0x10   :  { %p4679_p7 = pnand %p4678_p6, %p4672_p3 }
  0x12   :  { %4682 = shalt.err (!%p4679_p7)
}
  0x13   :  { %33 = dma.hbm_to_vmem [thread:$0]  %s7048_s1, 128, %s31_s19, [#allocation6]  }
  0x14   :  { %s4683_s9 = scalar_lea.hbm %s7050_s3, 288 }
  0x15   :  { %p4684_p8 = scmp.ne.s32.totalorder %s7050_s3, %s4683_s9  ;;  %p4687_p9 = scmp.lt.u32.totalorder %s4683_s9, %s7050_s3 }
  0x17   :  { %p4689_p10 = pnand %p4687_p9, %p4684_p8 }
  0x19   :  { %4692 = shalt.err (!%p4689_p10)
}
  0x1a   :  { %s4693_s14 = scalar_lea.vmem %s51_s21, 288  ;;  %p4698_p12 = scmp.lt.s32.totalorder %s51_s21, %s51_s21 }
  0x1b   :  { %p4694_p11 = scmp.ne.s32.totalorder %s51_s21, %s4693_s14  ;;  %p4699_p13 = scmp.lt.s32.totalorder %s4693_s14, %s4693_s14 }
  0x1d   :  { %p4700_p0 = por %p4699_p13, %p4698_p12 }
  0x1f   :  { %p4701_p1 = pnand %p4700_p0, %p4694_p11 }
  0x21   :  { %4704 = shalt.err (!%p4701_p1)
}
  0x22   :  { %53 = dma.hbm_to_vmem [thread:$0]  %s7050_s3, 288, %s51_s21, [#allocation9]  }
  0x23   :  { %s4803_s16 = smov [#allocation2]   ;;  %s4804_s18 = smov [#allocation7]  }
  0x24   :  { %s20_s17 = sshll.u32 %s4803_s16, 4  ;;  %s40_s19 = sshll.u32 %s4804_s18, 4  ;;  %s21_s17 = int_to_ptr.vmem [resolvable:$true] %s20_s17  ;;  %s41_s19 = int_to_ptr.vmem [resolvable:$true] %s40_s19 }
  0x25   :  { %s4705_s23 = scalar_lea.hbm %s7047_s0, 2304 }
  0x26   :  { %p4706_p2 = scmp.ne.s32.totalorder %s7047_s0, %s4705_s23  ;;  %p4709_p3 = scmp.lt.u32.totalorder %s4705_s23, %s7047_s0 }
  0x28   :  { %p4711_p4 = pnand %p4709_p3, %p4706_p2 }
  0x2a   :  { %4714 = shalt.err (!%p4711_p4)
}
  0x2b   :  { %s4715_s3 = scalar_lea.vmem %s21_s17, 2304  ;;  %p4720_p6 = scmp.lt.s32.totalorder %s21_s17, %s21_s17 }
  0x2c   :  { %p4716_p5 = scmp.ne.s32.totalorder %s21_s17, %s4715_s3  ;;  %p4721_p7 = scmp.lt.s32.totalorder %s4715_s3, %s4715_s3 }
  0x2e   :  { %p4722_p8 = por %p4721_p7, %p4720_p6 }
  0x30   :  { %p4723_p9 = pnand %p4722_p8, %p4716_p5 }
  0x32   :  { %4726 = shalt.err (!%p4723_p9)
}
  0x33   :  { %23 = dma.hbm_to_vmem [thread:$0]  %s7047_s0, 2304, %s21_s17, [#allocation3]  }
  0x34   :  { %s4727_s6 = scalar_lea.hbm %s7049_s2, 128 }
  0x35   :  { %p4728_p10 = scmp.ne.s32.totalorder %s7049_s2, %s4727_s6  ;;  %p4731_p11 = scmp.lt.u32.totalorder %s4727_s6, %s7049_s2 }
  0x37   :  { %p4733_p12 = pnand %p4731_p11, %p4728_p10 }
  0x39   :  { %4736 = shalt.err (!%p4733_p12)
}
  0x3a   :  { %s4737_s11 = scalar_lea.vmem %s41_s19, 128  ;;  %p4742_p0 = scmp.lt.s32.totalorder %s41_s19, %s41_s19 }
  0x3b   :  { %p4738_p13 = scmp.ne.s32.totalorder %s41_s19, %s4737_s11  ;;  %p4743_p1 = scmp.lt.s32.totalorder %s4737_s11, %s4737_s11 }
  0x3d   :  { %p4744_p2 = por %p4743_p1, %p4742_p0 }
  0x3f   :  { %p4745_p3 = pnand %p4744_p2, %p4738_p13 }
  0x41   :  { %4748 = shalt.err (!%p4745_p3)
}
  0x42   :  { %43 = dma.hbm_to_vmem [thread:$0]  %s7049_s2, 128, %s41_s19, [#allocation6]  }
  0x43   :  { %s4805_s13 = smov [#allocation10]   ;;  %s4749_s16 = scalar_lea.hbm %s7051_s4, 2304 }
  0x44   :  { %s60_s14 = sshll.u32 %s4805_s13, 4  ;;  %p4750_p4 = scmp.ne.s32.totalorder %s7051_s4, %s4749_s16  ;;  %s61_s14 = int_to_ptr.vmem [resolvable:$true] %s60_s14 }
  0x45   :  { %p4753_p5 = scmp.lt.u32.totalorder %s4749_s16, %s7051_s4 }
  0x47   :  { %p4755_p6 = pnand %p4753_p5, %p4750_p4 }
  0x49   :  { %4758 = shalt.err (!%p4755_p6)
}
  0x4a   :  { %s4759_s23 = scalar_lea.vmem %s61_s14, 2304  ;;  %p4764_p8 = scmp.lt.s32.totalorder %s61_s14, %s61_s14 }
  0x4b   :  { %p4760_p7 = scmp.ne.s32.totalorder %s61_s14, %s4759_s23  ;;  %p4765_p9 = scmp.lt.s32.totalorder %s4759_s23, %s4759_s23 }
  0x4d   :  { %p4766_p10 = por %p4765_p9, %p4764_p8 }
  0x4f   :  { %p4767_p11 = pnand %p4766_p10, %p4760_p7 }
  0x51   :  { %4770 = shalt.err (!%p4767_p11)
}
  0x52   :  { %63 = dma.hbm_to_vmem [thread:$0]  %s7051_s4, 2304, %s61_s14, [#allocation9]  }
  0x53   :  { %4793 = dma.done.wait [#allocation3], 2304  }
  0x54   :  { %4794 = vsyncadd [#allocation3], 4294964992 }
  0x55   :  { %4795 = dma.done.wait [#allocation6], 256  }
  0x56   :  { %4796 = vsyncadd [#allocation6], 4294967040 }
  0x57   :  { %4797 = dma.done.wait [#allocation9], 2592  }
  0x58   :  { %4798 = vsyncadd [#allocation9], 4294964704  ;;  %v164_v0 = vlaneseq  ;;  %v120_v5 = vld [vmem:[#allocation10 + $0x2] ss:$8 sm:$0xf]  ;;  %s4806_s4 = smov 2  }
  0x59   :  { %v121_v6 = vld [vmem:[#allocation10 + $0x2] ss:$8 sm:$0xf0]  ;;  %v130_v8 = vld [vmem:[#allocation10 + $0x3] ss:$8 sm:$0xf] }
  0x5a   :  { %v165_v1 = vshrl.u32 %v164_v0, 7  ;;  %v122_v7 = vor.u32 %v121_v6, %v120_v5  ;;  %v131_v9 = vld [vmem:[#allocation10 + $0x3] ss:$8 sm:$0xf0]  ;;  %s4807_s24 = smov 126   ;;  %vm752_vm0 = vcmask 15360  }
  0x5b   :  { %v132_v10 = vor.u32 %v131_v9, %v130_v8  ;;  %v134_v30 = vld [vmem:[#allocation10 + $0x43] ss:$8 sm:$0xf]  ;;  %v124_v32 = vld [vmem:[#allocation10 + $0x42] ss:$8 sm:$0xf] }
  0x5c   :  { %v4902_v2 = vsub.s32 0, %v165_v1  ;;  %v4904_v3 = vsub.s32 1, %v165_v1  ;;  %v4906_v4 = vsub.s32 2, %v165_v1  ;;  %v4918_v17 = vsub.s32 3, %v165_v1  ;;  %s4809_s25 = smov 127   ;;  %s4810_s26 = smov 1  }
  0x5d   :  { %v4924_v20 = vsub.s32 4, %v165_v1  ;;  %v4930_v23 = vsub.s32 6, %v165_v1  ;;  %v4932_v24 = vsub.s32 5, %v165_v1  ;;  %v4938_v27 = vsub.s32 7, %v165_v1  ;;  %s4811_s27 = smov [#allocation11]  }
  0x5e   :  { %v655_v11 = vrot.slane %v122_v7, %v4906_v4  ;;  %v647_v12 = vrot.slane %v122_v7, %v4902_v2  ;;  %v926_v13 = vrot.slane %v132_v10, %v4902_v2  ;;  %v651_v14 = vrot.slane %v122_v7, %v4904_v3  ;;  %v135_v31 = vld [vmem:[#allocation10 + $0x43] ss:$8 sm:$0xf0]  ;;  %v125_v33 = vld [vmem:[#allocation10 + $0x42] ss:$8 sm:$0xf0] }
  0x5f   :  { %v934_v15 = vrot.slane %v132_v10, %v4906_v4  ;;  %v930_v16 = vrot.slane %v132_v10, %v4904_v3  ;;  %v938_v18 = vrot.slane %v132_v10, %v4918_v17  ;;  %v659_v19 = vrot.slane %v122_v7, %v4918_v17  ;;  %v128_v52 = vld [vmem:[#allocation10 + $0x82] ss:$8 sm:$0x3]  ;;  %v138_v57 = vld [vmem:[#allocation10 + $0x83] ss:$8 sm:$0x3] }
  0x60   :  { %720 = vrot.lane.b32.xlu1 %v655_v11, %s4806_s4  ;;  %716 = vrot.lane.b32.xlu0 %v647_v12, %s4806_s4  ;;  %v942_v21 = vrot.slane %v132_v10, %v4924_v20  ;;  %v663_v22 = vrot.slane %v122_v7, %v4924_v20  ;;  %v671_v25 = vrot.slane %v122_v7, %v4930_v23  ;;  %v100_v60 = vld [vmem:[#allocation10] ss:$8 sm:$0xf]  ;;  %v140_v62 = vld [vmem:[#allocation10 + $0x4] ss:$8 sm:$0xf] }
  0x61   :  { %v667_v26 = vrot.slane %v122_v7, %v4932_v24  ;;  %v950_v28 = vrot.slane %v132_v10, %v4930_v23  ;;  %v946_v29 = vrot.slane %v132_v10, %v4932_v24  ;;  %v954_v34 = vrot.slane %v132_v10, %v4938_v27  ;;  %v101_v61 = vld [vmem:[#allocation10] ss:$8 sm:$0xf0]  ;;  %v141_v63 = vld [vmem:[#allocation10 + $0x4] ss:$8 sm:$0xf0] }
  0x62   :  { %v675_v35 = vrot.slane %v122_v7, %v4938_v27  ;;  %v136_v36 = vor.u32 %v135_v31, %v134_v30  ;;  %v126_v37 = vor.u32 %v125_v33, %v124_v32  ;;  %v711_v54 = vrot.slane %v128_v52, %v4902_v2  ;;  %v110_v5 = vld [vmem:[#allocation10 + $0x1] ss:$8 sm:$0xf]  ;;  %s7032_s3 = sshll.u32 %s4811_s27, 4  ;;  %s4002_s3 = int_to_ptr.vmem [resolvable:$true] %s7032_s3 }
  0x63   :  { %v715_v56 = vrot.slane %v128_v52, %v4904_v3  ;;  %v990_v58 = vrot.slane %v138_v57, %v4902_v2  ;;  %v994_v59 = vrot.slane %v138_v57, %v4904_v3  ;;  %v4990_v0 = vor.u32 %v101_v61, %v100_v60  ;;  %v111_v6 = vld [vmem:[#allocation10 + $0x1] ss:$8 sm:$0xf0]  ;;  %s4771_s21 = scalar_lea.vmem %s4002_s3, 2304  ;;  %p4776_p13 = scmp.lt.s32.totalorder %s4002_s3, %s4002_s3 }
  0x64   :  { %995 = vrot.lane.b32.xlu1 %v926_v13, %s4807_s24  ;;  %718 = vrot.lane.b32.xlu0 %v651_v14, %s4806_s4  ;;  %v958_v38 = vrot.slane %v136_v36, %v4902_v2  ;;  %v679_v39 = vrot.slane %v126_v37, %v4902_v2  ;;  %v687_v40 = vrot.slane %v126_v37, %v4906_v4  ;;  %v79_v10 = vld [vmem:[#allocation2] sm:$0xff]  ;;  %v5004_v11 = vld [vmem:[#allocation2 + $0x10] sm:$0xff]  ;;  %vm865_vm1 = vcmask 1031168   ;;  %p4772_p12 = scmp.ne.s32.totalorder %s4002_s3, %s4771_s21  ;;  %p4777_p0 = scmp.lt.s32.totalorder %s4771_s21, %s4771_s21 }
  0x65   :  { %v683_v41 = vrot.slane %v126_v37, %v4904_v3  ;;  %v966_v42 = vrot.slane %v136_v36, %v4906_v4  ;;  %v962_v43 = vrot.slane %v136_v36, %v4904_v3  ;;  %v970_v44 = vrot.slane %v136_v36, %v4918_v17 }
  0x66   :  { %v691_v45 = vrot.slane %v126_v37, %v4918_v17  ;;  %v974_v46 = vrot.slane %v136_v36, %v4924_v20  ;;  %v695_v47 = vrot.slane %v126_v37, %v4924_v20  ;;  %v703_v48 = vrot.slane %v126_v37, %v4930_v23  ;;  %p4778_p1 = por %p4777_p0, %p4776_p13 }
  0x67   :  { %v699_v49 = vrot.slane %v126_v37, %v4932_v24  ;;  %v982_v50 = vrot.slane %v136_v36, %v4930_v23  ;;  %v978_v51 = vrot.slane %v136_v36, %v4932_v24  ;;  %v707_v53 = vrot.slane %v126_v37, %v4938_v27 }
  0x68   :  { %999 = vrot.lane.b32.xlu1 %v934_v15, %s4807_s24  ;;  %997 = vrot.lane.b32.xlu0 %v930_v16, %s4807_s24  ;;  %v986_v55 = vrot.slane %v136_v36, %v4938_v27  ;;  %v4992_v1 = vor.u32 %v141_v63, %v140_v62  ;;  %v4994_v7 = vor.u32 %v111_v6, %v110_v5  ;;  %vm1251_vm2 = vcmask 1039360   ;;  %p4779_p2 = pnand %p4778_p1, %p4772_p12 }
  0x69   :  { %v5002_v9 = vrot.slane %v4990_v0, %v4902_v2  ;;  %v5017_v16 = vrot.slane %v4990_v0, %v4904_v3  ;;  %v5112_v63 = vrot.slane %v4990_v0, %v4932_v24  ;;  %vm1461_vm3 = vcmask 7168  }
  0x6a   :  { %v4998_v8 = vrot.slane %v4992_v1, %v4902_v2  ;;  %v407_v14 = vrot.slane %v4994_v7, %v4902_v2  ;;  %v5013_v15 = vrot.slane %v4992_v1, %v4904_v3  ;;  %v411_v31 = vrot.slane %v4994_v7, %v4904_v3 }
  0x6b   :  { %v365_v13 = vmul.f32 %v5002_v9, %v5004_v11  ;;  %v5108_v62 = vrot.slane %v4992_v1, %v4932_v24  ;;  %7167 = vst [vmem:[#allocation23_spill] sm:$0xff] %v5112_v63  ;;  %vm1593_vm4 = vcmask 588800  }
  0x6c   :  { %1001 = vrot.lane.b32.xlu1 %v938_v18, %s4807_s24  ;;  %722 = vrot.lane.b32.xlu0 %v659_v19, %s4806_s4  ;;  %v254_v12 = vmul.f32 %v4998_v8, %v79_v10  ;;  %v80_v18 = vld [vmem:[#allocation2 + $0x8] sm:$0xff]  ;;  %v5019_v19 = vld [vmem:[#allocation2 + $0x18] sm:$0xff]  ;;  %v5049_v37 = vmul.f32 0.0, %v411_v31 }
  0x6d   :  { %v366_v30 = vmul.f32 %v5017_v16, %v5019_v19  ;;  %7166 = vst [vmem:[#allocation22_spill] sm:$0xff] %v5108_v62 }
  0x6e   :  { %7161 = vst [vmem:[#allocation17_spill] sm:$0xff] %v5049_v37 }
  0x70   :  { %1003 = vrot.lane.b32.xlu1 %v942_v21, %s4807_s24  ;;  %724 = vrot.lane.b32.xlu0 %v663_v22, %s4806_s4  ;;  %v5023_v21 = vrot.slane %v4992_v1, %v4906_v4  ;;  %v5027_v22 = vrot.slane %v4990_v0, %v4906_v4 }
  0x72   :  { %v256_v32 = vmul.f32 %v5023_v21, %v5004_v11 }
  0x74   :  { %728 = vrot.lane.b32.xlu1 %v671_v25, %s4806_s4  ;;  %726 = vrot.lane.b32.xlu0 %v667_v26, %s4806_s4  ;;  %v383_v25 = vadd.f32 %v365_v13, %v254_v12  ;;  %v5029_v26 = vmul.f32 0.0, %v407_v14  ;;  %v5126_v14 = vrot.slane %v4992_v1, %v4930_v23 }
  0x76   :  { %7160 = vst [vmem:[#allocation16_spill] sm:$0xff] %v5029_v26  ;;  %7169 = vst [vmem:[#allocation25_spill] sm:$0xff] %v5126_v14 }
  0x78   :  { %1007 = vrot.lane.b32.xlu1 %v950_v28, %s4807_s24  ;;  %1005 = vrot.lane.b32.xlu0 %v946_v29, %s4807_s24  ;;  %v5031_v28 = vld [vmem:[#allocation2 + $0x20] sm:$0xff]  ;;  %v255_v29 = vmul.f32 %v5013_v15, %v80_v18 }
  0x79   :  { %v367_v33 = vmul.f32 %v5027_v22, %v5031_v28 }
  0x7a   :  { %v384_v36 = vadd.f32 %v366_v30, %v255_v29 }
  0x7c   :  { %1009 = vrot.lane.b32.xlu1 %v954_v34, %s4807_s24  ;;  %730 = vrot.lane.b32.xlu0 %v675_v35, %s4806_s4  ;;  %v5044_v34 = vrot.slane %v4994_v7, %v4906_v4  ;;  %v5047_v35 = vadd.f32 %v5029_v26, %v383_v25  ;;  %v5130_v25 = vrot.slane %v4990_v0, %v4930_v23 }
  0x7e   :  { %7170 = vst [vmem:[#allocation26_spill] sm:$0xff] %v5130_v25 }
  0x80   :  { %1011 = vrot.lane.b32.xlu1 %v958_v38, %s4807_s24  ;;  %732 = vrot.lane.b32.xlu0 %v679_v39, %s4806_s4  ;;  %v5053_v38 = vrot.slane %v4992_v1, %v4918_v17  ;;  %v5057_v39 = vrot.slane %v4990_v0, %v4918_v17 }
  0x84   :  { %736 = vrot.lane.b32.xlu1 %v687_v40, %s4806_s4  ;;  %734 = vrot.lane.b32.xlu0 %v683_v41, %s4806_s4 }
  0x88   :  { %1015 = vrot.lane.b32.xlu1 %v966_v42, %s4807_s24  ;;  %1013 = vrot.lane.b32.xlu0 %v962_v43, %s4807_s24  ;;  %v385_v42 = vadd.f32 %v367_v33, %v256_v32  ;;  %v496_v43 = vmul.f32 %v5044_v34, %v79_v10  ;;  %v5120_v10 = vld [vmem:[#allocation2 + $0x38] sm:$0xff]  ;;  %v5137_v33 = vrot.slane %v4994_v7, %v4932_v24 }
  0x8a   :  { %7171 = vst [vmem:[#allocation27_spill] sm:$0xff] %v5137_v33 }
  0x8c   :  { %1017 = vrot.lane.b32.xlu1 %v970_v44, %s4807_s24  ;;  %738 = vrot.lane.b32.xlu0 %v691_v45, %s4806_s4  ;;  %v5064_v44 = vld [vmem:[#allocation2 + $0x28] sm:$0xff]  ;;  %v5068_v45 = vrot.slane %v4992_v1, %v4924_v20 }
  0x8d   :  { %v368_v52 = vmul.f32 %v5057_v39, %v5064_v44 }
  0x8e   :  { %v258_v57 = vmul.f32 %v5068_v45, %v5031_v28 }
  0x90   :  { %1019 = vrot.lane.b32.xlu1 %v974_v46, %s4807_s24  ;;  %740 = vrot.lane.b32.xlu0 %v695_v47, %s4806_s4  ;;  %v5072_v46 = vrot.slane %v4990_v0, %v4924_v20 }
  0x92   :  { %7163 = vst [vmem:[#allocation19_spill] sm:$0xff] %v5072_v46 }
  0x94   :  { %744 = vrot.lane.b32.xlu1 %v703_v48, %s4806_s4  ;;  %742 = vrot.lane.b32.xlu0 %v699_v49, %s4806_s4  ;;  %v5076_v48 = vld [vmem:[#allocation2 + $0x30] sm:$0xff]  ;;  %v5079_v49 = vadd.f32 %v5049_v37, %v384_v36 }
  0x98   :  { %1023 = vrot.lane.b32.xlu1 %v982_v50, %s4807_s24  ;;  %1021 = vrot.lane.b32.xlu0 %v978_v51, %s4807_s24  ;;  %v7053_v50 = vmov 0.0   ;;  %v257_v51 = vmul.f32 %v5053_v38, %v5019_v19 }
  0x99   :  { %1661 = vmatprep.mubr.f32.mxu0 %v7053_v50  ;;  %1732 = vmatprep.mubr.f32.mxu1 %v7053_v50 }
  0x9a   :  { %v386_v12 = vadd.f32 %v368_v52, %v257_v51  ;;  %v104_v52 = vld [vmem:[#allocation10 + $0x40] ss:$8 sm:$0xf] }
  0x9c   :  { %746 = vrot.lane.b32.xlu1 %v707_v53, %s4806_s4  ;;  %748 = vrot.lane.b32.xlu0 %v711_v54, %s4806_s4  ;;  %v5090_v53 = vrot.slane %v4994_v7, %v4918_v17 }
  0x9e   :  { %v497_v13 = vmul.f32 %v5090_v53, %v80_v18  ;;  %v5139_v18 = vld [vmem:[#allocation2 + $0x40] sm:$0xff] }
  0xa0   :  { %1025 = vrot.lane.b32.xlu1 %v986_v55, %s4807_s24  ;;  %750 = vrot.lane.b32.xlu0 %v715_v56, %s4806_s4  ;;  %v5092_v56 = vadd.f32 %v496_v43, %v385_v42  ;;  %v259_v43 = vmul.f32 %v5108_v62, %v5064_v44 }
  0xa4   :  { %1027 = vrot.lane.b32.xlu1 %v990_v58, %s4807_s24  ;;  %1029 = vrot.lane.b32.xlu0 %v994_v59, %s4807_s24  ;;  %v369_v58 = vmul.f32 %v5072_v46, %v5076_v48  ;;  %v5100_v59 = vrot.slane %v4994_v7, %v4924_v20 }
  0xa6   :  { %7164 = vst [vmem:[#allocation20_spill] sm:$0xff] %v5100_v59  ;;  %v387_v31 = vadd.f32 %v369_v58, %v258_v57  ;;  %v498_v32 = vmul.f32 %v5100_v59, %v5004_v11  ;;  %v260_v57 = vmul.f32 %v5126_v14, %v5076_v48  ;;  %v371_v58 = vmul.f32 %v5130_v25, %v5139_v18 }
  0xa8   :  { %v5182_v14 = vadd.f32 %v498_v32, %v387_v31  ;;  %v115_v31 = vld [vmem:[#allocation10 + $0x41] ss:$8 sm:$0xf0] }
  0xd2   :  { %v5059_v40 = vpop.permute.xlu1 %720  ;;  %v5061_v41 = vpop.permute.xlu0 %716 }
  0xd3   :  { %7162 = vst [vmem:[#allocation18_spill] sm:$0xff] %v5061_v41  ;;  %v789_v47 = vmul.f32 %v5061_v41, %v5047_v35 }
  0xd5   :  { %827 = vrot.lane.b32.xlu0 %v789_v47, %s4807_s24  ;;  %v370_v47 = vmul.f32 %v5112_v63, %v5120_v10 }
  0xd6   :  { %v996_v54 = vpop.permute.xlu1 %995  ;;  %v719_v55 = vpop.permute.xlu0 %718 }
  0xd7   :  { %v1067_v60 = vmul.f32 0.0, %v996_v54  ;;  %v5104_v61 = vsel %vm752_vm0, %v5061_v41, %v719_v55  ;;  %v5116_v5 = vsel %vm752_vm0, %v719_v55, %v5059_v40  ;;  %v105_v55 = vld [vmem:[#allocation10 + $0x40] ss:$8 sm:$0xf0] }
  0xd8   :  { %7165 = vst [vmem:[#allocation21_spill] sm:$0xff] %v5104_v61  ;;  %7168 = vst [vmem:[#allocation24_spill] sm:$0xff] %v5116_v5  ;;  %v790_v6 = vmul.f32 %v5104_v61, %v5079_v49  ;;  %v791_v42 = vmul.f32 %v5116_v5, %v5092_v56  ;;  %v5184_v5 = vld [vmem:[#allocation2 + $0x48] sm:$0xff] }
  0xd9   :  { %1105 = vrot.lane.b32.xlu0 %v1067_v60, %s4806_s4  ;;  %v144_v60 = vld [vmem:[#allocation10 + $0x44] ss:$8 sm:$0xf] }
  0xda   :  { %v1000_v29 = vpop.permute.xlu1 %999  ;;  %v998_v30 = vpop.permute.xlu0 %997  ;;  %829 = vrot.lane.b32.xlu1 %v790_v6, %s4807_s24  ;;  %v145_v6 = vld [vmem:[#allocation10 + $0x44] ss:$8 sm:$0xf0] }
  0xdb   :  { %v5142_v36 = vsel %vm865_vm1, %v996_v54, %v998_v30  ;;  %v5151_v11 = vsel %vm865_vm1, %v998_v30, %v1000_v29  ;;  %v5156_v54 = vadd.f32 %v497_v13, %v386_v12  ;;  %v5171_v12 = vrot.slane %v4992_v1, %v4938_v27 }
  0xdc   :  { %7172 = vst [vmem:[#allocation28_spill] sm:$0xff] %v5142_v36  ;;  %7173 = vst [vmem:[#allocation29_spill] sm:$0xff] %v5151_v11  ;;  %v1068_v51 = vmul.f32 %v5142_v36, %v5047_v35  ;;  %v499_v36 = vmul.f32 %v5137_v33, %v5019_v19  ;;  %v5175_v13 = vrot.slane %v4990_v0, %v4938_v27 }
  0xdd   :  { %831 = vrot.lane.b32.xlu0 %v791_v42, %s4807_s24  ;;  %v5167_v42 = vrot.slane %v4994_v7, %v4930_v23  ;;  %7175 = vst [vmem:[#allocation31_spill] sm:$0xff] %v5171_v12  ;;  %v388_v19 = vadd.f32 %v370_v47, %v259_v43  ;;  %v5192_v0 = vor.u32 %v105_v55, %v104_v52 }
  0xde   :  { %v1002_v50 = vpop.permute.xlu1 %1001  ;;  %v723_v30 = vpop.permute.xlu0 %722  ;;  %1107 = vrot.lane.b32.xlu1 %v1068_v51, %s4806_s4  ;;  %7176 = vst [vmem:[#allocation32_spill] sm:$0xff] %v5175_v13  ;;  %v1069_v51 = vmul.f32 %v5151_v11, %v5079_v49  ;;  %v5194_v41 = vor.u32 %v145_v6, %v144_v60  ;;  %v114_v11 = vld [vmem:[#allocation10 + $0x41] ss:$8 sm:$0xf]  ;;  %v261_v47 = vmul.f32 %v5171_v12, %v5120_v10 }
  0xdf   :  { %7174 = vst [vmem:[#allocation30_spill] sm:$0xff] %v5167_v42  ;;  %v5178_v25 = vsel %vm865_vm1, %v1000_v29, %v1002_v50  ;;  %v5188_v33 = vsel %vm752_vm0, %v5059_v40, %v723_v30  ;;  %v389_v29 = vadd.f32 %v371_v58, %v260_v57  ;;  %v500_v40 = vmul.f32 %v5167_v42, %v5031_v28 }
  0xe0   :  { %7177 = vst [vmem:[#allocation33_spill] sm:$0xff] %v5178_v25  ;;  %7178 = vst [vmem:[#allocation34_spill] sm:$0xff] %v5188_v33  ;;  %v1070_v1 = vmul.f32 %v5178_v25, %v5092_v56  ;;  %v372_v52 = vmul.f32 %v5175_v13, %v5184_v5  ;;  %v5206_v55 = vrot.slane %v4994_v7, %v4938_v27 }
  0xe1   :  { %1109 = vrot.lane.b32.xlu0 %v1069_v51, %s4806_s4  ;;  %v792_v60 = vmul.f32 %v5188_v33, %v5156_v54  ;;  %v5216_v28 = vadd.f32 %v499_v36, %v388_v19  ;;  %v5220_v51 = vor.u32 %v115_v31, %v114_v11  ;;  %v5224_v7 = vrot.slane %v5194_v41, %v4902_v2 }
  0xe2   :  { %v1004_v32 = vpop.permute.xlu1 %1003  ;;  %v725_v43 = vpop.permute.xlu0 %724  ;;  %1111 = vrot.lane.b32.xlu1 %v1070_v1, %s4806_s4  ;;  %7179 = vst [vmem:[#allocation35_spill] sm:$0xff] %v5206_v55  ;;  %v5236_v19 = vadd.f32 %v500_v40, %v389_v29  ;;  %v390_v31 = vadd.f32 %v372_v52, %v261_v47  ;;  %v5248_v42 = vrot.slane %v5194_v41, %v4904_v3  ;;  %v5264_v47 = vld [vmem:[#allocation2 + $0x58] sm:$0xff] }
  0xe3   :  { %v5209_v57 = vsel %vm865_vm1, %v1002_v50, %v1004_v32  ;;  %v5212_v58 = vsel %vm752_vm0, %v723_v30, %v725_v43  ;;  %7182 = vst [vmem:[#allocation38_spill] sm:$0xff] %v5224_v7  ;;  %v5228_v50 = vrot.slane %v5192_v0, %v4902_v2  ;;  %v5231_v30 = vld [vmem:[#allocation2 + $0x50] sm:$0xff]  ;;  %v5262_v40 = vrot.slane %v5220_v51, %v4902_v2 }
  0xe4   :  { %7180 = vst [vmem:[#allocation36_spill] sm:$0xff] %v5209_v57  ;;  %7181 = vst [vmem:[#allocation37_spill] sm:$0xff] %v5212_v58  ;;  %v793_v6 = vmul.f32 %v5212_v58, %v5182_v14  ;;  %v1071_v11 = vmul.f32 %v5209_v57, %v5156_v54  ;;  %v501_v58 = vmul.f32 %v5206_v55, %v5064_v44  ;;  %v5278_v55 = vld [vmem:[#allocation2 + $0x60] sm:$0xff] }
  0xe5   :  { %7183 = vst [vmem:[#allocation39_spill] sm:$0xff] %v5228_v50  ;;  %833 = vrot.lane.b32.xlu0 %v792_v60, %s4807_s24  ;;  %7186 = vst [vmem:[#allocation42_spill] sm:$0xff] %v5248_v42  ;;  %v262_v44 = vmul.f32 %v5224_v7, %v5139_v18  ;;  %v5268_v52 = vrot.slane %v5220_v51, %v4904_v3  ;;  %v5282_v7 = vrot.slane %v5194_v41, %v4906_v4 }
  0xe6   :  { %v729_v1 = vpop.permute.xlu1 %728  ;;  %v727_v36 = vpop.permute.xlu0 %726  ;;  %835 = vrot.lane.b32.xlu1 %v793_v6, %s4807_s24  ;;  %v5252_v6 = vrot.slane %v5192_v0, %v4904_v3  ;;  %7188 = vst [vmem:[#allocation44_spill] sm:$0xff] %v5262_v40  ;;  %v5296_v25 = vadd.f32 %v501_v58, %v390_v31  ;;  %v502_v63 = vmul.f32 %v5262_v40, %v5076_v48 }
  0xe7   :  { %v5241_v13 = vsel %vm752_vm0, %v725_v43, %v727_v36  ;;  %v5244_v60 = vsel %vm752_vm0, %v727_v36, %v729_v1  ;;  %v373_v43 = vmul.f32 %v5228_v50, %v5231_v30  ;;  %7189 = vst [vmem:[#allocation45_spill] sm:$0xff] %v5268_v52  ;;  %v5272_v36 = vrot.slane %v5192_v0, %v4906_v4 }
  0xe8   :  { %7184 = vst [vmem:[#allocation40_spill] sm:$0xff] %v5241_v13  ;;  %7185 = vst [vmem:[#allocation41_spill] sm:$0xff] %v5244_v60  ;;  %v794_v29 = vmul.f32 %v5241_v13, %v5216_v28  ;;  %v795_v50 = vmul.f32 %v5244_v60, %v5236_v19  ;;  %v264_v31 = vmul.f32 %v5282_v7, %v5231_v30 }
  0xe9   :  { %7187 = vst [vmem:[#allocation43_spill] sm:$0xff] %v5252_v6  ;;  %7190 = vst [vmem:[#allocation46_spill] sm:$0xff] %v5272_v36  ;;  %v391_v61 = vadd.f32 %v373_v43, %v262_v44  ;;  %v5312_v48 = vrot.slane %v5220_v51, %v4906_v4 }
  0xea   :  { %v1008_v13 = vpop.permute.xlu1 %1007  ;;  %v1006_v57 = vpop.permute.xlu0 %1005  ;;  %1113 = vrot.lane.b32.xlu1 %v1071_v11, %s4806_s4  ;;  %837 = vrot.lane.b32.xlu0 %v794_v29, %s4807_s24  ;;  %7191 = vst [vmem:[#allocation47_spill] sm:$0xff] %v5282_v7  ;;  %v263_v11 = vmul.f32 %v5248_v42, %v5184_v5  ;;  %v374_v29 = vmul.f32 %v5252_v6, %v5264_v47 }
  0xeb   :  { %v5285_v12 = vsel %vm865_vm1, %v1004_v32, %v1006_v57  ;;  %v5288_v33 = vsel %vm865_vm1, %v1006_v57, %v1008_v13  ;;  %v503_v32 = vmul.f32 %v5268_v52, %v5120_v10  ;;  %v375_v57 = vmul.f32 %v5272_v36, %v5278_v55  ;;  %7194 = vst [vmem:[#allocation50_spill] sm:$0xff] %v5312_v48  ;;  %v5332_v36 = vld [vmem:[#allocation2 + $0x68] sm:$0xff] }
  0xec   :  { %7192 = vst [vmem:[#allocation48_spill] sm:$0xff] %v5285_v12  ;;  %7193 = vst [vmem:[#allocation49_spill] sm:$0xff] %v5288_v33  ;;  %v1072_v60 = vmul.f32 %v5285_v12, %v5182_v14  ;;  %v1073_v58 = vmul.f32 %v5288_v33, %v5216_v28  ;;  %v392_v43 = vadd.f32 %v374_v29, %v263_v11 }
  0xed   :  { %v5326_v33 = vadd.f32 %v502_v63, %v391_v61  ;;  %v5330_v12 = vrot.slane %v5192_v0, %v4918_v17  ;;  %v393_v63 = vadd.f32 %v375_v57, %v264_v31  ;;  %v504_v29 = vmul.f32 %v5312_v48, %v5139_v18 }
  0xee   :  { %v1010_v59 = vpop.permute.xlu1 %1009  ;;  %v731_v42 = vpop.permute.xlu0 %730  ;;  %839 = vrot.lane.b32.xlu1 %v795_v50, %s4807_s24  ;;  %1115 = vrot.lane.b32.xlu0 %v1072_v60, %s4806_s4  ;;  %v5322_v50 = vrot.slane %v5194_v41, %v4918_v17  ;;  %v5350_v6 = vadd.f32 %v503_v32, %v392_v43  ;;  %v5360_v18 = vrot.slane %v5194_v41, %v4924_v20  ;;  %v5368_v32 = vld [vmem:[#allocation2 + $0x70] sm:$0xff] }
  0xef   :  { %v5315_v10 = vsel %vm865_vm1, %v1008_v13, %v1010_v59  ;;  %v5318_v44 = vsel %vm752_vm0, %v729_v1, %v731_v42  ;;  %7198 = vst [vmem:[#allocation54_spill] sm:$0xff] %v5330_v12  ;;  %v5336_v13 = vrot.slane %v5220_v51, %v4918_v17  ;;  %v376_v57 = vmul.f32 %v5330_v12, %v5332_v36 }
  0xf0   :  { %7195 = vst [vmem:[#allocation51_spill] sm:$0xff] %v5315_v10  ;;  %7196 = vst [vmem:[#allocation52_spill] sm:$0xff] %v5318_v44  ;;  %v796_v60 = vmul.f32 %v5318_v44, %v5296_v25  ;;  %v1074_v61 = vmul.f32 %v5315_v10, %v5236_v19  ;;  %v5374_v10 = vadd.f32 %v504_v29, %v393_v63 }
  0xf1   :  { %7197 = vst [vmem:[#allocation53_spill] sm:$0xff] %v5322_v50  ;;  %7199 = vst [vmem:[#allocation55_spill] sm:$0xff] %v5336_v13  ;;  %v5378_v12 = vrot.slane %v5220_v51, %v4924_v20 }
  0xf2   :  { %v1012_v1 = vpop.permute.xlu1 %1011  ;;  %v733_v11 = vpop.permute.xlu0 %732  ;;  %1117 = vrot.lane.b32.xlu1 %v1073_v58, %s4806_s4  ;;  %841 = vrot.lane.b32.xlu0 %v796_v60, %s4807_s24  ;;  %v265_v58 = vmul.f32 %v5322_v50, %v5264_v47  ;;  %7202 = vst [vmem:[#allocation58_spill] sm:$0xff] %v5360_v18  ;;  %v5408_v50 = vrot.slane %v5192_v0, %v4930_v23 }
  0xf3   :  { %v5345_v44 = vsel %vm865_vm1, %v1010_v59, %v1012_v1  ;;  %v5348_v52 = vsel %vm752_vm0, %v731_v42, %v733_v11  ;;  %v5364_v59 = vrot.slane %v5192_v0, %v4924_v20  ;;  %v505_v42 = vmul.f32 %v5336_v13, %v5184_v5 }
  0xf4   :  { %7200 = vst [vmem:[#allocation56_spill] sm:$0xff] %v5345_v44  ;;  %7201 = vst [vmem:[#allocation57_spill] sm:$0xff] %v5348_v52  ;;  %v797_v60 = vmul.f32 %v5348_v52, %v5326_v33  ;;  %v1075_v52 = vmul.f32 %v5345_v44, %v5296_v25  ;;  %v394_v29 = vadd.f32 %v376_v57, %v265_v58 }
  0xf5   :  { %7203 = vst [vmem:[#allocation59_spill] sm:$0xff] %v5364_v59  ;;  %v266_v44 = vmul.f32 %v5360_v18, %v5278_v55  ;;  %v5404_v13 = vrot.slane %v5194_v41, %v4930_v23  ;;  %7209 = vst [vmem:[#allocation65_spill] sm:$0xff] %v5408_v50  ;;  %v5416_v57 = vrot.slane %v5220_v51, %v4932_v24 }
  0xf6   :  { %v737_v31 = vpop.permute.xlu1 %736  ;;  %v735_v43 = vpop.permute.xlu0 %734  ;;  %1119 = vrot.lane.b32.xlu1 %v1074_v61, %s4806_s4  ;;  %843 = vrot.lane.b32.xlu0 %v797_v60, %s4807_s24  ;;  %v5388_v61 = vrot.slane %v5194_v41, %v4932_v24  ;;  %v5392_v60 = vrot.slane %v5192_v0, %v4932_v24  ;;  %v506_v37 = vmul.f32 %v5378_v12, %v5231_v30 }
  0xf7   :  { %v5381_v48 = vsel %vm752_vm0, %v733_v11, %v735_v43  ;;  %v5384_v5 = vsel %vm752_vm0, %v735_v43, %v737_v31  ;;  %v377_v11 = vmul.f32 %v5364_v59, %v5368_v32  ;;  %v5400_v43 = vld [vmem:[#allocation2 + $0x78] sm:$0xff]  ;;  %7208 = vst [vmem:[#allocation64_spill] sm:$0xff] %v5404_v13 }
  0xf8   :  { %7204 = vst [vmem:[#allocation60_spill] sm:$0xff] %v5381_v48  ;;  %7205 = vst [vmem:[#allocation61_spill] sm:$0xff] %v5384_v5  ;;  %v798_v63 = vmul.f32 %v5381_v48, %v5350_v6  ;;  %v799_v58 = vmul.f32 %v5384_v5, %v5374_v10  ;;  %v95_v48 = vld [vmem:[#allocation2 + $0x80] sm:$0xff]  ;;  %v267_v62 = vmul.f32 %v5388_v61, %v5332_v36 }
  0xf9   :  { %7206 = vst [vmem:[#allocation62_spill] sm:$0xff] %v5388_v61  ;;  %7207 = vst [vmem:[#allocation63_spill] sm:$0xff] %v5392_v60  ;;  %v5430_v5 = vadd.f32 %v505_v42, %v394_v29  ;;  %v395_v26 = vadd.f32 %v377_v11, %v266_v44  ;;  %v5439_v61 = vrot.slane %v5220_v51, %v4930_v23 }
  0xfa   :  { %v1016_v40 = vpop.permute.xlu1 %1015  ;;  %v1014_v7 = vpop.permute.xlu0 %1013  ;;  %1121 = vrot.lane.b32.xlu1 %v1075_v52, %s4806_s4  ;;  %845 = vrot.lane.b32.xlu0 %v798_v63, %s4807_s24  ;;  %v378_v52 = vmul.f32 %v5392_v60, %v5400_v43  ;;  %v507_v11 = vmul.f32 %v5416_v57, %v5264_v47  ;;  %v96_v47 = vld [vmem:[#allocation2 + $0x88] sm:$0xff] }
  0xfb   :  { %v5419_v59 = vsel %vm865_vm1, %v1012_v1, %v1014_v7  ;;  %v5422_v18 = vsel %vm865_vm1, %v1014_v7, %v1016_v40  ;;  %v268_v1 = vmul.f32 %v5404_v13, %v5368_v32  ;;  %v379_v7 = vmul.f32 %v5408_v50, %v95_v48  ;;  %7212 = vst [vmem:[#allocation68_spill] sm:$0xff] %v5439_v61  ;;  %v148_v50 = vld [vmem:[#allocation10 + $0x84] ss:$8 sm:$0x3] }
  0xfc   :  { %7210 = vst [vmem:[#allocation66_spill] sm:$0xff] %v5419_v59  ;;  %7211 = vst [vmem:[#allocation67_spill] sm:$0xff] %v5422_v18  ;;  %v1076_v63 = vmul.f32 %v5419_v59, %v5326_v33  ;;  %v1077_v44 = vmul.f32 %v5422_v18, %v5350_v6  ;;  %v396_v29 = vadd.f32 %v378_v52, %v267_v62  ;;  %v108_v59 = vld [vmem:[#allocation10 + $0x80] ss:$8 sm:$0x3] }
  0xfd   :  { %v5455_v13 = vadd.f32 %v506_v37, %v395_v26  ;;  %v508_v62 = vmul.f32 %v5439_v61, %v5278_v55  ;;  %v5472_v37 = vrot.slane %v148_v50, %v4902_v2 }
  0xfe   :  { %v1018_v46 = vpop.permute.xlu1 %1017  ;;  %v739_v60 = vpop.permute.xlu0 %738  ;;  %847 = vrot.lane.b32.xlu1 %v799_v58, %s4807_s24  ;;  %1123 = vrot.lane.b32.xlu0 %v1076_v63, %s4806_s4  ;;  %v5459_v63 = vrot.slane %v5194_v41, %v4938_v27  ;;  %v342_v41 = vrot.slane %v108_v59, %v4902_v2 }
  0xff   :  { %v5446_v30 = vsel %vm865_vm1, %v1016_v40, %v1018_v46  ;;  %v5449_v42 = vsel %vm752_vm0, %v737_v31, %v739_v60  ;;  %v5463_v40 = vrot.slane %v5192_v0, %v4938_v27  ;;  %v397_v31 = vadd.f32 %v379_v7, %v268_v1  ;;  %7216 = vst [vmem:[#allocation72_spill] sm:$0xff] %v5472_v37  ;;  %v118_v7 = vld [vmem:[#allocation10 + $0x81] ss:$8 sm:$0x3] }
 0x100   :  { %7213 = vst [vmem:[#allocation69_spill] sm:$0xff] %v5446_v30  ;;  %7214 = vst [vmem:[#allocation70_spill] sm:$0xff] %v5449_v42  ;;  %v800_v58 = vmul.f32 %v5449_v42, %v5430_v5  ;;  %v1078_v26 = vmul.f32 %v5446_v30, %v5374_v10  ;;  %v5481_v1 = vadd.f32 %v507_v11, %v396_v29 }
 0x101   :  { %7215 = vst [vmem:[#allocation71_spill] sm:$0xff] %v5463_v40  ;;  %v380_v30 = vmul.f32 %v5463_v40, %v96_v47  ;;  %v5490_v42 = vrot.slane %v5220_v51, %v4938_v27  ;;  %v270_v11 = vmul.f32 %v5472_v37, %v95_v48  ;;  %v5502_v40 = vrot.slane %v118_v7, %v4902_v2 }
 0x102   :  { %v1020_v52 = vpop.permute.xlu1 %1019  ;;  %v741_v18 = vpop.permute.xlu0 %740  ;;  %1125 = vrot.lane.b32.xlu1 %v1077_v44, %s4806_s4  ;;  %849 = vrot.lane.b32.xlu0 %v800_v58, %s4807_s24  ;;  %v269_v58 = vmul.f32 %v5459_v63, %v5400_v43  ;;  %v5515_v48 = vrot.slane %v148_v50, %v4904_v3 }
 0x103   :  { %v5476_v0 = vsel %vm865_vm1, %v1018_v46, %v1020_v52  ;;  %v5479_v55 = vsel %vm752_vm0, %v739_v60, %v741_v18  ;;  %7219 = vst [vmem:[#allocation75_spill] sm:$0xff] %v5490_v42  ;;  %v5492_v46 = vadd.f32 %v508_v62, %v397_v31  ;;  %7220 = vst [vmem:[#allocation76_spill] sm:$0xff] %v5502_v40 }
 0x104   :  { %7217 = vst [vmem:[#allocation73_spill] sm:$0xff] %v5476_v0  ;;  %7218 = vst [vmem:[#allocation74_spill] sm:$0xff] %v5479_v55  ;;  %v801_v44 = vmul.f32 %v5479_v55, %v5455_v13  ;;  %v1079_v29 = vmul.f32 %v5476_v0, %v5430_v5  ;;  %v5499_v55 = vmul.f32 0.0, %v342_v41  ;;  %v346_v41 = vrot.slane %v108_v59, %v4904_v3 }
 0x106   :  { %v745_v61 = vpop.permute.xlu1 %744  ;;  %v743_v60 = vpop.permute.xlu0 %742  ;;  %1127 = vrot.lane.b32.xlu1 %v1078_v26, %s4806_s4  ;;  %851 = vrot.lane.b32.xlu0 %v801_v44, %s4807_s24  ;;  %v398_v26 = vadd.f32 %v380_v30, %v269_v58  ;;  %v509_v44 = vmul.f32 %v5490_v42, %v5332_v36  ;;  %v510_v30 = vmul.f32 %v5502_v40, %v5368_v32 }
 0x107   :  { %v5505_v51 = vsel %vm752_vm0, %v741_v18, %v743_v60  ;;  %v5508_v31 = vsel %vm752_vm0, %v743_v60, %v745_v61  ;;  %v399_v60 = vadd.f32 %v5499_v55, %v270_v11 }
 0x108   :  { %7221 = vst [vmem:[#allocation77_spill] sm:$0xff] %v5505_v51  ;;  %7222 = vst [vmem:[#allocation78_spill] sm:$0xff] %v5508_v31  ;;  %v802_v62 = vmul.f32 %v5505_v51, %v5481_v1  ;;  %v803_v18 = vmul.f32 %v5508_v31, %v5492_v46  ;;  %v5533_v58 = vadd.f32 %v509_v44, %v398_v26  ;;  %v5545_v31 = vmul.f32 0.0, %v346_v41 }
 0x109   :  { %v5542_v11 = vadd.f32 %v510_v30, %v399_v60 }
 0x10a   :  { %v1024_v0 = vpop.permute.xlu1 %1023  ;;  %v1022_v37 = vpop.permute.xlu0 %1021  ;;  %1129 = vrot.lane.b32.xlu1 %v1079_v29, %s4806_s4  ;;  %853 = vrot.lane.b32.xlu0 %v802_v62, %s4807_s24  ;;  %v5536_v29 = vrot.slane %v118_v7, %v4904_v3  ;;  %7226 = vst [vmem:[#allocation82_spill] sm:$0xff] %v5545_v31 }
 0x10b   :  { %v5526_v36 = vsel %vm865_vm1, %v1020_v52, %v1022_v37  ;;  %v5529_v50 = vsel %vm865_vm1, %v1022_v37, %v1024_v0  ;;  %v271_v37 = vmul.f32 %v5515_v48, %v96_v47 }
 0x10c   :  { %7223 = vst [vmem:[#allocation79_spill] sm:$0xff] %v5526_v36  ;;  %7224 = vst [vmem:[#allocation80_spill] sm:$0xff] %v5529_v50  ;;  %v1080_v59 = vmul.f32 %v5526_v36, %v5455_v13  ;;  %v1081_v32 = vmul.f32 %v5529_v50, %v5481_v1 }
 0x10d   :  { %7225 = vst [vmem:[#allocation81_spill] sm:$0xff] %v5536_v29  ;;  %v400_v41 = vadd.f32 %v5545_v31, %v271_v37 }
 0x10e   :  { %v747_v62 = vpop.permute.xlu1 %746  ;;  %855 = vrot.lane.b32.xlu1 %v803_v18, %s4807_s24  ;;  %1131 = vrot.lane.b32.xlu0 %v1080_v59, %s4806_s4  ;;  %v749_v52 = vpop.permute.xlu0 %748 }
 0x10f   :  { %v5548_v26 = vsel %vm752_vm0, %v745_v61, %v747_v62  ;;  %v5551_v7 = vsel %vm752_vm0, %v747_v62, %v749_v52  ;;  %v511_v61 = vmul.f32 %v5536_v29, %v5400_v43 }
 0x110   :  { %7227 = vst [vmem:[#allocation83_spill] sm:$0xff] %v5548_v26  ;;  %7228 = vst [vmem:[#allocation84_spill] sm:$0xff] %v5551_v7  ;;  %v804_v44 = vmul.f32 %v5548_v26, %v5533_v58  ;;  %v805_v47 = vmul.f32 %v5551_v7, %v5542_v11 }
 0x112   :  { %v1026_v18 = vpop.permute.xlu1 %1025  ;;  %1133 = vrot.lane.b32.xlu1 %v1081_v32, %s4806_s4  ;;  %857 = vrot.lane.b32.xlu0 %v804_v44, %s4807_s24  ;;  %v751_v60 = vpop.permute.xlu0 %750  ;;  %v5571_v44 = vadd.f32 %v511_v61, %v400_v41 }
 0x113   :  { %v5563_v30 = vsel %vm865_vm1, %v1024_v0, %v1026_v18  ;;  %v5577_v43 = vsel %vm752_vm0, %v749_v52, %v751_v60  ;;  %v807_v7 = vmul.f32 0.0, %v751_v60  ;;  %v150_v52 = vld [vmem:[#allocation10 + $0x5] ss:$8 sm:$0xf] }
 0x114   :  { %7229 = vst [vmem:[#allocation85_spill] sm:$0xff] %v5563_v30  ;;  %v1082_v59 = vmul.f32 %v5563_v30, %v5492_v46  ;;  %7232 = vst [vmem:[#allocation88_spill] sm:$0xff] %v5577_v43 }
 0x116   :  { %1135 = vrot.lane.b32.xlu1 %v1082_v59, %s4806_s4  ;;  %v1028_v62 = vpop.permute.xlu1 %1027  ;;  %v5568_v32 = vpop.permute.xlu0 %1029  ;;  %859 = vrot.lane.b32.xlu0 %v805_v47, %s4807_s24  ;;  %v151_v47 = vld [vmem:[#allocation10 + $0x5] ss:$8 sm:$0xf0] }
 0x117   :  { %7230 = vst [vmem:[#allocation86_spill] sm:$0xff] %v5568_v32  ;;  %v5574_v37 = vsel %vm865_vm1, %v1026_v18, %v1028_v62  ;;  %v5581_v0 = vsel %vm865_vm1, %v1028_v62, %v5568_v32  ;;  %v806_v18 = vmul.f32 %v5577_v43, %v5571_v44  ;;  %v5593_v41 = vor.u32 %v151_v47, %v150_v52 }
 0x118   :  { %7231 = vst [vmem:[#allocation87_spill] sm:$0xff] %v5574_v37  ;;  %7233 = vst [vmem:[#allocation89_spill] sm:$0xff] %v5581_v0  ;;  %v1083_v59 = vmul.f32 %v5574_v37, %v5533_v58  ;;  %v1084_v30 = vmul.f32 %v5581_v0, %v5542_v11 }
 0x119   :  { %v5597_v62 = vrot.slane %v5593_v41, %v4902_v2  ;;  %v5606_v52 = vrot.slane %v5593_v41, %v4904_v3  ;;  %v5612_v43 = vrot.slane %v5593_v41, %v4906_v4 }
 0x11a   :  { %1137 = vrot.lane.b32.xlu1 %v1083_v59, %s4806_s4  ;;  %1139 = vrot.lane.b32.xlu0 %v1084_v30, %s4806_s4 }
 0x11b   :  { %7234 = vst [vmem:[#allocation90_spill] sm:$0xff] %v5597_v62  ;;  %v623_v0 = vmul.f32 %v5597_v62, %v5047_v35  ;;  %7236 = vst [vmem:[#allocation92_spill] sm:$0xff] %v5606_v52  ;;  %v7238_v35 = vmov 0.0  }
 0x11c   :  { %7237 = vst [vmem:[#allocation93_spill] sm:$0xff] %v5612_v43 }
 0x11e   :  { %861 = vrot.lane.b32.xlu1 %v806_v18, %s4807_s24  ;;  %863 = vrot.lane.b32.xlu0 %v807_v7, %s4807_s24 }
 0x147   :  { %v828_v61 = vpop.permute.xlu0 %827 }
 0x14b   :  { %v5599_v60 = vpop.permute.xlu0 %1105 }
 0x14c   :  { %7235 = vst [vmem:[#allocation91_spill] sm:$0xff] %v5599_v60  ;;  %v830_v59 = vpop.permute.xlu1 %829 }
 0x14d   :  { %v866_v30 = vsel %vm865_vm1, %v828_v61, %v830_v59  ;;  %v625_v61 = vmul.f32 %v5612_v43, %v5092_v56 }
 0x14e   :  { %v902_v37 = vadd.f32 %v866_v30, %v623_v0  ;;  %v624_v0 = vmul.f32 %v5606_v52, %v5079_v49  ;;  %v5632_v49 = vrot.slane %v5593_v41, %v4924_v20 }
 0x14f   :  { %v832_v18 = vpop.permute.xlu0 %831 }
 0x150   :  { %v1108_v7 = vpop.permute.xlu1 %1107  ;;  %v867_v30 = vsel %vm865_vm1, %v830_v59, %v832_v18  ;;  %7240 = vst [vmem:[#allocation95_spill] sm:$0xff] %v5632_v49  ;;  %v627_v31 = vmul.f32 %v5632_v49, %v5182_v14  ;;  %v5658_v14 = vrot.slane %v5593_v41, %v4930_v23 }
 0x151   :  { %v1143_v47 = vsel %vm752_vm0, %v5599_v60, %v1108_v7  ;;  %v903_v56 = vadd.f32 %v867_v30, %v624_v0  ;;  %v1085_v0 = vmul.f32 %v5568_v32, %v5571_v44 }
 0x152   :  { %v1179_v26 = vadd.f32 %v1143_v47, %v902_v37  ;;  %v5626_v37 = vrot.slane %v5593_v41, %v4918_v17  ;;  %7241 = vst [vmem:[#allocation96_spill] sm:$0xff] %v5658_v14 }
 0x153   :  { %v1110_v50 = vpop.permute.xlu0 %1109 }
 0x154   :  { %v1112_v36 = vpop.permute.xlu1 %1111  ;;  %v5615_v62 = vpack.i.bf16 %v1179_v26, %v7238_v35  ;;  %7239 = vst [vmem:[#allocation94_spill] sm:$0xff] %v5626_v37  ;;  %v1144_v26 = vsel %vm752_vm0, %v1108_v7, %v1110_v50  ;;  %v626_v7 = vmul.f32 %v5626_v37, %v5156_v54 }
 0x155   :  { %v1145_v43 = vsel %vm752_vm0, %v1110_v50, %v1112_v36  ;;  %v5637_v52 = vadd.f32 %v1144_v26, %v903_v56  ;;  %v5649_v50 = vrot.slane %v5593_v41, %v4932_v24  ;;  %v154_v26 = vld [vmem:[#allocation10 + $0x45] ss:$8 sm:$0xf] }
 0x156   :  { %4330 = vrot.lane.b32.xlu1 %v5615_v62, %s4809_s25 }
 0x157   :  { %v834_v60 = vpop.permute.xlu0 %833 }
 0x158   :  { %v868_v47 = vsel %vm865_vm1, %v832_v18, %v834_v60  ;;  %v836_v51 = vpop.permute.xlu1 %835 }
 0x159   :  { %v904_v59 = vadd.f32 %v868_v47, %v625_v61  ;;  %v869_v61 = vsel %vm865_vm1, %v834_v60, %v836_v51  ;;  %v155_v47 = vld [vmem:[#allocation10 + $0x45] ss:$8 sm:$0xf0] }
 0x15a   :  { %4340 = vrot.lane.b32.xlu1 %v5615_v62, %s4807_s24  ;;  %v905_v56 = vadd.f32 %v869_v61, %v626_v7 }
 0x15b   :  { %v5639_v29 = vadd.f32 %v1145_v43, %v904_v59 }
 0x15c   :  { %v1114_v18 = vpop.permute.xlu1 %1113  ;;  %v838_v42 = vpop.permute.xlu0 %837 }
 0x15d   :  { %v870_v43 = vsel %vm865_vm1, %v836_v51, %v838_v42  ;;  %v4334_v30 = vpack.i.bf16 %v5639_v29, %v5637_v52  ;;  %v1146_v54 = vsel %vm752_vm0, %v1112_v36, %v1114_v18  ;;  %v628_v51 = vmul.f32 %v5649_v50, %v5216_v28 }
 0x15e   :  { %1141 = vrot.lane.b32.xlu1 %v1085_v0, %s4806_s4  ;;  %v906_v59 = vadd.f32 %v870_v43, %v627_v31  ;;  %v5666_v37 = vadd.f32 %v1146_v54, %v905_v56  ;;  %v629_v36 = vmul.f32 %v5658_v14, %v5236_v19 }
 0x15f   :  { %4335 = vrot.lane.b32.xlu0 %v4334_v30, %s4809_s25  ;;  %v5672_v30 = vor.u32 %v155_v47, %v154_v26 }
 0x160   :  { %v840_v60 = vpop.permute.xlu1 %839  ;;  %v1116_v32 = vpop.permute.xlu0 %1115 }
 0x161   :  { %v871_v49 = vsel %vm865_vm1, %v838_v42, %v840_v60  ;;  %v1147_v0 = vsel %vm752_vm0, %v1114_v18, %v1116_v32  ;;  %v5680_v18 = vrot.slane %v5593_v41, %v4938_v27  ;;  %v5687_v54 = vrot.slane %v5672_v30, %v4902_v2 }
 0x162   :  { %v5668_v40 = vadd.f32 %v1147_v0, %v906_v59  ;;  %v907_v31 = vadd.f32 %v871_v49, %v628_v51 }
 0x163   :  { %1274 = vrot.lane.b32.xlu0 %v5637_v52, %s4807_s24  ;;  %7242 = vst [vmem:[#allocation97_spill] sm:$0xff] %v5680_v18  ;;  %7243 = vst [vmem:[#allocation98_spill] sm:$0xff] %v5687_v54  ;;  %v630_v41 = vmul.f32 %v5680_v18, %v5296_v25  ;;  %v631_v51 = vmul.f32 %v5687_v54, %v5326_v33  ;;  %v5707_v25 = vrot.slane %v5672_v30, %v4904_v3 }
 0x164   :  { %v1118_v28 = vpop.permute.xlu1 %1117  ;;  %v842_v7 = vpop.permute.xlu0 %841  ;;  %v4344_v42 = vpack.i.bf16 %v5668_v40, %v5666_v37  ;;  %v5716_v33 = vrot.slane %v5672_v30, %v4906_v4 }
 0x165   :  { %v1148_v61 = vsel %vm752_vm0, %v1116_v32, %v1118_v28  ;;  %v872_v43 = vsel %vm865_vm1, %v840_v60, %v842_v7  ;;  %7244 = vst [vmem:[#allocation99_spill] sm:$0xff] %v5707_v25 }
 0x166   :  { %v908_v19 = vadd.f32 %v872_v43, %v629_v36  ;;  %4345 = vrot.lane.b32.xlu1 %v4344_v42, %s4809_s25  ;;  %v5691_v49 = vadd.f32 %v1148_v61, %v907_v31  ;;  %7245 = vst [vmem:[#allocation100_spill] sm:$0xff] %v5716_v33  ;;  %v632_v43 = vmul.f32 %v5707_v25, %v5350_v6 }
 0x167   :  { %1276 = vrot.lane.b32.xlu0 %v5639_v29, %s4807_s24 }
 0x168   :  { %v1120_v26 = vpop.permute.xlu1 %1119  ;;  %v844_v47 = vpop.permute.xlu0 %843 }
 0x169   :  { %v1149_v32 = vsel %vm752_vm0, %v1118_v28, %v1120_v26  ;;  %v873_v56 = vsel %vm865_vm1, %v842_v7, %v844_v47 }
 0x16a   :  { %v5697_v59 = vadd.f32 %v1149_v32, %v908_v19  ;;  %1278 = vrot.lane.b32.xlu1 %v5666_v37, %s4807_s24  ;;  %v909_v60 = vadd.f32 %v873_v56, %v630_v41  ;;  %v633_v56 = vmul.f32 %v5716_v33, %v5374_v10  ;;  %v5743_v10 = vrot.slane %v5672_v30, %v4924_v20 }
 0x16c   :  { %v1122_v0 = vpop.permute.xlu1 %1121  ;;  %v846_v36 = vpop.permute.xlu0 %845  ;;  %v4349_v31 = vpack.i.bf16 %v5697_v59, %v5691_v49  ;;  %7247 = vst [vmem:[#allocation102_spill] sm:$0xff] %v5743_v10 }
 0x16d   :  { %v1150_v28 = vsel %vm752_vm0, %v1120_v26, %v1122_v0  ;;  %v874_v7 = vsel %vm865_vm1, %v844_v47, %v846_v36 }
 0x16e   :  { %v910_v42 = vadd.f32 %v874_v7, %v631_v51  ;;  %4350 = vrot.lane.b32.xlu0 %v4349_v31, %s4809_s25  ;;  %1282 = vrot.lane.b32.xlu1 %v5691_v49, %s4807_s24  ;;  %v5718_v61 = vadd.f32 %v1150_v28, %v909_v60  ;;  %v5734_v28 = vrot.slane %v5672_v30, %v4918_v17 }
 0x170   :  { %v848_v19 = vpop.permute.xlu1 %847  ;;  %v1124_v41 = vpop.permute.xlu0 %1123  ;;  %7246 = vst [vmem:[#allocation101_spill] sm:$0xff] %v5734_v28 }
 0x171   :  { %v875_v26 = vsel %vm865_vm1, %v846_v36, %v848_v19  ;;  %v1151_v47 = vsel %vm752_vm0, %v1122_v0, %v1124_v41 }
 0x172   :  { %v5724_v32 = vadd.f32 %v1151_v47, %v910_v42  ;;  %1280 = vrot.lane.b32.xlu0 %v5668_v40, %s4807_s24  ;;  %v911_v51 = vadd.f32 %v875_v26, %v632_v43  ;;  %v634_v26 = vmul.f32 %v5734_v28, %v5430_v5  ;;  %v5761_v5 = vrot.slane %v5672_v30, %v4932_v24 }
 0x174   :  { %v1126_v60 = vpop.permute.xlu1 %1125  ;;  %v850_v31 = vpop.permute.xlu0 %849  ;;  %v4354_v6 = vpack.i.bf16 %v5724_v32, %v5718_v61  ;;  %7248 = vst [vmem:[#allocation103_spill] sm:$0xff] %v5761_v5 }
 0x175   :  { %v1152_v0 = vsel %vm752_vm0, %v1124_v41, %v1126_v60  ;;  %v876_v36 = vsel %vm865_vm1, %v848_v19, %v850_v31 }
 0x176   :  { %v912_v7 = vadd.f32 %v876_v36, %v633_v56  ;;  %4355 = vrot.lane.b32.xlu1 %v4354_v6, %s4809_s25  ;;  %1284 = vrot.lane.b32.xlu0 %v5697_v59, %s4807_s24  ;;  %v5745_v42 = vadd.f32 %v1152_v0, %v911_v51  ;;  %v635_v6 = vmul.f32 %v5743_v10, %v5455_v13 }
 0x177   :  { %v5770_v13 = vrot.slane %v5672_v30, %v4930_v23 }
 0x178   :  { %v1128_v43 = vpop.permute.xlu1 %1127  ;;  %v852_v47 = vpop.permute.xlu0 %851 }
 0x179   :  { %v1153_v41 = vsel %vm752_vm0, %v1126_v60, %v1128_v43  ;;  %v877_v19 = vsel %vm865_vm1, %v850_v31, %v852_v47  ;;  %7249 = vst [vmem:[#allocation104_spill] sm:$0xff] %v5770_v13 }
 0x17a   :  { %v5751_v56 = vadd.f32 %v1153_v41, %v912_v7  ;;  %1286 = vrot.lane.b32.xlu1 %v5718_v61, %s4807_s24  ;;  %v913_v36 = vadd.f32 %v877_v19, %v634_v26  ;;  %v636_v41 = vmul.f32 %v5761_v5, %v5481_v1 }
 0x17c   :  { %v1130_v51 = vpop.permute.xlu1 %1129  ;;  %v854_v0 = vpop.permute.xlu0 %853  ;;  %v4359_v33 = vpack.i.bf16 %v5751_v56, %v5745_v42 }
 0x17d   :  { %v1154_v60 = vsel %vm752_vm0, %v1128_v43, %v1130_v51  ;;  %v878_v31 = vsel %vm865_vm1, %v852_v47, %v854_v0 }
 0x17e   :  { %v914_v7 = vadd.f32 %v878_v31, %v635_v6  ;;  %4360 = vrot.lane.b32.xlu0 %v4359_v33, %s4809_s25  ;;  %1290 = vrot.lane.b32.xlu1 %v5745_v42, %s4807_s24  ;;  %v5772_v26 = vadd.f32 %v1154_v60, %v913_v36  ;;  %v637_v33 = vmul.f32 %v5770_v13, %v5492_v46 }
 0x180   :  { %v856_v19 = vpop.permute.xlu1 %855  ;;  %v1132_v10 = vpop.permute.xlu0 %1131 }
 0x181   :  { %v879_v43 = vsel %vm865_vm1, %v854_v0, %v856_v19  ;;  %v1155_v47 = vsel %vm752_vm0, %v1130_v51, %v1132_v10 }
 0x182   :  { %v5778_v6 = vadd.f32 %v1155_v47, %v914_v7  ;;  %1288 = vrot.lane.b32.xlu0 %v5724_v32, %s4807_s24  ;;  %v915_v31 = vadd.f32 %v879_v43, %v636_v41 }
 0x184   :  { %v1134_v36 = vpop.permute.xlu1 %1133  ;;  %v858_v60 = vpop.permute.xlu0 %857  ;;  %v4364_v1 = vpack.i.bf16 %v5778_v6, %v5772_v26 }
 0x185   :  { %v1156_v5 = vsel %vm752_vm0, %v1132_v10, %v1134_v36  ;;  %v880_v0 = vsel %vm865_vm1, %v856_v19, %v858_v60  ;;  %v5811_v19 = vrot.slane %v5672_v30, %v4938_v27 }
 0x186   :  { %v916_v28 = vadd.f32 %v880_v0, %v637_v33  ;;  %4365 = vrot.lane.b32.xlu1 %v4364_v1, %s4809_s25  ;;  %1292 = vrot.lane.b32.xlu0 %v5751_v56, %s4807_s24  ;;  %v5791_v51 = vadd.f32 %v1156_v5, %v915_v31  ;;  %v158_v5 = vld [vmem:[#allocation10 + $0x85] ss:$8 sm:$0x3] }
 0x187   :  { %7250 = vst [vmem:[#allocation105_spill] sm:$0xff] %v5811_v19  ;;  %v5814_v47 = vrot.slane %v158_v5, %v4902_v2  ;;  %v638_v31 = vmul.f32 %v5811_v19, %v5533_v58 }
 0x188   :  { %v1136_v7 = vpop.permute.xlu1 %1135  ;;  %v860_v43 = vpop.permute.xlu0 %859 }
 0x189   :  { %v1157_v46 = vsel %vm752_vm0, %v1134_v36, %v1136_v7  ;;  %7251 = vst [vmem:[#allocation106_spill] sm:$0xff] %v5814_v47  ;;  %v639_v36 = vmul.f32 %v5814_v47, %v5542_v11  ;;  %v881_v1 = vsel %vm865_vm1, %v858_v60, %v860_v43 }
 0x18a   :  { %v5794_v41 = vadd.f32 %v1157_v46, %v916_v28  ;;  %1294 = vrot.lane.b32.xlu1 %v5772_v26, %s4807_s24  ;;  %v917_v46 = vadd.f32 %v881_v1, %v638_v31 }
 0x18c   :  { %v4369_v10 = vpack.i.bf16 %v5794_v41, %v5791_v51  ;;  %v1138_v28 = vpop.permute.xlu1 %1137  ;;  %v1140_v0 = vpop.permute.xlu0 %1139 }
 0x18d   :  { %v1158_v30 = vsel %vm752_vm0, %v1136_v7, %v1138_v28  ;;  %v1159_v13 = vsel %vm752_vm0, %v1138_v28, %v1140_v0  ;;  %v5839_v28 = vrot.slane %v158_v5, %v4904_v3 }
 0x18e   :  { %4370 = vrot.lane.b32.xlu0 %v4369_v10, %s4809_s25  ;;  %1298 = vrot.lane.b32.xlu1 %v5791_v51, %s4807_s24  ;;  %v5826_v18 = vadd.f32 %v1158_v30, %v917_v46 }
 0x18f   :  { %7252 = vst [vmem:[#allocation107_spill] sm:$0xff] %v5839_v28 }
 0x190   :  { %v862_v33 = vpop.permute.xlu1 %861  ;;  %v5832_v60 = vpop.permute.xlu0 %863 }
 0x192   :  { %1296 = vrot.lane.b32.xlu0 %v5778_v6, %s4807_s24  ;;  %1300 = vrot.lane.b32.xlu1 %v5794_v41, %s4807_s24 }
 0x196   :  { %4375 = vrot.lane.b32.xlu0 %v5615_v62, %s4810_s26  ;;  %v882_v62 = vsel %vm865_vm1, %v860_v43, %v862_v33 }
 0x197   :  { %v918_v10 = vadd.f32 %v882_v62, %v639_v36 }
 0x199   :  { %v5828_v58 = vadd.f32 %v1159_v13, %v918_v10  ;;  %v640_v10 = vmul.f32 %v5839_v28, %v5571_v44 }
 0x19b   :  { %v4384_v43 = vpack.i.bf16 %v5828_v58, %v5826_v18 }
 0x1c8   :  { %v4331_v25 = vpop.permute.xlu1 %4330 }
 0x1c9   :  { %v5824_v54 = vunpack.i.l.bf16 %v4331_v25  ;;  %v4333_v13 = vunpack.i.h.bf16 %v4331_v25  ;;  %v883_v25 = vsel %vm865_vm1, %v862_v33, %v5832_v60 }
 0x1ca   :  { %v919_v44 = vadd.f32 %v883_v25, %v640_v10 }
 0x1cb   :  { %v4379_v11 = vpack.i.bf16 %v5637_v52, %v5824_v54 }
 0x1cc   :  { %v4341_v7 = vpop.permute.xlu1 %4340 }
 0x1cd   :  { %4380 = vrot.lane.b32.xlu0 %v4379_v11, %s4810_s26  ;;  %v4343_v1 = vunpack.i.h.bf16 %v4341_v7  ;;  %v5847_v30 = vunpack.i.l.bf16 %v4341_v7 }
 0x1cf   :  { %v4389_v5 = vpack.i.bf16 %v4343_v1, %v4333_v13  ;;  %v1308_v7 = vsel %vm865_vm1, %v5847_v30, %v4343_v1 }
 0x1d0   :  { %v1142_v11 = vpop.permute.xlu1 %1141 }
 0x1d1   :  { %v4336_v31 = vpop.permute.xlu0 %4335  ;;  %4385 = vrot.lane.b32.xlu0 %v4384_v43, %s4809_s25  ;;  %v1160_v19 = vsel %vm752_vm0, %v1140_v0, %v1142_v11 }
 0x1d2   :  { %v4337_v36 = vunpack.i.l.bf16 %v4336_v31  ;;  %v4338_v14 = vunpack.i.h.bf16 %v4336_v31  ;;  %v5860_v33 = vadd.f32 %v1160_v19, %v919_v44 }
 0x1d4   :  { %v4394_v52 = vpack.i.bf16 %v5666_v37, %v4337_v36  ;;  %v1253_v62 = vsel %vm1251_vm2, %v4333_v13, %v4337_v36  ;;  %v1252_v37 = vsel %vm1251_vm2, %v5824_v54, %v4333_v13  ;;  %v1254_v28 = vsel %vm1251_vm2, %v4337_v36, %v4338_v14 }
 0x1d5   :  { %v1275_v46 = vpop.permute.xlu0 %1274  ;;  %1302 = vrot.lane.b32.xlu0 %v5826_v18, %s4807_s24  ;;  %v4399_v47 = vpack.i.bf16 %v1253_v62, %v1252_v37  ;;  %v4409_v62 = vpack.i.bf16 %v1254_v28, %v5847_v30 }
 0x1d6   :  { %4395 = vrot.lane.b32.xlu1 %v4394_v52, %s4810_s26  ;;  %v1309_v43 = vsel %vm865_vm1, %v4343_v1, %v1275_v46 }
 0x1d7   :  { %v4404_v52 = vpack.i.bf16 %v1309_v43, %v1308_v7 }
 0x1d8   :  { %v4346_v13 = vpop.permute.xlu1 %4345 }
 0x1d9   :  { %4390 = vrot.lane.b32.xlu0 %v4389_v5, %s4810_s26  ;;  %v4348_v0 = vunpack.i.h.bf16 %v4346_v13  ;;  %v4347_v31 = vunpack.i.l.bf16 %v4346_v13  ;;  %v1277_v1 = vpop.permute.xlu0 %1276 }
 0x1da   :  { %4400 = vrot.lane.b32.xlu1 %v4399_v47, %s4810_s26  ;;  %v1310_v10 = vsel %vm865_vm1, %v1275_v46, %v1277_v1 }
 0x1db   :  { %v1256_v47 = vsel %vm1251_vm2, %v4347_v31, %v4348_v0  ;;  %v1255_v36 = vsel %vm1251_vm2, %v4338_v14, %v4347_v31 }
 0x1dc   :  { %v1279_v19 = vpop.permute.xlu1 %1278  ;;  %v4419_v25 = vpack.i.bf16 %v1256_v47, %v5668_v40  ;;  %v4414_v37 = vpack.i.bf16 %v1255_v36, %v5639_v29 }
 0x1dd   :  { %4405 = vrot.lane.b32.xlu0 %v4404_v52, %s4810_s26  ;;  %v1311_v14 = vsel %vm865_vm1, %v1277_v1, %v1279_v19 }
 0x1de   :  { %1306 = vrot.lane.b32.xlu1 %v5860_v33, %s4807_s24 }
 0x1e0   :  { %v4351_v11 = vpop.permute.xlu0 %4350  ;;  %v1283_v28 = vpop.permute.xlu1 %1282 }
 0x1e1   :  { %1304 = vrot.lane.b32.xlu0 %v5828_v58, %s4807_s24  ;;  %v4352_v5 = vunpack.i.l.bf16 %v4351_v11 }
 0x1e2   :  { %4410 = vrot.lane.b32.xlu1 %v4409_v62, %s4810_s26  ;;  %v4353_v62 = vunpack.i.h.bf16 %v4351_v11 }
 0x1e3   :  { %v1257_v44 = vsel %vm1251_vm2, %v4348_v0, %v4352_v5 }
 0x1e4   :  { %v1281_v43 = vpop.permute.xlu0 %1280  ;;  %v4424_v31 = vpack.i.bf16 %v5691_v49, %v1257_v44  ;;  %v1258_v36 = vsel %vm1251_vm2, %v4352_v5, %v4353_v62 }
 0x1e5   :  { %1326 = vrot.lane.b32.xlu0 %v5860_v33, %s4809_s25  ;;  %v1313_v29 = vsel %vm865_vm1, %v1281_v43, %v1283_v28 }
 0x1e6   :  { %1411 = vrot.lane.b32.xlu1 %v1310_v10, %s4810_s26 }
 0x1e8   :  { %v4356_v7 = vpop.permute.xlu1 %4355  ;;  %v1285_v40 = vpop.permute.xlu0 %1284 }
 0x1e9   :  { %4420 = vrot.lane.b32.xlu0 %v4419_v25, %s4810_s26  ;;  %v4358_v52 = vunpack.i.h.bf16 %v4356_v7  ;;  %v4357_v13 = vunpack.i.l.bf16 %v4356_v7  ;;  %v1314_v0 = vsel %vm865_vm1, %v1283_v28, %v1285_v40  ;;  %v4429_v25 = vpack.i.bf16 %v5697_v59, %v1258_v36 }
 0x1ea   :  { %4415 = vrot.lane.b32.xlu1 %v4414_v37, %s4810_s26 }
 0x1eb   :  { %v1260_v1 = vsel %vm1251_vm2, %v4357_v13, %v4358_v52  ;;  %v1259_v37 = vsel %vm1251_vm2, %v4353_v62, %v4357_v13 }
 0x1ec   :  { %v1287_v47 = vpop.permute.xlu1 %1286  ;;  %v4439_v11 = vpack.i.bf16 %v1260_v1, %v5724_v32 }
 0x1ed   :  { %1413 = vrot.lane.b32.xlu0 %v1311_v14, %s4810_s26  ;;  %v1315_v5 = vsel %vm865_vm1, %v1285_v40, %v1287_v47 }
 0x1ee   :  { %1459 = vrot.lane.b32.xlu1 %v1275_v46, %s4810_s26  ;;  %v1312_v46 = vsel %vm865_vm1, %v1279_v19, %v1281_v43  ;;  %v4434_v19 = vpack.i.bf16 %v5718_v61, %v1259_v37 }
 0x1f0   :  { %v4361_v10 = vpop.permute.xlu0 %4360  ;;  %v1291_v49 = vpop.permute.xlu1 %1290 }
 0x1f1   :  { %1417 = vrot.lane.b32.xlu0 %v1313_v29, %s4810_s26  ;;  %v4362_v14 = vunpack.i.l.bf16 %v4361_v10 }
 0x1f2   :  { %4425 = vrot.lane.b32.xlu1 %v4424_v31, %s4810_s26  ;;  %v4363_v31 = vunpack.i.h.bf16 %v4361_v10 }
 0x1f3   :  { %v1261_v43 = vsel %vm1251_vm2, %v4358_v52, %v4362_v14 }
 0x1f4   :  { %v1289_v28 = vpop.permute.xlu0 %1288  ;;  %v4444_v29 = vpack.i.bf16 %v5745_v42, %v1261_v43  ;;  %v1262_v62 = vsel %vm1251_vm2, %v4362_v14, %v4363_v31 }
 0x1f5   :  { %1419 = vrot.lane.b32.xlu0 %v1314_v0, %s4810_s26  ;;  %v1317_v59 = vsel %vm865_vm1, %v1289_v28, %v1291_v49  ;;  %v1316_v52 = vsel %vm865_vm1, %v1287_v47, %v1289_v28  ;;  %v4449_v36 = vpack.i.bf16 %v5751_v56, %v1262_v62 }
 0x1f6   :  { %1415 = vrot.lane.b32.xlu1 %v1312_v46, %s4810_s26 }
 0x1f8   :  { %v4366_v44 = vpop.permute.xlu1 %4365  ;;  %v1293_v13 = vpop.permute.xlu0 %1292 }
 0x1f9   :  { %4440 = vrot.lane.b32.xlu0 %v4439_v11, %s4810_s26  ;;  %v4368_v32 = vunpack.i.h.bf16 %v4366_v44  ;;  %v4367_v7 = vunpack.i.l.bf16 %v4366_v44  ;;  %v1318_v61 = vsel %vm865_vm1, %v1291_v49, %v1293_v13 }
 0x1fa   :  { %4430 = vrot.lane.b32.xlu1 %v4429_v25, %s4810_s26 }
 0x1fb   :  { %v1264_v40 = vsel %vm1251_vm2, %v4367_v7, %v4368_v32  ;;  %v1263_v46 = vsel %vm1251_vm2, %v4363_v31, %v4367_v7 }
 0x1fc   :  { %v4459_v42 = vpack.i.bf16 %v1264_v40, %v5778_v6  ;;  %v1295_v1 = vpop.permute.xlu1 %1294  ;;  %v4454_v11 = vpack.i.bf16 %v5772_v26, %v1263_v46 }
 0x1fd   :  { %1421 = vrot.lane.b32.xlu0 %v1315_v5, %s4810_s26  ;;  %v1319_v47 = vsel %vm865_vm1, %v1293_v13, %v1295_v1 }
 0x1fe   :  { %4435 = vrot.lane.b32.xlu1 %v4434_v19, %s4810_s26 }
 0x200   :  { %v4371_v0 = vpop.permute.xlu0 %4370  ;;  %v1299_v49 = vpop.permute.xlu1 %1298 }
 0x201   :  { %1425 = vrot.lane.b32.xlu0 %v1317_v59, %s4810_s26  ;;  %v4372_v10 = vunpack.i.l.bf16 %v4371_v0  ;;  %v4373_v28 = vunpack.i.h.bf16 %v4371_v0 }
 0x202   :  { %4445 = vrot.lane.b32.xlu1 %v4444_v29, %s4810_s26 }
 0x203   :  { %v1265_v25 = vsel %vm1251_vm2, %v4368_v32, %v4372_v10  ;;  %v1266_v19 = vsel %vm1251_vm2, %v4372_v10, %v4373_v28 }
 0x204   :  { %v1297_v37 = vpop.permute.xlu0 %1296  ;;  %v1301_v6 = vpop.permute.xlu1 %1300  ;;  %v4464_v14 = vpack.i.bf16 %v5791_v51, %v1265_v25  ;;  %v4469_v43 = vpack.i.bf16 %v5794_v41, %v1266_v19 }
 0x205   :  { %1427 = vrot.lane.b32.xlu0 %v1318_v61, %s4810_s26  ;;  %v1321_v56 = vsel %vm865_vm1, %v1297_v37, %v1299_v49  ;;  %v1322_v5 = vsel %vm865_vm1, %v1299_v49, %v1301_v6  ;;  %v1320_v26 = vsel %vm865_vm1, %v1295_v1, %v1297_v37 }
 0x206   :  { %1423 = vrot.lane.b32.xlu1 %v1316_v52, %s4810_s26 }
 0x208   :  { %v4376_v51 = vpop.permute.xlu0 %4375 }
 0x209   :  { %4460 = vrot.lane.b32.xlu0 %v4459_v42, %s4810_s26  ;;  %v4378_v41 = vunpack.i.h.bf16 %v4376_v51  ;;  %v5945_v62 = vunpack.i.l.bf16 %v4376_v51 }
 0x20a   :  { %4450 = vrot.lane.b32.xlu1 %v4449_v36, %s4810_s26 }
 0x20d   :  { %1429 = vrot.lane.b32.xlu0 %v1319_v47, %s4810_s26  ;;  %v1462_v47 = vsel %vm1461_vm3, %v5945_v62, %v4378_v41 }
 0x20e   :  { %4455 = vrot.lane.b32.xlu1 %v4454_v11, %s4810_s26 }
 0x211   :  { %1433 = vrot.lane.b32.xlu0 %v1321_v56, %s4810_s26 }
 0x212   :  { %4465 = vrot.lane.b32.xlu1 %v4464_v14, %s4810_s26 }
 0x215   :  { %1435 = vrot.lane.b32.xlu0 %v1322_v5, %s4810_s26 }
 0x216   :  { %1431 = vrot.lane.b32.xlu1 %v1320_v26, %s4810_s26 }
 0x21a   :  { %4470 = vrot.lane.b32.xlu1 %v4469_v43, %s4810_s26 }
 0x23f   :  { %v5935_v44 = vpop.permute.xlu0 %4380 }
 0x240   :  { %v5949_v36 = vunpack.i.l.bf16 %v5935_v44 }
 0x243   :  { %v4386_v59 = vpop.permute.xlu0 %4385 }
 0x244   :  { %v4388_v32 = vunpack.i.h.bf16 %v4386_v59  ;;  %v4387_v7 = vunpack.i.l.bf16 %v4386_v59 }
 0x246   :  { %v1267_v13 = vsel %vm1251_vm2, %v4373_v28, %v4387_v7  ;;  %v1268_v29 = vsel %vm1251_vm2, %v4387_v7, %v4388_v32 }
 0x247   :  { %v1303_v31 = vpop.permute.xlu0 %1302  ;;  %v4479_v61 = vpack.i.bf16 %v1268_v29, %v5828_v58  ;;  %v4474_v52 = vpack.i.bf16 %v5826_v18, %v1267_v13  ;;  %v4383_v18 = vunpack.i.h.bf16 %v5935_v44 }
 0x248   :  { %v5941_v40 = vpop.permute.xlu1 %4395  ;;  %v1323_v1 = vsel %vm865_vm1, %v1301_v6, %v1303_v31 }
 0x249   :  { %4480 = vrot.lane.b32.xlu0 %v4479_v61, %s4810_s26  ;;  %4475 = vrot.lane.b32.xlu1 %v4474_v52, %s4810_s26  ;;  %v1463_v28 = vsel %vm1461_vm3, %v4378_v41, %v4383_v18 }
 0x24b   :  { %v4391_v0 = vpop.permute.xlu0 %4390 }
 0x24c   :  { %v4401_v42 = vpop.permute.xlu1 %4400  ;;  %v4393_v13 = vunpack.i.h.bf16 %v4391_v0  ;;  %v4392_v29 = vunpack.i.l.bf16 %v4391_v0 }
 0x24d   :  { %v4403_v58 = vunpack.i.h.bf16 %v4401_v42  ;;  %v4402_v46 = vunpack.i.l.bf16 %v4401_v42  ;;  %1437 = vrot.lane.b32.xlu0 %v1323_v1, %s4810_s26  ;;  %1403 = vrot.lane.b32.xlu1 %v4388_v32, %s4810_s26 }
 0x24f   :  { %v4406_v10 = vpop.permute.xlu0 %4405  ;;  %v1480_v49 = vsel %vm1461_vm3, %v4402_v46, %v4403_v58  ;;  %v1479_v11 = vsel %vm1461_vm3, %v5949_v36, %v4402_v46 }
 0x250   :  { %v4408_v25 = vunpack.i.h.bf16 %v4406_v10  ;;  %v4407_v37 = vunpack.i.l.bf16 %v4406_v10  ;;  %v1307_v56 = vpop.permute.xlu1 %1306  ;;  %v4030_v6 = vpack.c.bf16 %v1480_v49, %v1462_v47  ;;  %v4032_v14 = vpack.c.bf16 %v1479_v11, %v5945_v62 }
 0x252   :  { %4031 = vmatprep.subr.bf16.mxu0 %v4030_v6  ;;  %v1498_v5 = vsel %vm1461_vm3, %v4407_v37, %v4408_v25  ;;  %v1519_v49 = vsel %vm1461_vm3, %v4393_v13, %v4408_v25 }
 0x253   :  { %v1305_v26 = vpop.permute.xlu0 %1304  ;;  %4033 = vmatpush1.bf16.msra.mxu0 %v4032_v14  ;;  %v4034_v19 = vpack.c.bf16 %v1463_v28, %v1498_v5  ;;  %v4398_v14 = vunpack.i.h.bf16 %v5941_v40 }
 0x254   :  { %v4411_v43 = vpop.permute.xlu1 %4410  ;;  %v1325_v51 = vsel %vm865_vm1, %v1305_v26, %v1307_v56  ;;  %v1324_v44 = vsel %vm865_vm1, %v1303_v31, %v1305_v26 }
 0x255   :  { %v4413_v59 = vunpack.i.h.bf16 %v4411_v43  ;;  %v5964_v7 = vunpack.i.l.bf16 %v4411_v43  ;;  %1441 = vrot.lane.b32.xlu0 %v1325_v51, %s4810_s26  ;;  %1439 = vrot.lane.b32.xlu1 %v1324_v44, %s4810_s26 }
 0x256   :  { %4035 = vmatprep.subr.bf16.mxu0 %v4034_v19 }
 0x257   :  { %v1327_v61 = vpop.permute.xlu0 %1326  ;;  %v1497_v52 = vsel %vm1461_vm3, %v5964_v7, %v4407_v37  ;;  %v1481_v46 = vsel %vm1461_vm3, %v4403_v58, %v4413_v59  ;;  %v1516_v37 = vsel %vm1461_vm3, %v4392_v29, %v4403_v58 }
 0x258   :  { %v1328_v41 = vsel %vm1251_vm2, %v4388_v32, %v1327_v61  ;;  %v1412_v42 = vpop.permute.xlu1 %1411  ;;  %v4036_v1 = vpack.c.bf16 %v1462_v47, %v1497_v52  ;;  %v4397_v32 = vunpack.i.l.bf16 %v5941_v40  ;;  %v4040_v6 = vpack.c.bf16 %v1519_v49, %v1516_v37  ;;  %v5991_v37 = vld [vmem:[#allocation5] sm:$0xff] }
 0x259   :  { %v4484_v31 = vpack.i.bf16 %v1328_v41, %v5860_v33  ;;  %1449 = vrot.lane.b32.xlu0 %v1327_v61, %s4810_s26  ;;  %v1499_v10 = vsel %vm1461_vm3, %v4408_v25, %v1412_v42  ;;  %v1330_v33 = vsel %vm1251_vm2, %v1327_v61, %v5824_v54  ;;  %v1329_v25 = vsel %vm865_vm1, %v1307_v56, %v5847_v30 }
 0x25a   :  { %4037 = vmatpush1.bf16.msra.mxu0 %v4036_v1  ;;  %v4038_v0 = vpack.c.bf16 %v1499_v10, %v1481_v46  ;;  %v1522_v58 = vsel %vm1461_vm3, %v4397_v32, %v4413_v59  ;;  %v4048_v52 = vpack.c.bf16 %v1481_v46, %v1463_v28 }
 0x25b   :  { %v4421_v11 = vpop.permute.xlu0 %4420  ;;  %4485 = vrot.lane.b32.xlu1 %v4484_v31, %s4810_s26  ;;  %v4044_v61 = vpack.c.bf16 %v1522_v58, %v1463_v28 }
 0x25c   :  { %v4416_v47 = vpop.permute.xlu1 %4415  ;;  %4039 = vmatprep.subr.bf16.mxu0 %v4038_v0  ;;  %v4423_v1 = vunpack.i.h.bf16 %v4421_v11  ;;  %v4422_v56 = vunpack.i.l.bf16 %v4421_v11 }
 0x25d   :  { %v4418_v5 = vunpack.i.h.bf16 %v4416_v47  ;;  %v4417_v26 = vunpack.i.l.bf16 %v4416_v47  ;;  %1457 = vrot.lane.b32.xlu0 %v1330_v33, %s4810_s26 }
 0x25e   :  { %4041 = vmatpush1.bf16.msra.mxu0 %v4040_v6  ;;  %v1466_v11 = vsel %vm1461_vm3, %v4398_v14, %v4422_v56 }
 0x25f   :  { %v1414_v19 = vpop.permute.xlu0 %1413  ;;  %1453 = vrot.lane.b32.xlu1 %v1329_v25, %s4810_s26  ;;  %v1464_v43 = vsel %vm1461_vm3, %v4383_v18, %v4417_v26  ;;  %v1482_v51 = vsel %vm1461_vm3, %v4413_v59, %v4418_v5  ;;  %v1465_v44 = vsel %vm1461_vm3, %v4417_v26, %v4398_v14  ;;  %v1483_v32 = vsel %vm1461_vm3, %v4418_v5, %v4423_v1 }
 0x260   :  { %v1460_v40 = vpop.permute.xlu1 %1459  ;;  %v4042_v13 = vpack.c.bf16 %v1482_v51, %v1464_v43  ;;  %v1500_v29 = vsel %vm1461_vm3, %v1412_v42, %v1414_v19  ;;  %v4052_v0 = vpack.c.bf16 %v1464_v43, %v1499_v10  ;;  %v4060_v10 = vpack.c.bf16 %v1483_v32, %v1465_v44 }
 0x261   :  { %v4050_v41 = vpack.c.bf16 %v1465_v44, %v1500_v29  ;;  %v1525_v28 = vsel %vm1461_vm3, %v1460_v40, %v1412_v42  ;;  %v4056_v43 = vpack.c.bf16 %v1500_v29, %v1482_v51 }
 0x262   :  { %4043 = vmatprep.subr.bf16.mxu0 %v4042_v13  ;;  %4047 = vmatprep.subr.bf16.mxu1 %v4042_v13 }
 0x263   :  { %v1418_v31 = vpop.permute.xlu0 %1417  ;;  %4045 = vmatpush1.bf16.msra.mxu0 %v4044_v61  ;;  %4049 = vmatpush1.bf16.msra.mxu1 %v4048_v52 }
 0x264   :  { %v4426_v49 = vpop.permute.xlu1 %4425  ;;  %1613 = vmatprep.subr.mxu0 %v1500_v29  ;;  %4051 = vmatprep.subr.bf16.mxu1 %v4050_v41 }
 0x265   :  { %v4428_v18 = vunpack.i.h.bf16 %v4426_v49  ;;  %v4427_v59 = vunpack.i.l.bf16 %v4426_v49 }
 0x267   :  { %v1420_v46 = vpop.permute.xlu0 %1419  ;;  %1614 = vmatpush1.msra.mxu0 %v1525_v28  ;;  %4053 = vmatpush1.bf16.msra.mxu1 %v4052_v0  ;;  %v1484_v47 = vsel %vm1461_vm3, %v4423_v1, %v4427_v59  ;;  %v1467_v5 = vsel %vm1461_vm3, %v4422_v56, %v4428_v18 }
 0x268   :  { %v1416_v33 = vpop.permute.xlu1 %1415  ;;  %v4058_v6 = vpack.c.bf16 %v1484_v47, %v1466_v11  ;;  %4012 = vmatmul.mubr.msk.f32.vlgmr.msra.gmra.mrb[0].mxu0 %vm1593_vm4, %v5991_v37 }
 0x269   :  { %v1501_v26 = vsel %vm1461_vm3, %v1414_v19, %v1416_v33  ;;  %v1502_v25 = vsel %vm1461_vm3, %v1416_v33, %v1418_v31  ;;  %1803 = vmatprep.mubr.f32.mxu0 %v7238_v35  ;;  %v1503_v19 = vsel %vm1461_vm3, %v1418_v31, %v1420_v46 }
 0x26a   :  { %4063 = vmatprep.subr.bf16.mxu0 %v4058_v6  ;;  %v4054_v42 = vpack.c.bf16 %v1501_v26, %v1483_v32  ;;  %v4066_v58 = vpack.c.bf16 %v1467_v5, %v1502_v25  ;;  %v4068_v13 = vpack.c.bf16 %v1466_v11, %v1501_v26  ;;  %v4072_v49 = vpack.c.bf16 %v1502_v25, %v1484_v47 }
 0x26b   :  { %v6003_v14 = vpop.permute.xlu0 %4440  ;;  %4065 = vmatpush1.bf16.msra.mxu0 %v4060_v10 }
 0x26c   :  { %v4431_v40 = vpop.permute.xlu1 %4430  ;;  %4055 = vmatprep.subr.bf16.mxu1 %v4054_v42  ;;  %4067 = vmatprep.subr.bf16.mxu0 %v4066_v58 }
 0x26d   :  { %v4432_v44 = vunpack.i.l.bf16 %v4431_v40  ;;  %4057 = vmatpush1.bf16.msra.mxu1 %v4056_v43  ;;  %v4433_v61 = vunpack.i.h.bf16 %v4431_v40 }
 0x26e   :  { %4059 = vmatprep.subr.bf16.mxu1 %v4058_v6  ;;  %v4443_v6 = vunpack.i.h.bf16 %v6003_v14 }
 0x26f   :  { %v1422_v52 = vpop.permute.xlu0 %1421  ;;  %4069 = vmatpush1.bf16.msra.mxu0 %v4068_v13  ;;  %v1485_v41 = vsel %vm1461_vm3, %v4427_v59, %v4432_v44  ;;  %v1468_v29 = vsel %vm1461_vm3, %v4428_v18, %v4433_v61 }
 0x270   :  { %v4436_v1 = vpop.permute.xlu1 %4435  ;;  %v4070_v56 = vpack.c.bf16 %v1503_v19, %v1485_v41  ;;  %v1504_v33 = vsel %vm1461_vm3, %v1420_v46, %v1422_v52  ;;  %v4076_v47 = vpack.c.bf16 %v1485_v41, %v1467_v5 }
 0x271   :  { %v4438_v0 = vunpack.i.h.bf16 %v4436_v1  ;;  %v4437_v32 = vunpack.i.l.bf16 %v4436_v1  ;;  %4061 = vmatpush1.bf16.msra.mxu1 %v4060_v10  ;;  %v4442_v10 = vunpack.i.l.bf16 %v6003_v14  ;;  %v4084_v14 = vpack.c.bf16 %v1468_v29, %v1503_v19 }
 0x272   :  { %1684 = vmatprep.subr.mxu1 %v1502_v25  ;;  %4071 = vmatprep.subr.bf16.mxu0 %v4070_v56 }
 0x273   :  { %v1426_v51 = vpop.permute.xlu0 %1425  ;;  %4073 = vmatpush1.bf16.msra.mxu0 %v4072_v49  ;;  %v1486_v28 = vsel %vm1461_vm3, %v4432_v44, %v4437_v32  ;;  %v1469_v59 = vsel %vm1461_vm3, %v4433_v61, %v4438_v0  ;;  %v1470_v40 = vsel %vm1461_vm3, %v4438_v0, %v4442_v10 }
 0x274   :  { %v4446_v31 = vpop.permute.xlu1 %4445  ;;  %v4074_v11 = vpack.c.bf16 %v1486_v28, %v1468_v29  ;;  %v4082_v18 = vpack.c.bf16 %v1469_v59, %v1504_v33 }
 0x275   :  { %v4447_v42 = vunpack.i.l.bf16 %v4446_v31  ;;  %1685 = vmatpush1.msra.mxu1 %v1501_v26  ;;  %v4448_v58 = vunpack.i.h.bf16 %v4446_v31  ;;  %v1487_v26 = vsel %vm1461_vm3, %v4437_v32, %v4443_v6  ;;  %v4088_v32 = vpack.c.bf16 %v1504_v33, %v1486_v28 }
 0x276   :  { %4075 = vmatprep.subr.bf16.mxu0 %v4074_v11  ;;  %4079 = vmatprep.subr.bf16.mxu1 %v4074_v11  ;;  %v4092_v1 = vpack.c.bf16 %v1487_v26, %v1469_v59 }
 0x277   :  { %4013 = vmatmul.mubr.msk.f32.vlgmr.msra.gmra.mrb[0].mxu1 %vm1593_vm4, %v5991_v37  ;;  %4077 = vmatpush1.bf16.msra.mxu0 %v4076_v47  ;;  %v1488_v25 = vsel %vm1461_vm3, %v4443_v6, %v4447_v42  ;;  %v1428_v43 = vpop.permute.xlu0 %1427  ;;  %v1471_v56 = vsel %vm1461_vm3, %v4442_v10, %v4448_v58 }
 0x278   :  { %4081 = vmatpush1.bf16.msra.mxu1 %v4076_v47  ;;  %v1424_v46 = vpop.permute.xlu1 %1423  ;;  %1755 = vmatprep.subr.mxu0 %v1504_v33  ;;  %v4090_v61 = vpack.c.bf16 %v1488_v25, %v1470_v40 }
 0x279   :  { %v1505_v5 = vsel %vm1461_vm3, %v1422_v52, %v1424_v46  ;;  %4083 = vmatprep.subr.bf16.mxu1 %v4082_v18  ;;  %1874 = vmatprep.mubr.f32.mxu1 %v7238_v35  ;;  %v1506_v13 = vsel %vm1461_vm3, %v1424_v46, %v1426_v51  ;;  %v1507_v52 = vsel %vm1461_vm3, %v1426_v51, %v1428_v43 }
 0x27a   :  { %v4086_v44 = vpack.c.bf16 %v1505_v5, %v1487_v26  ;;  %v4098_v0 = vpack.c.bf16 %v1471_v56, %v1506_v13  ;;  %v4100_v11 = vpack.c.bf16 %v1470_v40, %v1505_v5  ;;  %v4104_v18 = vpack.c.bf16 %v1506_v13, %v1488_v25 }
 0x27b   :  { %1756 = vmatpush1.msra.mxu0 %v1503_v19  ;;  %v4461_v29 = vpop.permute.xlu0 %4460 }
 0x27c   :  { %4085 = vmatpush1.bf16.msra.mxu1 %v4084_v14  ;;  %v4451_v41 = vpop.permute.xlu1 %4450  ;;  %4095 = vmatprep.subr.bf16.mxu0 %v4090_v61 }
 0x27d   :  { %v4452_v49 = vunpack.i.l.bf16 %v4451_v41  ;;  %4087 = vmatprep.subr.bf16.mxu1 %v4086_v44  ;;  %4014 = vmatmul.mubr.msk.f32.vlgmr.msra.gmra.mrb[2].mxu0 %vm1593_vm4, %v5991_v37  ;;  %v4453_v19 = vunpack.i.h.bf16 %v4451_v41  ;;  %v4463_v44 = vunpack.i.h.bf16 %v4461_v29  ;;  %v4462_v41 = vunpack.i.l.bf16 %v4461_v29 }
 0x27e   :  { %4097 = vmatpush1.bf16.msra.mxu0 %v4092_v1  ;;  %1945 = vmatprep.mubr.f32.mxu0 %v7238_v35 }
 0x27f   :  { %4099 = vmatprep.subr.bf16.mxu0 %v4098_v0  ;;  %v1489_v31 = vsel %vm1461_vm3, %v4447_v42, %v4452_v49  ;;  %v1430_v10 = vpop.permute.xlu0 %1429  ;;  %v1472_v28 = vsel %vm1461_vm3, %v4448_v58, %v4453_v19 }
 0x280   :  { %4089 = vmatpush1.bf16.msra.mxu1 %v4088_v32  ;;  %v4456_v59 = vpop.permute.xlu1 %4455  ;;  %v4102_v6 = vpack.c.bf16 %v1507_v52, %v1489_v31  ;;  %v1508_v40 = vsel %vm1461_vm3, %v1428_v43, %v1430_v10 }
 0x281   :  { %v4457_v51 = vunpack.i.l.bf16 %v4456_v59  ;;  %4091 = vmatprep.subr.bf16.mxu1 %v4090_v61  ;;  %v4458_v47 = vunpack.i.h.bf16 %v4456_v59  ;;  %v4108_v61 = vpack.c.bf16 %v1489_v31, %v1471_v56  ;;  %v4116_v56 = vpack.c.bf16 %v1472_v28, %v1507_v52 }
 0x282   :  { %4101 = vmatpush1.bf16.msra.mxu0 %v4100_v11 }
 0x283   :  { %4103 = vmatprep.subr.bf16.mxu0 %v4102_v6  ;;  %v1490_v33 = vsel %vm1461_vm3, %v4452_v49, %v4457_v51  ;;  %v1473_v14 = vsel %vm1461_vm3, %v4453_v19, %v4458_v47  ;;  %v1491_v0 = vsel %vm1461_vm3, %v4457_v51, %v4463_v44  ;;  %v1474_v32 = vsel %vm1461_vm3, %v4458_v47, %v4462_v41 }
 0x284   :  { %4093 = vmatpush1.bf16.msra.mxu1 %v4092_v1  ;;  %v6029_v46 = vpop.permute.xlu1 %4465  ;;  %v4106_v26 = vpack.c.bf16 %v1490_v33, %v1472_v28  ;;  %v4114_v25 = vpack.c.bf16 %v1473_v14, %v1508_v40  ;;  %v1434_v1 = vpop.permute.xlu0 %1433  ;;  %v4124_v6 = vpack.c.bf16 %v1491_v0, %v1473_v14  ;;  %v4120_v28 = vpack.c.bf16 %v1508_v40, %v1490_v33 }
 0x285   :  { %1826 = vmatprep.subr.mxu1 %v1506_v13  ;;  %v4467_v42 = vunpack.i.l.bf16 %v6029_v46  ;;  %v4468_v49 = vunpack.i.h.bf16 %v6029_v46 }
 0x286   :  { %4105 = vmatpush1.bf16.msra.mxu0 %v4104_v18 }
 0x287   :  { %4107 = vmatprep.subr.bf16.mxu0 %v4106_v26  ;;  %v1492_v43 = vsel %vm1461_vm3, %v4463_v44, %v4467_v42 }
 0x288   :  { %1827 = vmatpush1.msra.mxu1 %v1505_v5  ;;  %v1432_v58 = vpop.permute.xlu1 %1431  ;;  %v4122_v11 = vpack.c.bf16 %v1492_v43, %v1474_v32  ;;  %v1436_v59 = vpop.permute.xlu0 %1435 }
 0x289   :  { %4111 = vmatprep.subr.bf16.mxu1 %v4106_v26  ;;  %4015 = vmatmul.mubr.msk.f32.vlgmr.msra.gmra.mrb[2].mxu1 %vm1593_vm4, %v5991_v37  ;;  %v1509_v13 = vsel %vm1461_vm3, %v1430_v10, %v1432_v58  ;;  %v1510_v29 = vsel %vm1461_vm3, %v1432_v58, %v1434_v1  ;;  %v1475_v10 = vsel %vm1461_vm3, %v4462_v41, %v4468_v49 }
 0x28a   :  { %4109 = vmatpush1.bf16.msra.mxu0 %v4108_v61  ;;  %4113 = vmatpush1.bf16.msra.mxu1 %v4108_v61  ;;  %v4118_v31 = vpack.c.bf16 %v1509_v13, %v1491_v0  ;;  %v4130_v51 = vpack.c.bf16 %v1475_v10, %v1510_v29  ;;  %v1511_v47 = vsel %vm1461_vm3, %v1434_v1, %v1436_v59 }
 0x28b   :  { %1897 = vmatprep.subr.mxu0 %v1508_v40  ;;  %4115 = vmatprep.subr.bf16.mxu1 %v4114_v25  ;;  %v4136_v33 = vpack.c.bf16 %v1510_v29, %v1492_v43 }
 0x28c   :  { %v4471_v5 = vpop.permute.xlu1 %4470  ;;  %2016 = vmatprep.mubr.f32.mxu1 %v7238_v35 }
 0x28d   :  { %v4472_v19 = vunpack.i.l.bf16 %v4471_v5  ;;  %v4473_v26 = vunpack.i.h.bf16 %v4471_v5 }
 0x28e   :  { %1898 = vmatpush1.msra.mxu0 %v1507_v52  ;;  %4117 = vmatpush1.bf16.msra.mxu1 %v4116_v56  ;;  %v4132_v52 = vpack.c.bf16 %v1474_v32, %v1509_v13 }
 0x28f   :  { %4119 = vmatprep.subr.bf16.mxu1 %v4118_v31  ;;  %4127 = vmatprep.subr.bf16.mxu0 %v4122_v11  ;;  %v1493_v18 = vsel %vm1461_vm3, %v4467_v42, %v4472_v19  ;;  %v1476_v61 = vsel %vm1461_vm3, %v4468_v49, %v4473_v26 }
 0x290   :  { %4016 = vmatmul.mubr.msk.f32.vlgmr.msra.gmra.mrb[4].mxu0 %vm1593_vm4, %v5991_v37  ;;  %v4134_v46 = vpack.c.bf16 %v1511_v47, %v1493_v18  ;;  %v4140_v56 = vpack.c.bf16 %v1493_v18, %v1475_v10  ;;  %v4148_v31 = vpack.c.bf16 %v1476_v61, %v1511_v47 }
 0x291   :  { %4129 = vmatpush1.bf16.msra.mxu0 %v4124_v6  ;;  %2087 = vmatprep.mubr.f32.mxu0 %v7238_v35 }
 0x292   :  { %4131 = vmatprep.subr.bf16.mxu0 %v4130_v51  ;;  %4121 = vmatpush1.bf16.msra.mxu1 %v4120_v28 }
 0x293   :  { %4123 = vmatprep.subr.bf16.mxu1 %v4122_v11 }
 0x295   :  { %4133 = vmatpush1.bf16.msra.mxu0 %v4132_v52 }
 0x296   :  { %4135 = vmatprep.subr.bf16.mxu0 %v4134_v46  ;;  %4125 = vmatpush1.bf16.msra.mxu1 %v4124_v6 }
 0x297   :  { %1968 = vmatprep.subr.mxu1 %v1510_v29 }
 0x299   :  { %4137 = vmatpush1.bf16.msra.mxu0 %v4136_v33 }
 0x29a   :  { %1969 = vmatpush1.msra.mxu1 %v1509_v13 }
 0x29b   :  { %4017 = vmatmul.mubr.msk.f32.vlgmr.msra.gmra.mrb[4].mxu1 %vm1593_vm4, %v5991_v37 }
 0x29c   :  { %2158 = vmatprep.mubr.f32.mxu1 %v7238_v35 }
 0x2bb   :  { %v4481_v42 = vpop.permute.xlu0 %4480  ;;  %v4476_v40 = vpop.permute.xlu1 %4475 }
 0x2bc   :  { %v4478_v14 = vunpack.i.h.bf16 %v4476_v40  ;;  %v4477_v44 = vunpack.i.l.bf16 %v4476_v40  ;;  %v4483_v25 = vunpack.i.h.bf16 %v4481_v42  ;;  %v4482_v13 = vunpack.i.l.bf16 %v4481_v42 }
 0x2be   :  { %v1494_v58 = vsel %vm1461_vm3, %v4472_v19, %v4477_v44  ;;  %v1477_v32 = vsel %vm1461_vm3, %v4473_v26, %v4478_v14  ;;  %v1495_v49 = vsel %vm1461_vm3, %v4477_v44, %v4483_v25  ;;  %v1478_v19 = vsel %vm1461_vm3, %v4478_v14, %v4482_v13 }
 0x2bf   :  { %v1438_v41 = vpop.permute.xlu0 %1437  ;;  %v1404_v1 = vpop.permute.xlu1 %1403  ;;  %v4138_v43 = vpack.c.bf16 %v1494_v58, %v1476_v61  ;;  %v4156_v6 = vpack.c.bf16 %v1495_v49, %v1477_v32 }
 0x2c0   :  { %v1512_v0 = vsel %vm1461_vm3, %v1436_v59, %v1438_v41  ;;  %v1496_v29 = vsel %vm1461_vm3, %v4483_v25, %v1404_v1 }
 0x2c1   :  { %4139 = vmatprep.subr.bf16.mxu0 %v4138_v43  ;;  %4143 = vmatprep.subr.bf16.mxu1 %v4138_v43  ;;  %v4146_v5 = vpack.c.bf16 %v1477_v32, %v1512_v0  ;;  %v4158_v11 = vpack.c.bf16 %v1496_v29, %v1478_v19  ;;  %v4152_v18 = vpack.c.bf16 %v1512_v0, %v1494_v58 }
 0x2c2   :  { %4141 = vmatpush1.bf16.msra.mxu0 %v4140_v56  ;;  %4145 = vmatpush1.bf16.msra.mxu1 %v4140_v56 }
 0x2c3   :  { %2039 = vmatprep.subr.mxu0 %v1512_v0  ;;  %4147 = vmatprep.subr.bf16.mxu1 %v4146_v5 }
 0x2c6   :  { %2040 = vmatpush1.msra.mxu0 %v1511_v47  ;;  %4149 = vmatpush1.bf16.msra.mxu1 %v4148_v31 }
 0x2c7   :  { %v1442_v59 = vpop.permute.xlu0 %1441  ;;  %v1440_v10 = vpop.permute.xlu1 %1439  ;;  %4018 = vmatmul.mubr.msk.f32.vlgmr.msra.gmra.mrb[6].mxu0 %vm1593_vm4, %v5991_v37  ;;  %4159 = vmatprep.subr.bf16.mxu0 %v4158_v11 }
 0x2c8   :  { %v1513_v28 = vsel %vm1461_vm3, %v1438_v41, %v1440_v10  ;;  %4161 = vmatpush1.bf16.msra.mxu0 %v4156_v6  ;;  %2229 = vmatprep.mubr.f32.mxu0 %v7238_v35  ;;  %v1514_v26 = vsel %vm1461_vm3, %v1440_v10, %v1442_v59 }
 0x2c9   :  { %v4150_v51 = vpack.c.bf16 %v1513_v28, %v1495_v49  ;;  %v4164_v1 = vpack.c.bf16 %v1478_v19, %v1513_v28 }
 0x2cb   :  { %v1450_v52 = vpop.permute.xlu0 %1449  ;;  %4151 = vmatprep.subr.bf16.mxu1 %v4150_v51 }
 0x2cc   :  { %4153 = vmatpush1.bf16.msra.mxu1 %v4152_v18 }
 0x2cd   :  { %v4486_v46 = vpop.permute.xlu1 %4485 }
 0x2ce   :  { %v4488_v33 = vunpack.i.h.bf16 %v4486_v46  ;;  %v4487_v47 = vunpack.i.l.bf16 %v4486_v46 }
 0x2cf   :  { %v1458_v14 = vpop.permute.xlu0 %1457 }
 0x2d0   :  { %v1515_v42 = vsel %vm1461_vm3, %v4482_v13, %v4487_v47  ;;  %v1517_v40 = vsel %vm1461_vm3, %v4483_v25, %v4488_v33  ;;  %v1518_v58 = vsel %vm1461_vm3, %v4488_v33, %v1450_v52  ;;  %v1524_v0 = vsel %vm1461_vm3, %v1458_v14, %v5949_v36 }
 0x2d1   :  { %v1454_v44 = vpop.permute.xlu1 %1453  ;;  %v4154_v61 = vpack.c.bf16 %v1517_v40, %v1478_v19  ;;  %v4162_v41 = vpack.c.bf16 %v1515_v42, %v1514_v26  ;;  %v1521_v25 = vsel %vm1461_vm3, %v4487_v47, %v5945_v62  ;;  %v4168_v13 = vpack.c.bf16 %v1514_v26, %v1517_v40  ;;  %v97_v19 = vld [vmem:[#allocation8] sm:$0xff] }
 0x2d2   :  { %v1520_v43 = vsel %vm1461_vm3, %v1442_v59, %v1454_v44  ;;  %v1523_v32 = vsel %vm1461_vm3, %v4488_v33, %v1458_v14  ;;  %v4170_v5 = vpack.c.bf16 %v1524_v0, %v1521_v25  ;;  %v1526_v49 = vsel %vm1461_vm3, %v1454_v44, %v5964_v7 }
 0x2d3   :  { %4155 = vmatprep.subr.bf16.mxu1 %v4154_v61  ;;  %4163 = vmatprep.subr.bf16.mxu0 %v4162_v41  ;;  %v4166_v56 = vpack.c.bf16 %v1520_v43, %v1518_v58  ;;  %v4172_v29 = vpack.c.bf16 %v1523_v32, %v1515_v42  ;;  %v6082_v31 = vrot.slane %v97_v19, %v4902_v2 }
 0x2d4   :  { %4157 = vmatpush1.bf16.msra.mxu1 %v4156_v6  ;;  %4165 = vmatpush1.bf16.msra.mxu0 %v4164_v1  ;;  %v6085_v11 = vrot.slane %v97_v19, %v4904_v3  ;;  %v6098_v46 = vrot.slane %v97_v19, %v4906_v4  ;;  %v6101_v33 = vrot.slane %v97_v19, %v4918_v17 }
 0x2d5   :  { %2110 = vmatprep.subr.mxu1 %v1514_v26  ;;  %4167 = vmatprep.subr.bf16.mxu0 %v4166_v56  ;;  %v6113_v61 = vrot.slane %v97_v19, %v4924_v20  ;;  %v6117_v1 = vrot.slane %v97_v19, %v4932_v24 }
 0x2d7   :  { %7253 = vst [vmem:[#allocation108_spill] sm:$0xff] %v6117_v1 }
 0x2d8   :  { %2111 = vmatpush1.msra.mxu1 %v1513_v28  ;;  %4169 = vmatpush1.bf16.msra.mxu0 %v4168_v13 }
 0x2d9   :  { %4019 = vmatmul.mubr.msk.f32.vlgmr.msra.gmra.mrb[6].mxu1 %vm1593_vm4, %v5991_v37  ;;  %4171 = vmatprep.subr.bf16.mxu0 %v4170_v5 }
 0x2da   :  { %3268 = vmatprep.mubr.f32.mxu1 %v7238_v35 }
 0x2dc   :  { %4173 = vmatpush1.bf16.msra.mxu0 %v4172_v29 }
 0x2dd   :  { %2181 = vmatprep.subr.mxu0 %v1526_v49 }
 0x2e0   :  { %2182 = vmatpush1.msra.mxu0 %v1520_v43 }
 0x2e1   :  { %4020 = vmatmul.mubr.msk.f32.vlgmr.msra.gmra.mrb[8].mxu0 %vm1593_vm4, %v5991_v37 }
 0x2e2   :  { %3339 = vmatprep.mubr.f32.mxu0 %v7238_v35 }
 0x33b   :  { %v6087_v6 = vpop.f32.mrb[0].mxu0 }
 0x33c   :  { %v2329_v59 = vmul.f32 %v6082_v31, %v6087_v6  ;;  %v6091_v10 = vpop.f32.mrb[1].mxu0 }
 0x33d   :  { %v2330_v28 = vmul.f32 %v6085_v11, %v6091_v10 }
 0x33e   :  { %v2367_v37 = vmul.f32 %v2329_v59, %v6087_v6 }
 0x33f   :  { %v2347_v51 = vadd.f32 %v2330_v28, %v2329_v59  ;;  %v2368_v18 = vmul.f32 %v2330_v28, %v6091_v10 }
 0x341   :  { %v2385_v52 = vadd.f32 %v2368_v18, %v2367_v37  ;;  %v6133_v18 = vrot.slane %v97_v19, %v4938_v27 }
 0x343   :  { %7255 = vst [vmem:[#allocation110_spill] sm:$0xff] %v6133_v18 }
 0x34a   :  { %v6103_v47 = vpop.f32.mrb[0].mxu1 }
 0x34b   :  { %v2331_v26 = vmul.f32 %v6098_v46, %v6103_v47  ;;  %v6107_v42 = vpop.f32.mrb[1].mxu1 }
 0x34c   :  { %v2332_v40 = vmul.f32 %v6101_v33, %v6107_v42 }
 0x34d   :  { %v2348_v14 = vadd.f32 %v2347_v51, %v2331_v26  ;;  %v2369_v44 = vmul.f32 %v2331_v26, %v6103_v47  ;;  %v6130_v51 = vrot.slane %v97_v19, %v4930_v23 }
 0x34e   :  { %v2370_v41 = vmul.f32 %v2332_v40, %v6107_v42 }
 0x34f   :  { %v2386_v43 = vadd.f32 %v2385_v52, %v2369_v44  ;;  %v2349_v58 = vadd.f32 %v2348_v14, %v2332_v40  ;;  %7254 = vst [vmem:[#allocation109_spill] sm:$0xff] %v6130_v51  ;;  %v98_v14 = vld [vmem:[#allocation8 + $0x8] sm:$0xff] }
 0x350   :  { %v6119_v56 = vpop.f32.mrb[2].mxu0 }
 0x351   :  { %v2387_v0 = vadd.f32 %v2386_v43, %v2370_v41  ;;  %v2333_v25 = vmul.f32 %v6113_v61, %v6119_v56  ;;  %v6123_v13 = vpop.f32.mrb[3].mxu0 }
 0x352   :  { %v2334_v32 = vmul.f32 %v6117_v1, %v6123_v13 }
 0x353   :  { %v2350_v5 = vadd.f32 %v2349_v58, %v2333_v25  ;;  %v2371_v29 = vmul.f32 %v2333_v25, %v6119_v56 }
 0x354   :  { %v2372_v49 = vmul.f32 %v2334_v32, %v6123_v13 }
 0x355   :  { %v2388_v59 = vadd.f32 %v2387_v0, %v2371_v29  ;;  %v2351_v28 = vadd.f32 %v2350_v5, %v2334_v32  ;;  %v6146_v0 = vrot.slane %v98_v14, %v4902_v2  ;;  %v6149_v32 = vrot.slane %v98_v14, %v4904_v3 }
 0x357   :  { %v2389_v37 = vadd.f32 %v2388_v59, %v2372_v49  ;;  %7256 = vst [vmem:[#allocation111_spill] sm:$0xff] %v6146_v0  ;;  %7257 = vst [vmem:[#allocation112_spill] sm:$0xff] %v6149_v32 }
 0x35c   :  { %v6135_v52 = vpop.f32.mrb[2].mxu1 }
 0x35d   :  { %v2335_v26 = vmul.f32 %v6130_v51, %v6135_v52  ;;  %v6139_v40 = vpop.f32.mrb[3].mxu1 }
 0x35e   :  { %v2336_v44 = vmul.f32 %v6133_v18, %v6139_v40 }
 0x35f   :  { %v2352_v41 = vadd.f32 %v2351_v28, %v2335_v26  ;;  %v2373_v43 = vmul.f32 %v2335_v26, %v6135_v52 }
 0x360   :  { %v2374_v58 = vmul.f32 %v2336_v44, %v6139_v40 }
 0x361   :  { %v2390_v19 = vadd.f32 %v2389_v37, %v2373_v43  ;;  %v2353_v25 = vadd.f32 %v2352_v41, %v2336_v44 }
 0x363   :  { %v2391_v5 = vadd.f32 %v2390_v19, %v2374_v58  ;;  %v6151_v29 = vpop.f32.mrb[4].mxu0  ;;  %v6162_v58 = vrot.slane %v98_v14, %v4906_v4  ;;  %v6165_v19 = vrot.slane %v98_v14, %v4918_v17  ;;  %v6178_v17 = vrot.slane %v98_v14, %v4924_v20 }
 0x364   :  { %v2337_v49 = vmul.f32 %v6146_v0, %v6151_v29  ;;  %v6155_v59 = vpop.f32.mrb[5].mxu0 }
 0x365   :  { %v2338_v28 = vmul.f32 %v6149_v32, %v6155_v59  ;;  %7258 = vst [vmem:[#allocation113_spill] sm:$0xff] %v6162_v58  ;;  %7259 = vst [vmem:[#allocation114_spill] sm:$0xff] %v6165_v19 }
 0x366   :  { %v2354_v26 = vadd.f32 %v2353_v25, %v2337_v49  ;;  %v2375_v18 = vmul.f32 %v2337_v49, %v6151_v29  ;;  %7260 = vst [vmem:[#allocation115_spill] sm:$0xff] %v6178_v17 }
 0x367   :  { %v2376_v37 = vmul.f32 %v2338_v28, %v6155_v59 }
 0x368   :  { %v2392_v44 = vadd.f32 %v2391_v5, %v2375_v18  ;;  %v2355_v41 = vadd.f32 %v2354_v26, %v2338_v28 }
 0x36a   :  { %v2393_v43 = vadd.f32 %v2392_v44, %v2376_v37  ;;  %v6181_v37 = vrot.slane %v98_v14, %v4932_v24  ;;  %v6194_v24 = vrot.slane %v98_v14, %v4930_v23 }
 0x36c   :  { %7261 = vst [vmem:[#allocation116_spill] sm:$0xff] %v6181_v37  ;;  %7262 = vst [vmem:[#allocation117_spill] sm:$0xff] %v6194_v24 }
 0x36e   :  { %v6167_v0 = vpop.f32.mrb[4].mxu1 }
 0x36f   :  { %v2339_v51 = vmul.f32 %v6162_v58, %v6167_v0  ;;  %v6171_v32 = vpop.f32.mrb[5].mxu1 }
 0x370   :  { %v2340_v25 = vmul.f32 %v6165_v19, %v6171_v32 }
 0x371   :  { %v2356_v49 = vadd.f32 %v2355_v41, %v2339_v51  ;;  %v2377_v18 = vmul.f32 %v2339_v51, %v6167_v0 }
 0x372   :  { %v2378_v5 = vmul.f32 %v2340_v25, %v6171_v32 }
 0x373   :  { %v2394_v4 = vadd.f32 %v2393_v43, %v2377_v18  ;;  %v2357_v28 = vadd.f32 %v2356_v49, %v2340_v25 }
 0x375   :  { %v2395_v26 = vadd.f32 %v2394_v4, %v2378_v5  ;;  %v6197_v5 = vrot.slane %v98_v14, %v4938_v27 }
 0x377   :  { %7263 = vst [vmem:[#allocation118_spill] sm:$0xff] %v6197_v5 }
 0x39a   :  { %v6183_v44 = vpop.f32.mrb[6].mxu0 }
 0x39b   :  { %v2341_v58 = vmul.f32 %v6178_v17, %v6183_v44  ;;  %v6187_v19 = vpop.f32.mrb[7].mxu0 }
 0x39c   :  { %v2342_v51 = vmul.f32 %v6181_v37, %v6187_v19 }
 0x39d   :  { %v2358_v41 = vadd.f32 %v2357_v28, %v2341_v58  ;;  %v2379_v43 = vmul.f32 %v2341_v58, %v6183_v44  ;;  %v99_v28 = vld [vmem:[#allocation8 + $0x10] sm:$0x3] }
 0x39e   :  { %v2380_v25 = vmul.f32 %v2342_v51, %v6187_v19  ;;  %v6210_v27 = vrot.slane %v99_v28, %v4902_v2  ;;  %v6213_v14 = vrot.slane %v99_v28, %v4904_v3 }
 0x39f   :  { %v2396_v20 = vadd.f32 %v2395_v26, %v2379_v43  ;;  %v2359_v49 = vadd.f32 %v2358_v41, %v2342_v51 }
 0x3a0   :  { %7264 = vst [vmem:[#allocation119_spill] sm:$0xff] %v6210_v27  ;;  %7265 = vst [vmem:[#allocation120_spill] sm:$0xff] %v6213_v14 }
 0x3a1   :  { %v2397_v18 = vadd.f32 %v2396_v20, %v2380_v25 }
 0x3ac   :  { %v6199_v4 = vpop.f32.mrb[6].mxu1 }
 0x3ad   :  { %v2343_v17 = vmul.f32 %v6194_v24, %v6199_v4  ;;  %v6203_v37 = vpop.f32.mrb[7].mxu1 }
 0x3ae   :  { %v2344_v58 = vmul.f32 %v6197_v5, %v6203_v37 }
 0x3af   :  { %v2360_v26 = vadd.f32 %v2359_v49, %v2343_v17  ;;  %v2381_v51 = vmul.f32 %v2343_v17, %v6199_v4 }
 0x3b0   :  { %v2382_v23 = vmul.f32 %v2344_v58, %v6203_v37 }
 0x3b1   :  { %v2398_v41 = vadd.f32 %v2397_v18, %v2381_v51  ;;  %v2361_v43 = vadd.f32 %v2360_v26, %v2344_v58 }
 0x3b3   :  { %v2399_v25 = vadd.f32 %v2398_v41, %v2382_v23 }
 0x3b4   :  { %v6215_v20 = vpop.f32.mrb[8].mxu0 }
 0x3b5   :  { %v2345_v5 = vmul.f32 %v6210_v27, %v6215_v20  ;;  %v6219_v24 = vpop.f32.mrb[9].mxu0 }
 0x3b6   :  { %v2346_v17 = vmul.f32 %v6213_v14, %v6219_v24 }
 0x3b7   :  { %v2362_v49 = vadd.f32 %v2361_v43, %v2345_v5  ;;  %v2383_v18 = vmul.f32 %v2345_v5, %v6215_v20  ;;  %v7288_v43 = vld [vmem:[#allocation42_spill] sm:$0xff]  ;;  %v7289_v5 = vld [vmem:[#allocation47_spill] sm:$0xff] }
 0x3b8   :  { %v2384_v2 = vmul.f32 %v2346_v17, %v6219_v24 }
 0x3b9   :  { %v2400_v58 = vadd.f32 %v2399_v25, %v2383_v18  ;;  %v2363_v26 = vadd.f32 %v2362_v49, %v2346_v17 }
 0x3bb   :  { %2364 = vadd.xlane.f32.xlu1 %v2363_v26  ;;  %v2401_v3 = vadd.f32 %v2400_v58, %v2384_v2 }
 0x3bd   :  { %2402 = vadd.xlane.f32.xlu0 %v2401_v3 }
 0x448   :  { %v2365_v28 = vpop.xlane.xlu1 %2364 }
 0x449   :  { %v6225_v51 = vmul.f32 0.00390625, %v2365_v28 }
 0x44a   :  { %v2403_v23 = vpop.xlane.xlu0 %2402 }
 0x44b   :  { %v2404_v41 = vmul.f32 0.00390625, %v2403_v23  ;;  %v2405_v27 = vmul.f32 %v6225_v51, %v6225_v51  ;;  %v2408_v17 = vsub.f32 %v6091_v10, %v6225_v51  ;;  %v2410_v49 = vsub.f32 %v6107_v42, %v6225_v51 }
 0x44c   :  { %v2411_v2 = vsub.f32 %v6119_v56, %v6225_v51  ;;  %v2413_v10 = vsub.f32 %v6135_v52, %v6225_v51  ;;  %v2414_v42 = vsub.f32 %v6139_v40, %v6225_v51 }
 0x44d   :  { %v2406_v1 = vsub.f32 %v2404_v41, %v2405_v27  ;;  %v2407_v27 = vsub.f32 %v6087_v6, %v6225_v51 }
 0x44f   :  { %v2425_v14 = vadd.f32 1e-05, %v2406_v1  ;;  %v2409_v1 = vsub.f32 %v6103_v47, %v6225_v51 }
 0x451   :  { %4639 = vrsqrt.f32 %v2425_v14  ;;  %v2412_v14 = vsub.f32 %v6123_v13, %v6225_v51 }
 0x45b   :  { %v6243_v18 = vpop.eup %4639 }
 0x45c   :  { %v2428_v58 = vmul.f32 %v6243_v18, %v2408_v17  ;;  %v2430_v6 = vmul.f32 %v6243_v18, %v2410_v49  ;;  %v2427_v47 = vmul.f32 %v6243_v18, %v2407_v27  ;;  %v2429_v26 = vmul.f32 %v6243_v18, %v2409_v1 }
 0x45d   :  { %v2431_v3 = vmul.f32 %v6243_v18, %v2411_v2  ;;  %v2432_v56 = vmul.f32 %v6243_v18, %v2412_v14  ;;  %v2433_v13 = vmul.f32 %v6243_v18, %v2413_v10  ;;  %v2434_v28 = vmul.f32 %v6243_v18, %v2414_v42 }
 0x45e   :  { %v2446_v52 = vmax.f32 %v2428_v58, 0.0  ;;  %v2448_v23 = vmax.f32 %v2430_v6, 0.0  ;;  %v2445_v41 = vmax.f32 %v2427_v47, 0.0  ;;  %v2447_v40 = vmax.f32 %v2429_v26, 0.0 }
 0x45f   :  { %v2449_v25 = vmax.f32 %v2431_v3, 0.0  ;;  %v6261_v17 = vmax.f32 %v2432_v56, 0.0  ;;  %v6263_v49 = vmax.f32 %v2433_v13, 0.0  ;;  %v6272_v6 = vmax.f32 %v2434_v28, 0.0  ;;  %v7266_v56 = vld [vmem:[#allocation19_spill] sm:$0xff] }
 0x460   :  { %v2464_v27 = vmul.f32 %v2446_v52, %v5013_v15  ;;  %v2482_v1 = vmul.f32 %v2448_v23, %v5017_v16  ;;  %v2463_v2 = vmul.f32 %v2445_v41, %v4998_v8  ;;  %v2481_v14 = vmul.f32 %v2447_v40, %v5002_v9 }
 0x461   :  { %v2465_v10 = vmul.f32 %v2447_v40, %v5023_v21  ;;  %v2483_v42 = vmul.f32 %v2449_v25, %v5027_v22  ;;  %v2466_v58 = vmul.f32 %v2448_v23, %v5053_v38  ;;  %v2515_v3 = vmul.f32 %v2445_v41, %v5044_v34  ;;  %v7267_v22 = vld [vmem:[#allocation17_spill] sm:$0xff]  ;;  %v7268_v38 = vld [vmem:[#allocation16_spill] sm:$0xff] }
 0x462   :  { %v2498_v47 = vadd.f32 %v2482_v1, %v2464_v27  ;;  %v2497_v26 = vadd.f32 %v2481_v14, %v2463_v2  ;;  %v2484_v15 = vmul.f32 %v6261_v17, %v5057_v39  ;;  %v2516_v8 = vmul.f32 %v2446_v52, %v5090_v53  ;;  %v7269_v1 = vld [vmem:[#allocation22_spill] sm:$0xff]  ;;  %v7270_v2 = vld [vmem:[#allocation20_spill] sm:$0xff]  ;;  %v7271_v52 = vld [vmem:[#allocation23_spill] sm:$0xff] }
 0x463   :  { %v2499_v16 = vadd.f32 %v2483_v42, %v2465_v10  ;;  %v2467_v9 = vmul.f32 %v2449_v25, %v5068_v45  ;;  %v2485_v21 = vmul.f32 %v6263_v49, %v7266_v56  ;;  %v2468_v34 = vmul.f32 %v6261_v17, %v7269_v1  ;;  %v7272_v14 = vld [vmem:[#allocation21_spill] sm:$0xff]  ;;  %v7273_v42 = vld [vmem:[#allocation18_spill] sm:$0xff]  ;;  %v7274_v56 = vld [vmem:[#allocation27_spill] sm:$0xff] }
 0x464   :  { %v6282_v13 = vadd.f32 %v2498_v47, %v7267_v22  ;;  %v6285_v28 = vadd.f32 %v2497_v26, %v7268_v38  ;;  %v2500_v27 = vadd.f32 %v2484_v15, %v2466_v58  ;;  %v2517_v53 = vmul.f32 %v2447_v40, %v7270_v2  ;;  %v7276_v22 = vld [vmem:[#allocation28_spill] sm:$0xff]  ;;  %v7278_v2 = vld [vmem:[#allocation29_spill] sm:$0xff] }
 0x465   :  { %v6289_v41 = vadd.f32 %v2515_v3, %v2499_v16  ;;  %v2501_v39 = vadd.f32 %v2485_v21, %v2467_v9  ;;  %v2486_v45 = vmul.f32 %v6272_v6, %v7271_v52  ;;  %v2415_v58 = vsub.f32 %v6151_v29, %v6225_v51  ;;  %v7279_v52 = vld [vmem:[#allocation33_spill] sm:$0xff] }
 0x466   :  { %v2568_v10 = vmul.f32 %v6282_v13, %v7272_v14  ;;  %v2567_v47 = vmul.f32 %v6285_v28, %v7273_v42  ;;  %v2416_v26 = vsub.f32 %v6155_v59, %v6225_v51  ;;  %v6302_v3 = vadd.f32 %v2516_v8, %v2500_v27  ;;  %v7275_v59 = vld [vmem:[#allocation24_spill] sm:$0xff]  ;;  %v7281_v42 = vld [vmem:[#allocation26_spill] sm:$0xff] }
 0x467   :  { %v6304_v15 = vadd.f32 %v2517_v53, %v2501_v39  ;;  %v2417_v40 = vsub.f32 %v6167_v0, %v6225_v51  ;;  %v2418_v16 = vsub.f32 %v6171_v32, %v6225_v51  ;;  %v2502_v9 = vadd.f32 %v2486_v45, %v2468_v34  ;;  %v7277_v34 = vld [vmem:[#allocation25_spill] sm:$0xff] }
 0x468   :  { %2605 = vrot.lane.b32.xlu1 %v2568_v10, %s4807_s24  ;;  %2603 = vrot.lane.b32.xlu0 %v2567_v47, %s4807_s24  ;;  %v2518_v29 = vmul.f32 %v2448_v23, %v7274_v56  ;;  %v2435_v21 = vmul.f32 %v6243_v18, %v2415_v58  ;;  %v2569_v8 = vmul.f32 %v6289_v41, %v7275_v59  ;;  %v7283_v56 = vld [vmem:[#allocation30_spill] sm:$0xff] }
 0x469   :  { %v2693_v38 = vmul.f32 %v6285_v28, %v7276_v22  ;;  %v2419_v0 = vsub.f32 %v6183_v44, %v6225_v51  ;;  %v2420_v32 = vsub.f32 %v6187_v19, %v6225_v51  ;;  %v2469_v23 = vmul.f32 %v6263_v49, %v7277_v34  ;;  %v7280_v19 = vld [vmem:[#allocation34_spill] sm:$0xff] }
 0x46a   :  { %v6322_v27 = vadd.f32 %v2518_v29, %v2502_v9  ;;  %v2453_v1 = vmax.f32 %v2435_v21, 0.0  ;;  %v2436_v39 = vmul.f32 %v6243_v18, %v2416_v26  ;;  %v2694_v53 = vmul.f32 %v6282_v13, %v7278_v2  ;;  %v7282_v26 = vld [vmem:[#allocation31_spill] sm:$0xff] }
 0x46b   :  { %v2695_v45 = vmul.f32 %v6289_v41, %v7279_v52  ;;  %v2437_v14 = vmul.f32 %v6243_v18, %v2417_v40  ;;  %v2421_v44 = vsub.f32 %v6199_v4, %v6225_v51  ;;  %v2570_v10 = vmul.f32 %v6302_v3, %v7280_v19  ;;  %v7284_v40 = vld [vmem:[#allocation38_spill] sm:$0xff]  ;;  %v7287_v19 = vld [vmem:[#allocation39_spill] sm:$0xff] }
 0x46c   :  { %2607 = vrot.lane.b32.xlu1 %v2569_v8, %s4807_s24  ;;  %2729 = vrot.lane.b32.xlu0 %v2693_v38, %s4806_s4  ;;  %v2487_v47 = vmul.f32 %v2453_v1, %v7281_v42  ;;  %v2454_v58 = vmax.f32 %v2436_v39, 0.0  ;;  %v2470_v9 = vmul.f32 %v6272_v6, %v7282_v26  ;;  %v2519_v29 = vmul.f32 %v2449_v25, %v7283_v56  ;;  %v7285_v8 = vld [vmem:[#allocation32_spill] sm:$0xff]  ;;  %v7286_v38 = vld [vmem:[#allocation35_spill] sm:$0xff] }
 0x46d   :  { %v2455_v21 = vmax.f32 %v2437_v14, 0.0  ;;  %v2471_v59 = vmul.f32 %v2453_v1, %v7284_v40  ;;  %v2438_v4 = vmul.f32 %v6243_v18, %v2418_v16  ;;  %v2520_v2 = vmul.f32 %v6261_v17, %v7286_v38  ;;  %v7290_v17 = vld [vmem:[#allocation37_spill] sm:$0xff]  ;;  %v7291_v40 = vld [vmem:[#allocation44_spill] sm:$0xff] }
 0x46e   :  { %v2503_v22 = vadd.f32 %v2487_v47, %v2469_v23  ;;  %v2488_v34 = vmul.f32 %v2454_v58, %v7285_v8  ;;  %v2439_v52 = vmul.f32 %v6243_v18, %v2419_v0  ;;  %v2472_v26 = vmul.f32 %v2454_v58, %v7288_v43  ;;  %v7292_v43 = vld [vmem:[#allocation43_spill] sm:$0xff] }
 0x46f   :  { %v2489_v39 = vmul.f32 %v2455_v21, %v7287_v19  ;;  %v2456_v42 = vmax.f32 %v2438_v4, 0.0  ;;  %v2473_v25 = vmul.f32 %v2455_v21, %v7289_v5  ;;  %v2440_v47 = vmul.f32 %v6243_v18, %v2420_v32 }
 0x470   :  { %2731 = vrot.lane.b32.xlu1 %v2694_v53, %s4806_s4  ;;  %2609 = vrot.lane.b32.xlu0 %v2570_v10, %s4807_s24  ;;  %v6353_v16 = vadd.f32 %v2519_v29, %v2503_v22  ;;  %v2504_v23 = vadd.f32 %v2488_v34, %v2470_v9  ;;  %v2457_v14 = vmax.f32 %v2439_v52, 0.0  ;;  %v2571_v0 = vmul.f32 %v6304_v15, %v7290_v17  ;;  %v7293_v53 = vld [vmem:[#allocation45_spill] sm:$0xff]  ;;  %v7294_v29 = vld [vmem:[#allocation46_spill] sm:$0xff] }
 0x471   :  { %v2505_v56 = vadd.f32 %v2489_v39, %v2471_v59  ;;  %v2521_v4 = vmul.f32 %v6263_v49, %v7291_v40  ;;  %v2490_v8 = vmul.f32 %v2456_v42, %v7292_v43  ;;  %v2522_v10 = vmul.f32 %v6272_v6, %v7293_v53  ;;  %v7295_v9 = vld [vmem:[#allocation53_spill] sm:$0xff]  ;;  %v7297_v39 = vld [vmem:[#allocation36_spill] sm:$0xff]  ;;  %v7298_v17 = vld [vmem:[#allocation54_spill] sm:$0xff] }
 0x472   :  { %v6361_v5 = vadd.f32 %v2520_v2, %v2504_v23  ;;  %v2491_v22 = vmul.f32 %v2457_v14, %v7294_v29  ;;  %v2474_v34 = vmul.f32 %v2456_v42, %v7295_v9  ;;  %v2458_v52 = vmax.f32 %v2440_v47, 0.0  ;;  %v7296_v2 = vld [vmem:[#allocation50_spill] sm:$0xff]  ;;  %v7303_v53 = vld [vmem:[#allocation59_spill] sm:$0xff]  ;;  %v7304_v29 = vld [vmem:[#allocation48_spill] sm:$0xff] }
 0x473   :  { %v6367_v38 = vadd.f32 %v2521_v4, %v2505_v56  ;;  %v2506_v32 = vadd.f32 %v2490_v8, %v2472_v26  ;;  %v2441_v59 = vmul.f32 %v6243_v18, %v2421_v44  ;;  %v2523_v19 = vmul.f32 %v2453_v1, %v7296_v2  ;;  %v7299_v56 = vld [vmem:[#allocation40_spill] sm:$0xff]  ;;  %v7300_v4 = vld [vmem:[#allocation58_spill] sm:$0xff] }
 0x474   :  { %2733 = vrot.lane.b32.xlu1 %v2695_v45, %s4806_s4  ;;  %2611 = vrot.lane.b32.xlu0 %v2571_v0, %s4807_s24  ;;  %v2507_v49 = vadd.f32 %v2491_v22, %v2473_v25  ;;  %v2696_v6 = vmul.f32 %v6302_v3, %v7297_v39  ;;  %v2492_v40 = vmul.f32 %v2458_v52, %v7298_v17  ;;  %v7301_v0 = vld [vmem:[#allocation55_spill] sm:$0xff] }
 0x475   :  { %v6375_v23 = vadd.f32 %v2522_v10, %v2506_v32  ;;  %v2572_v26 = vmul.f32 %v6322_v27, %v7299_v56  ;;  %v2459_v44 = vmax.f32 %v2441_v59, 0.0  ;;  %v2475_v45 = vmul.f32 %v2457_v14, %v7300_v4 }
 0x476   :  { %v6380_v47 = vadd.f32 %v2523_v19, %v2507_v49  ;;  %v2508_v43 = vadd.f32 %v2492_v40, %v2474_v34  ;;  %v2524_v25 = vmul.f32 %v2454_v58, %v7301_v0  ;;  %v7302_v1 = vsub.f32 %v6203_v37, %v6225_v51  ;;  %v7305_v34 = vld [vmem:[#allocation62_spill] sm:$0xff]  ;;  %v7306_v58 = vld [vmem:[#allocation41_spill] sm:$0xff] }
 0x477   :  { %v2493_v10 = vmul.f32 %v2459_v44, %v7303_v53  ;;  %v2697_v22 = vmul.f32 %v6304_v15, %v7304_v29  ;;  %v2476_v59 = vmul.f32 %v2458_v52, %v7305_v34  ;;  %v2573_v49 = vmul.f32 %v6353_v16, %v7306_v58  ;;  %v7314_v53 = vld [vmem:[#allocation72_spill] sm:$0xff] }
 0x478   :  { %v2442_v8 = vmul.f32 %v6243_v18, %v7302_v1  ;;  %2735 = vrot.lane.b32.xlu1 %v2696_v6, %s4806_s4  ;;  %2613 = vrot.lane.b32.xlu0 %v2572_v26, %s4807_s24  ;;  %v6393_v9 = vadd.f32 %v2524_v25, %v2508_v43  ;;  %v2525_v2 = vmul.f32 %v2455_v21, %v5378_v12  ;;  %v7308_v6 = vld [vmem:[#allocation63_spill] sm:$0xff]  ;;  %v7310_v12 = vld [vmem:[#allocation64_spill] sm:$0xff]  ;;  %v7311_v25 = vld [vmem:[#allocation49_spill] sm:$0xff] }
 0x479   :  { %v2509_v37 = vadd.f32 %v2493_v10, %v2475_v45  ;;  %v7307_v19 = vsub.f32 %v6215_v20, %v6225_v51  ;;  %v7309_v40 = vsub.f32 %v6219_v24, %v6225_v51  ;;  %v2477_v21 = vmul.f32 %v2459_v44, %v7310_v12  ;;  %v7312_v51 = vld [vmem:[#allocation52_spill] sm:$0xff]  ;;  %v7313_v1 = vld [vmem:[#allocation65_spill] sm:$0xff] }
 0x47a   :  { %v2460_v32 = vmax.f32 %v2442_v8, 0.0  ;;  %v2526_v20 = vmul.f32 %v2456_v42, %v5416_v57  ;;  %v2698_v24 = vmul.f32 %v6322_v27, %v7311_v25 }
 0x47b   :  { %v2443_v39 = vmul.f32 %v6243_v18, %v7307_v19  ;;  %v2444_v56 = vmul.f32 %v6243_v18, %v7309_v40  ;;  %v6410_v26 = vadd.f32 %v2525_v2, %v2509_v37  ;;  %v2574_v18 = vmul.f32 %v6361_v5, %v7312_v51  ;;  %v7318_v19 = vld [vmem:[#allocation75_spill] sm:$0xff]  ;;  %v7320_v40 = vld [vmem:[#allocation81_spill] sm:$0xff] }
 0x47c   :  { %v2494_v17 = vmul.f32 %v2460_v32, %v7308_v6  ;;  %2615 = vrot.lane.b32.xlu1 %v2573_v49, %s4807_s24  ;;  %2737 = vrot.lane.b32.xlu0 %v2697_v22, %s4806_s4  ;;  %v2478_v0 = vmul.f32 %v2460_v32, %v5459_v63  ;;  %v7315_v22 = vld [vmem:[#allocation68_spill] sm:$0xff]  ;;  %v7319_v6 = vld [vmem:[#allocation82_spill] sm:$0xff] }
 0x47d   :  { %v2461_v4 = vmax.f32 %v2443_v39, 0.0  ;;  %v2462_v43 = vmax.f32 %v2444_v56, 0.0  ;;  %v2527_v34 = vmul.f32 %v2457_v14, %v7315_v22  ;;  %v7317_v49 = vld [vmem:[#allocation76_spill] sm:$0xff]  ;;  %v2528_v39 = vmul.f32 %v2458_v52, %v7318_v19  ;;  %v7321_v56 = vld [vmem:[#allocation51_spill] sm:$0xff] }
 0x47e   :  { %v2510_v45 = vadd.f32 %v2494_v17, %v2476_v59  ;;  %v7316_v59 = vld [vmem:[#allocation71_spill] sm:$0xff]  ;;  %v2529_v37 = vmul.f32 %v2459_v44, %v7317_v49  ;;  %v2530_v14 = vmul.f32 %v2460_v32, %v7320_v40  ;;  %v7323_v52 = vld [vmem:[#allocation56_spill] sm:$0xff]  ;;  %v7333_v49 = vld [vmem:[#allocation78_spill] sm:$0xff] }
 0x47f   :  { %v2495_v8 = vmul.f32 %v2461_v4, %v7313_v1  ;;  %v2479_v10 = vmul.f32 %v2461_v4, %v7314_v53  ;;  %v2496_v58 = vmul.f32 %v2462_v43, %v7316_v59  ;;  %v2480_v57 = vmul.f32 %v2462_v43, %v5515_v48  ;;  %v7322_v48 = vld [vmem:[#allocation57_spill] sm:$0xff] }
 0x480   :  { %v6421_v29 = vadd.f32 %v2526_v20, %v2510_v45  ;;  %2739 = vrot.lane.b32.xlu1 %v2698_v24, %s4806_s4  ;;  %2617 = vrot.lane.b32.xlu0 %v2574_v18, %s4807_s24  ;;  %v2699_v4 = vmul.f32 %v6353_v16, %v7321_v56  ;;  %v2575_v12 = vmul.f32 %v6367_v38, %v7322_v48  ;;  %v7324_v20 = vld [vmem:[#allocation60_spill] sm:$0xff]  ;;  %v7326_v24 = vld [vmem:[#allocation66_spill] sm:$0xff]  ;;  %v7327_v18 = vld [vmem:[#allocation67_spill] sm:$0xff] }
 0x481   :  { %v2511_v63 = vadd.f32 %v2495_v8, %v2477_v21  ;;  %v2513_v42 = vadd.f32 %v2479_v10, %v5499_v55  ;;  %v2512_v2 = vadd.f32 %v2496_v58, %v2478_v0  ;;  %v2514_v17 = vadd.f32 %v2480_v57, %v7319_v6  ;;  %v7325_v0 = vld [vmem:[#allocation61_spill] sm:$0xff]  ;;  %v7328_v8 = vld [vmem:[#allocation70_spill] sm:$0xff] }
 0x482   :  { %v2700_v32 = vmul.f32 %v6361_v5, %v7323_v52  ;;  %v2576_v43 = vmul.f32 %v6375_v23, %v7324_v20  ;;  %v2577_v25 = vmul.f32 %v6380_v47, %v7325_v0  ;;  %v2701_v51 = vmul.f32 %v6367_v38, %v7326_v24  ;;  %v7329_v10 = vld [vmem:[#allocation69_spill] sm:$0xff]  ;;  %v7341_v24 = vld [vmem:[#allocation90_spill] sm:$0xff] }
 0x483   :  { %v6437_v45 = vadd.f32 %v2527_v34, %v2511_v63  ;;  %v6439_v21 = vadd.f32 %v2529_v37, %v2513_v42  ;;  %v6441_v55 = vadd.f32 %v2528_v39, %v2512_v2  ;;  %v6443_v44 = vadd.f32 %v2530_v14, %v2514_v17  ;;  %v7330_v34 = vld [vmem:[#allocation74_spill] sm:$0xff]  ;;  %v7331_v58 = vld [vmem:[#allocation73_spill] sm:$0xff]  ;;  %v7334_v2 = vld [vmem:[#allocation79_spill] sm:$0xff] }
 0x484   :  { %2741 = vrot.lane.b32.xlu1 %v2699_v4, %s4806_s4  ;;  %2619 = vrot.lane.b32.xlu0 %v2575_v12, %s4807_s24  ;;  %v2702_v1 = vmul.f32 %v6375_v23, %v7327_v18  ;;  %v2578_v53 = vmul.f32 %v6393_v9, %v7328_v8  ;;  %v2703_v22 = vmul.f32 %v6380_v47, %v7329_v10  ;;  %v7332_v63 = vld [vmem:[#allocation77_spill] sm:$0xff]  ;;  %v7335_v39 = vld [vmem:[#allocation80_spill] sm:$0xff]  ;;  %v7336_v17 = vld [vmem:[#allocation83_spill] sm:$0xff] }
 0x485   :  { %v2579_v59 = vmul.f32 %v6410_v26, %v7330_v34  ;;  %v2704_v57 = vmul.f32 %v6393_v9, %v7331_v58  ;;  %v2580_v42 = vmul.f32 %v6421_v29, %v7332_v63  ;;  %v2581_v37 = vmul.f32 %v6437_v45, %v7333_v49  ;;  %v7337_v14 = vld [vmem:[#allocation84_spill] sm:$0xff]  ;;  %v7338_v4 = vld [vmem:[#allocation85_spill] sm:$0xff]  ;;  %v7342_v10 = vld [vmem:[#allocation91_spill] sm:$0xff] }
 0x486   :  { %v2705_v19 = vmul.f32 %v6410_v26, %v7334_v2  ;;  %v2706_v6 = vmul.f32 %v6421_v29, %v7335_v39  ;;  %v2582_v40 = vmul.f32 %v6441_v55, %v7336_v17  ;;  %v2583_v56 = vmul.f32 %v6439_v21, %v7337_v14  ;;  %v7339_v12 = vld [vmem:[#allocation88_spill] sm:$0xff]  ;;  %v7344_v2 = vld [vmem:[#allocation93_spill] sm:$0xff] }
 0x487   :  { %v2707_v48 = vmul.f32 %v6437_v45, %v7338_v4  ;;  %v2584_v52 = vmul.f32 %v6443_v44, %v7339_v12  ;;  %v7343_v34 = vld [vmem:[#allocation92_spill] sm:$0xff]  ;;  %v7345_v4 = vld [vmem:[#allocation94_spill] sm:$0xff] }
 0x488   :  { %2743 = vrot.lane.b32.xlu1 %v2700_v32, %s4806_s4  ;;  %2621 = vrot.lane.b32.xlu0 %v2576_v43, %s4807_s24  ;;  %v7340_v32 = vld [vmem:[#allocation87_spill] sm:$0xff] }
 0x489   :  { %v2708_v20 = vmul.f32 %v6441_v55, %v7340_v32 }
 0x48c   :  { %2623 = vrot.lane.b32.xlu1 %v2577_v25, %s4807_s24  ;;  %2745 = vrot.lane.b32.xlu0 %v2701_v51, %s4806_s4  ;;  %v2549_v51 = vmul.f32 %v6285_v28, %v7341_v24 }
 0x490   :  { %2747 = vrot.lane.b32.xlu1 %v2702_v1, %s4806_s4  ;;  %2625 = vrot.lane.b32.xlu0 %v2578_v53, %s4807_s24 }
 0x494   :  { %2749 = vrot.lane.b32.xlu1 %v2703_v22, %s4806_s4  ;;  %2627 = vrot.lane.b32.xlu0 %v2579_v59, %s4807_s24  ;;  %v2550_v59 = vmul.f32 %v6282_v13, %v7343_v34 }
 0x498   :  { %2751 = vrot.lane.b32.xlu1 %v2704_v57, %s4806_s4  ;;  %2629 = vrot.lane.b32.xlu0 %v2580_v42, %s4807_s24 }
 0x49c   :  { %2631 = vrot.lane.b32.xlu1 %v2581_v37, %s4807_s24  ;;  %2753 = vrot.lane.b32.xlu0 %v2705_v19, %s4806_s4  ;;  %v2551_v19 = vmul.f32 %v6289_v41, %v7344_v2 }
 0x4a0   :  { %2755 = vrot.lane.b32.xlu1 %v2706_v6, %s4806_s4  ;;  %2633 = vrot.lane.b32.xlu0 %v2582_v40, %s4807_s24 }
 0x4a4   :  { %2635 = vrot.lane.b32.xlu1 %v2583_v56, %s4807_s24  ;;  %2757 = vrot.lane.b32.xlu0 %v2707_v48, %s4806_s4  ;;  %v2552_v48 = vmul.f32 %v6302_v3, %v7345_v4  ;;  %v7347_v3 = vld [vmem:[#allocation89_spill] sm:$0xff] }
 0x4a5   :  { %v2709_v24 = vmul.f32 %v6439_v21, %v7347_v3 }
 0x4a8   :  { %2637 = vrot.lane.b32.xlu1 %v2584_v52, %s4807_s24  ;;  %2759 = vrot.lane.b32.xlu0 %v2708_v20, %s4806_s4 }
 0x4da   :  { %v2606_v43 = vpop.permute.xlu1 %2605  ;;  %v2604_v0 = vpop.permute.xlu0 %2603 }
 0x4db   :  { %v2639_v25 = vsel %vm865_vm1, %v2604_v0, %v2606_v43  ;;  %v7346_v0 = vld [vmem:[#allocation95_spill] sm:$0xff] }
 0x4dc   :  { %v2675_v18 = vadd.f32 %v2639_v25, %v2549_v51  ;;  %v2553_v25 = vmul.f32 %v6304_v15, %v7346_v0  ;;  %v2554_v15 = vmul.f32 %v6322_v27, %v5649_v50 }
 0x4de   :  { %v2608_v1 = vpop.permute.xlu1 %2607  ;;  %v2730_v8 = vpop.permute.xlu0 %2729 }
 0x4df   :  { %v2640_v53 = vsel %vm865_vm1, %v2606_v43, %v2608_v1  ;;  %v2765_v22 = vsel %vm752_vm0, %v7342_v10, %v2730_v8 }
 0x4e0   :  { %v6509_v58 = vadd.f32 %v2765_v22, %v2675_v18  ;;  %v2676_v57 = vadd.f32 %v2640_v53, %v2550_v59 }
 0x4e2   :  { %v2732_v63 = vpop.permute.xlu1 %2731  ;;  %v2610_v42 = vpop.permute.xlu0 %2609  ;;  %2888 = vrot.lane.b32.xlu0 %v6509_v58, %s4807_s24 }
 0x4e3   :  { %v2766_v28 = vsel %vm752_vm0, %v2730_v8, %v2732_v63  ;;  %v2641_v49 = vsel %vm865_vm1, %v2608_v1, %v2610_v42 }
 0x4e4   :  { %v6515_v37 = vadd.f32 %v2766_v28, %v2676_v57  ;;  %v2677_v39 = vadd.f32 %v2641_v49, %v2551_v19 }
 0x4e6   :  { %v2734_v6 = vpop.permute.xlu1 %2733  ;;  %v2612_v13 = vpop.permute.xlu0 %2611  ;;  %v4489_v17 = vpack.i.bf16 %v6515_v37, %v6509_v58 }
 0x4e7   :  { %v2767_v40 = vsel %vm752_vm0, %v2732_v63, %v2734_v6  ;;  %v2642_v14 = vsel %vm865_vm1, %v2610_v42, %v2612_v13  ;;  %v7348_v42 = vld [vmem:[#allocation86_spill] sm:$0xff] }
 0x4e8   :  { %v6523_v56 = vadd.f32 %v2767_v40, %v2677_v39  ;;  %4490 = vrot.lane.b32.xlu1 %v4489_v17, %s4809_s25  ;;  %v2678_v12 = vadd.f32 %v2642_v14, %v2552_v48  ;;  %v2710_v28 = vmul.f32 %v6443_v44, %v7348_v42  ;;  %v7350_v40 = vld [vmem:[#allocation97_spill] sm:$0xff] }
 0x4e9   :  { %v2556_v14 = vmul.f32 %v6361_v5, %v7350_v40  ;;  %v7351_v5 = vld [vmem:[#allocation98_spill] sm:$0xff]  ;;  %v7354_v40 = vld [vmem:[#allocation101_spill] sm:$0xff] }
 0x4ea   :  { %v2736_v52 = vpop.permute.xlu1 %2735  ;;  %v2614_v41 = vpop.permute.xlu0 %2613  ;;  %2892 = vrot.lane.b32.xlu0 %v6523_v56, %s4807_s24 }
 0x4eb   :  { %v2768_v32 = vsel %vm752_vm0, %v2734_v6, %v2736_v52  ;;  %v2643_v20 = vsel %vm865_vm1, %v2612_v13, %v2614_v41  ;;  %v7349_v13 = vld [vmem:[#allocation96_spill] sm:$0xff] }
 0x4ec   :  { %v6532_v43 = vadd.f32 %v2768_v32, %v2678_v12  ;;  %2890 = vrot.lane.b32.xlu1 %v6515_v37, %s4807_s24  ;;  %v2679_v18 = vadd.f32 %v2643_v20, %v2553_v25  ;;  %v2555_v17 = vmul.f32 %v6353_v16, %v7349_v13  ;;  %v2557_v25 = vmul.f32 %v6367_v38, %v7351_v5 }
 0x4ee   :  { %v4494_v51 = vpack.i.bf16 %v6532_v43, %v6523_v56  ;;  %v2616_v1 = vpop.permute.xlu1 %2615  ;;  %v2738_v8 = vpop.permute.xlu0 %2737  ;;  %2761 = vrot.lane.b32.xlu0 %v2709_v24, %s4806_s4 }
 0x4ef   :  { %v2644_v53 = vsel %vm865_vm1, %v2614_v41, %v2616_v1  ;;  %v2769_v10 = vsel %vm752_vm0, %v2736_v52, %v2738_v8 }
 0x4f0   :  { %v6547_v22 = vadd.f32 %v2769_v10, %v2679_v18  ;;  %4495 = vrot.lane.b32.xlu1 %v4494_v51, %s4809_s25  ;;  %v2680_v34 = vadd.f32 %v2644_v53, %v2554_v15  ;;  %v7352_v53 = vld [vmem:[#allocation99_spill] sm:$0xff] }
 0x4f1   :  { %v2558_v10 = vmul.f32 %v6375_v23, %v7352_v53 }
 0x4f2   :  { %v4559_v59 = vpack.i.bf16 %v6547_v22, %v6532_v43  ;;  %v2740_v57 = vpop.permute.xlu1 %2739  ;;  %v2618_v63 = vpop.permute.xlu0 %2617 }
 0x4f3   :  { %v2770_v49 = vsel %vm752_vm0, %v2738_v8, %v2740_v57  ;;  %v2645_v39 = vsel %vm865_vm1, %v2616_v1, %v2618_v63 }
 0x4f4   :  { %v6555_v2 = vadd.f32 %v2770_v49, %v2680_v34  ;;  %2763 = vrot.lane.b32.xlu1 %v2710_v28, %s4806_s4  ;;  %v2681_v48 = vadd.f32 %v2645_v39, %v2555_v17 }
 0x4f6   :  { %v4499_v50 = vpack.i.bf16 %v6555_v2, %v6547_v22  ;;  %v2742_v27 = vpop.permute.xlu1 %2741  ;;  %v2620_v19 = vpop.permute.xlu0 %2619 }
 0x4f7   :  { %v2646_v6 = vsel %vm865_vm1, %v2618_v63, %v2620_v19  ;;  %v2771_v4 = vsel %vm752_vm0, %v2740_v57, %v2742_v27 }
 0x4f8   :  { %4500 = vrot.lane.b32.xlu0 %v4499_v50, %s4809_s25  ;;  %2894 = vrot.lane.b32.xlu1 %v6532_v43, %s4807_s24  ;;  %v2682_v12 = vadd.f32 %v2646_v6, %v2556_v14  ;;  %v6572_v0 = vadd.f32 %v2771_v4, %v2681_v48  ;;  %v7353_v50 = vld [vmem:[#allocation100_spill] sm:$0xff]  ;;  %v2560_v14 = vmul.f32 %v6393_v9, %v7354_v40 }
 0x4fa   :  { %v2744_v52 = vpop.permute.xlu1 %2743  ;;  %v2622_v41 = vpop.permute.xlu0 %2621 }
 0x4fb   :  { %v2772_v32 = vsel %vm752_vm0, %v2742_v27, %v2744_v52  ;;  %v2647_v20 = vsel %vm865_vm1, %v2620_v19, %v2622_v41  ;;  %v2559_v27 = vmul.f32 %v6380_v47, %v7353_v50 }
 0x4fc   :  { %v6574_v16 = vadd.f32 %v2772_v32, %v2682_v12  ;;  %2896 = vrot.lane.b32.xlu0 %v6547_v22, %s4807_s24  ;;  %2898 = vrot.lane.b32.xlu1 %v6555_v2, %s4807_s24  ;;  %v2683_v24 = vadd.f32 %v2647_v20, %v2557_v25  ;;  %v7355_v20 = vld [vmem:[#allocation102_spill] sm:$0xff] }
 0x4fd   :  { %v2561_v5 = vmul.f32 %v6410_v26, %v7355_v20 }
 0x4fe   :  { %v4504_v3 = vpack.i.bf16 %v6574_v16, %v6572_v0  ;;  %v2624_v51 = vpop.permute.xlu1 %2623  ;;  %v2746_v18 = vpop.permute.xlu0 %2745 }
 0x4ff   :  { %v2648_v1 = vsel %vm865_vm1, %v2622_v41, %v2624_v51  ;;  %v2773_v8 = vsel %vm752_vm0, %v2744_v52, %v2746_v18 }
 0x500   :  { %v6588_v38 = vadd.f32 %v2773_v8, %v2683_v24  ;;  %4505 = vrot.lane.b32.xlu0 %v4504_v3, %s4809_s25  ;;  %2900 = vrot.lane.b32.xlu1 %v6572_v0, %s4807_s24  ;;  %v2684_v15 = vadd.f32 %v2648_v1, %v2558_v10  ;;  %v7356_v1 = vld [vmem:[#allocation103_spill] sm:$0xff] }
 0x501   :  { %v2562_v8 = vmul.f32 %v6421_v29, %v7356_v1  ;;  %v7357_v29 = vld [vmem:[#allocation104_spill] sm:$0xff] }
 0x502   :  { %v4579_v34 = vpack.i.bf16 %v6588_v38, %v6574_v16  ;;  %v2748_v57 = vpop.permute.xlu1 %2747  ;;  %v2626_v63 = vpop.permute.xlu0 %2625 }
 0x503   :  { %v2774_v42 = vsel %vm752_vm0, %v2746_v18, %v2748_v57  ;;  %v2649_v23 = vsel %vm865_vm1, %v2624_v51, %v2626_v63 }
 0x504   :  { %v6596_v28 = vadd.f32 %v2774_v42, %v2684_v15  ;;  %2902 = vrot.lane.b32.xlu1 %v6574_v16, %s4807_s24  ;;  %v2685_v17 = vadd.f32 %v2649_v23, %v2559_v27 }
 0x506   :  { %v4509_v49 = vpack.i.bf16 %v6596_v28, %v6588_v38  ;;  %v2750_v19 = vpop.permute.xlu1 %2749  ;;  %v2628_v39 = vpop.permute.xlu0 %2627 }
 0x507   :  { %v2775_v6 = vsel %vm752_vm0, %v2748_v57, %v2750_v19  ;;  %v2650_v13 = vsel %vm865_vm1, %v2626_v63, %v2628_v39 }
 0x508   :  { %4510 = vrot.lane.b32.xlu0 %v4509_v49, %s4809_s25  ;;  %2906 = vrot.lane.b32.xlu1 %v6596_v28, %s4807_s24  ;;  %v6612_v4 = vadd.f32 %v2775_v6, %v2685_v17  ;;  %v2686_v48 = vadd.f32 %v2650_v13, %v2560_v14  ;;  %v2563_v49 = vmul.f32 %v6437_v45, %v7357_v29  ;;  %v7358_v17 = vld [vmem:[#allocation105_spill] sm:$0xff] }
 0x509   :  { %v2564_v40 = vmul.f32 %v6441_v55, %v7358_v17 }
 0x50a   :  { %v2752_v12 = vpop.permute.xlu1 %2751  ;;  %v2630_v47 = vpop.permute.xlu0 %2629 }
 0x50b   :  { %v2776_v52 = vsel %vm752_vm0, %v2750_v19, %v2752_v12  ;;  %v2651_v41 = vsel %vm865_vm1, %v2628_v39, %v2630_v47 }
 0x50c   :  { %v6616_v32 = vadd.f32 %v2776_v52, %v2686_v48  ;;  %2904 = vrot.lane.b32.xlu0 %v6588_v38, %s4807_s24  ;;  %2908 = vrot.lane.b32.xlu1 %v6612_v4, %s4807_s24  ;;  %v2687_v25 = vadd.f32 %v2651_v41, %v2561_v5  ;;  %v7359_v48 = vld [vmem:[#allocation106_spill] sm:$0xff] }
 0x50e   :  { %v4514_v9 = vpack.i.bf16 %v6616_v32, %v6612_v4  ;;  %v2632_v3 = vpop.permute.xlu1 %2631  ;;  %v2754_v24 = vpop.permute.xlu0 %2753 }
 0x50f   :  { %v2652_v51 = vsel %vm865_vm1, %v2630_v47, %v2632_v3  ;;  %v2777_v18 = vsel %vm752_vm0, %v2752_v12, %v2754_v24  ;;  %v2565_v12 = vmul.f32 %v6439_v21, %v7359_v48 }
 0x510   :  { %v6630_v26 = vadd.f32 %v2777_v18, %v2687_v25  ;;  %4515 = vrot.lane.b32.xlu0 %v4514_v9, %s4809_s25  ;;  %2910 = vrot.lane.b32.xlu1 %v6616_v32, %s4807_s24  ;;  %v2688_v53 = vadd.f32 %v2652_v51, %v2562_v8 }
 0x512   :  { %v4599_v10 = vpack.i.bf16 %v6630_v26, %v6616_v32  ;;  %v2756_v15 = vpop.permute.xlu1 %2755  ;;  %v2634_v57 = vpop.permute.xlu0 %2633 }
 0x513   :  { %v2778_v63 = vsel %vm752_vm0, %v2754_v24, %v2756_v15  ;;  %v2653_v42 = vsel %vm865_vm1, %v2632_v3, %v2634_v57 }
 0x514   :  { %v6639_v23 = vadd.f32 %v2778_v63, %v2688_v53  ;;  %v2689_v27 = vadd.f32 %v2653_v42, %v2563_v49 }
 0x516   :  { %v4519_v50 = vpack.i.bf16 %v6639_v23, %v6630_v26  ;;  %v2636_v19 = vpop.permute.xlu1 %2635  ;;  %v2758_v39 = vpop.permute.xlu0 %2757  ;;  %2914 = vrot.lane.b32.xlu1 %v6639_v23, %s4807_s24 }
 0x517   :  { %v2654_v6 = vsel %vm865_vm1, %v2634_v57, %v2636_v19  ;;  %v2779_v13 = vsel %vm752_vm0, %v2756_v15, %v2758_v39  ;;  %v7360_v57 = vld [vmem:[#allocation107_spill] sm:$0xff] }
 0x518   :  { %v6651_v14 = vadd.f32 %v2779_v13, %v2689_v27  ;;  %4520 = vrot.lane.b32.xlu0 %v4519_v50, %s4809_s25  ;;  %v2690_v45 = vadd.f32 %v2654_v6, %v2564_v40  ;;  %v2566_v63 = vmul.f32 %v6443_v44, %v7360_v57 }
 0x51a   :  { %v2638_v47 = vpop.permute.xlu1 %2637  ;;  %v2760_v52 = vpop.permute.xlu0 %2759  ;;  %2916 = vrot.lane.b32.xlu1 %v6651_v14, %s4807_s24 }
 0x51b   :  { %v2655_v41 = vsel %vm865_vm1, %v2636_v19, %v2638_v47  ;;  %v2780_v20 = vsel %vm752_vm0, %v2758_v39, %v2760_v52  ;;  %v2656_v15 = vsel %vm865_vm1, %v2638_v47, %v5832_v60 }
 0x51c   :  { %v2691_v5 = vadd.f32 %v2655_v41, %v2565_v12  ;;  %v6660_v9 = vadd.f32 %v2780_v20, %v2690_v45  ;;  %2912 = vrot.lane.b32.xlu0 %v6630_v26, %s4807_s24  ;;  %v2692_v29 = vadd.f32 %v2656_v15, %v2566_v63 }
 0x51e   :  { %v4524_v55 = vpack.i.bf16 %v6660_v9, %v6651_v14 }
 0x520   :  { %4525 = vrot.lane.b32.xlu0 %v4524_v55, %s4809_s25 }
 0x524   :  { %2918 = vrot.lane.b32.xlu0 %v6660_v9, %s4807_s24 }
 0x554   :  { %v2889_v21 = vpop.permute.xlu0 %2888 }
 0x555   :  { %v2924_v60 = vsel %vm865_vm1, %v5847_v30, %v2889_v21  ;;  %v4534_v40 = vpack.i.bf16 %v6523_v56, %v2889_v21 }
 0x55a   :  { %v4491_v25 = vpop.permute.xlu1 %4490 }
 0x55b   :  { %v4492_v3 = vunpack.i.l.bf16 %v4491_v25  ;;  %v4493_v44 = vunpack.i.h.bf16 %v4491_v25 }
 0x55c   :  { %v2893_v24 = vpop.permute.xlu0 %2892 }
 0x55d   :  { %v2870_v51 = vsel %vm1251_vm2, %v5824_v54, %v4492_v3  ;;  %v2871_v45 = vsel %vm1251_vm2, %v4492_v3, %v4493_v44 }
 0x55e   :  { %v4539_v18 = vpack.i.bf16 %v2870_v51, %v6509_v58  ;;  %v2891_v1 = vpop.permute.xlu1 %2890 }
 0x55f   :  { %v2925_v19 = vsel %vm865_vm1, %v2889_v21, %v2891_v1  ;;  %v2926_v47 = vsel %vm865_vm1, %v2891_v1, %v2893_v24 }
 0x560   :  { %4540 = vrot.lane.b32.xlu0 %v4539_v18, %s4810_s26  ;;  %v2762_v8 = vpop.permute.xlu0 %2761  ;;  %v4549_v6 = vpack.i.bf16 %v2925_v19, %v2924_v60 }
 0x561   :  { %v2781_v42 = vsel %vm752_vm0, %v2760_v52, %v2762_v8  ;;  %v4544_v52 = vpack.i.bf16 %v6515_v37, %v2871_v45 }
 0x562   :  { %v4496_v53 = vpop.permute.xlu1 %4495  ;;  %v6679_v27 = vadd.f32 %v2781_v42, %v2691_v5 }
 0x563   :  { %v4498_v13 = vunpack.i.h.bf16 %v4496_v53  ;;  %v4497_v17 = vunpack.i.l.bf16 %v4496_v53 }
 0x565   :  { %v2873_v12 = vsel %vm1251_vm2, %v4497_v17, %v4498_v13  ;;  %v2872_v21 = vsel %vm1251_vm2, %v4493_v44, %v4497_v17 }
 0x566   :  { %v2764_v49 = vpop.permute.xlu1 %2763  ;;  %v4564_v41 = vpack.i.bf16 %v4493_v44, %v2873_v12  ;;  %v4554_v51 = vpack.i.bf16 %v4492_v3, %v2872_v21 }
 0x567   :  { %v2782_v50 = vsel %vm752_vm0, %v2762_v8, %v2764_v49 }
 0x568   :  { %v6681_v58 = vadd.f32 %v2782_v50, %v2692_v29 }
 0x56a   :  { %v4529_v39 = vpack.i.bf16 %v6681_v58, %v6679_v27  ;;  %2922 = vrot.lane.b32.xlu0 %v6681_v58, %s4807_s24  ;;  %v4501_v48 = vpop.permute.xlu0 %4500  ;;  %v2895_v20 = vpop.permute.xlu1 %2894 }
 0x56b   :  { %v4503_v56 = vunpack.i.h.bf16 %v4501_v48  ;;  %v4502_v5 = vunpack.i.l.bf16 %v4501_v48  ;;  %v2927_v3 = vsel %vm865_vm1, %v2893_v24, %v2895_v20 }
 0x56c   :  { %4530 = vrot.lane.b32.xlu1 %v4529_v39, %s4809_s25 }
 0x56d   :  { %v2874_v25 = vsel %vm1251_vm2, %v4498_v13, %v4502_v5  ;;  %v2875_v37 = vsel %vm1251_vm2, %v4502_v5, %v4503_v56 }
 0x56e   :  { %4550 = vrot.lane.b32.xlu0 %v4549_v6, %s4810_s26  ;;  %v2897_v55 = vpop.permute.xlu0 %2896  ;;  %v2899_v18 = vpop.permute.xlu1 %2898  ;;  %v4569_v8 = vpack.i.bf16 %v2875_v37, %v2874_v25 }
 0x56f   :  { %v2928_v42 = vsel %vm865_vm1, %v2895_v20, %v2897_v55  ;;  %v2929_v22 = vsel %vm865_vm1, %v2897_v55, %v2899_v18 }
 0x570   :  { %4535 = vrot.lane.b32.xlu1 %v4534_v40, %s4810_s26 }
 0x572   :  { %3021 = vrot.lane.b32.xlu0 %v2926_v47, %s4810_s26  ;;  %v4506_v53 = vpop.permute.xlu0 %4505  ;;  %v2901_v57 = vpop.permute.xlu1 %2900 }
 0x573   :  { %v4507_v15 = vunpack.i.l.bf16 %v4506_v53  ;;  %v2930_v29 = vsel %vm865_vm1, %v2899_v18, %v2901_v57  ;;  %v4508_v43 = vunpack.i.h.bf16 %v4506_v53 }
 0x574   :  { %4545 = vrot.lane.b32.xlu1 %v4544_v52, %s4810_s26 }
 0x576   :  { %4565 = vrot.lane.b32.xlu0 %v4564_v41, %s4810_s26  ;;  %v2903_v50 = vpop.permute.xlu1 %2902 }
 0x577   :  { %v2931_v44 = vsel %vm865_vm1, %v2901_v57, %v2903_v50 }
 0x578   :  { %2920 = vrot.lane.b32.xlu1 %v6679_v27, %s4807_s24 }
 0x57a   :  { %3069 = vrot.lane.b32.xlu0 %v2891_v1, %s4810_s26  ;;  %v4511_v63 = vpop.permute.xlu0 %4510  ;;  %v2876_v1 = vsel %vm1251_vm2, %v4503_v56, %v4507_v15  ;;  %v2907_v60 = vpop.permute.xlu1 %2906 }
 0x57b   :  { %v4574_v49 = vpack.i.bf16 %v2876_v1, %v6555_v2  ;;  %v4513_v24 = vunpack.i.h.bf16 %v4511_v63  ;;  %v4512_v39 = vunpack.i.l.bf16 %v4511_v63  ;;  %v4619_v63 = vpack.i.bf16 %v6679_v27, %v6660_v9 }
 0x57c   :  { %4555 = vrot.lane.b32.xlu1 %v4554_v51, %s4810_s26 }
 0x57d   :  { %v2878_v13 = vsel %vm1251_vm2, %v4508_v43, %v4512_v39  ;;  %v2879_v16 = vsel %vm1251_vm2, %v4512_v39, %v4513_v24 }
 0x57e   :  { %4570 = vrot.lane.b32.xlu0 %v4569_v8, %s4810_s26  ;;  %v2905_v19 = vpop.permute.xlu0 %2904  ;;  %v4589_v40 = vpack.i.bf16 %v2879_v16, %v2878_v13  ;;  %v2909_v45 = vpop.permute.xlu1 %2908 }
 0x57f   :  { %v2932_v17 = vsel %vm865_vm1, %v2903_v50, %v2905_v19  ;;  %v2933_v20 = vsel %vm865_vm1, %v2905_v19, %v2907_v60 }
 0x580   :  { %4560 = vrot.lane.b32.xlu1 %v4559_v59, %s4810_s26  ;;  %v2877_v59 = vsel %vm1251_vm2, %v4507_v15, %v4508_v43 }
 0x581   :  { %v4584_v6 = vpack.i.bf16 %v2877_v59, %v6572_v0  ;;  %v2934_v0 = vsel %vm865_vm1, %v2907_v60, %v2909_v45 }
 0x582   :  { %3025 = vrot.lane.b32.xlu0 %v2928_v42, %s4810_s26  ;;  %v4516_v2 = vpop.permute.xlu0 %4515  ;;  %v2911_v41 = vpop.permute.xlu1 %2910 }
 0x583   :  { %v4517_v38 = vunpack.i.l.bf16 %v4516_v2  ;;  %v4518_v52 = vunpack.i.h.bf16 %v4516_v2  ;;  %v2935_v25 = vsel %vm865_vm1, %v2909_v45, %v2911_v41 }
 0x584   :  { %3023 = vrot.lane.b32.xlu1 %v2927_v3, %s4810_s26 }
 0x585   :  { %v2880_v48 = vsel %vm1251_vm2, %v4513_v24, %v4517_v38  ;;  %v2881_v56 = vsel %vm1251_vm2, %v4517_v38, %v4518_v52 }
 0x586   :  { %3029 = vrot.lane.b32.xlu0 %v2930_v29, %s4810_s26  ;;  %v4594_v12 = vpack.i.bf16 %v2880_v48, %v6596_v28  ;;  %v4604_v37 = vpack.i.bf16 %v2881_v56, %v6612_v4 }
 0x588   :  { %4575 = vrot.lane.b32.xlu1 %v4574_v49, %s4810_s26  ;;  %v2915_v21 = vpop.permute.xlu1 %2914 }
 0x58a   :  { %4580 = vrot.lane.b32.xlu0 %v4579_v34, %s4810_s26  ;;  %v4521_v34 = vpop.permute.xlu0 %4520 }
 0x58b   :  { %v4523_v5 = vunpack.i.h.bf16 %v4521_v34  ;;  %v4522_v55 = vunpack.i.l.bf16 %v4521_v34 }
 0x58c   :  { %3027 = vrot.lane.b32.xlu1 %v2929_v22, %s4810_s26  ;;  %v2917_v8 = vpop.permute.xlu1 %2916 }
 0x58d   :  { %v2882_v51 = vsel %vm1251_vm2, %v4518_v52, %v4522_v55  ;;  %v2883_v32 = vsel %vm1251_vm2, %v4522_v55, %v4523_v5  ;;  %v2938_v4 = vsel %vm865_vm1, %v2915_v21, %v2917_v8 }
 0x58e   :  { %3031 = vrot.lane.b32.xlu0 %v2931_v44, %s4810_s26  ;;  %v2913_v47 = vpop.permute.xlu0 %2912  ;;  %v4609_v18 = vpack.i.bf16 %v2883_v32, %v2882_v51 }
 0x58f   :  { %v2937_v3 = vsel %vm865_vm1, %v2913_v47, %v2915_v21 }
 0x590   :  { %4585 = vrot.lane.b32.xlu1 %v4584_v6, %s4810_s26 }
 0x592   :  { %3033 = vrot.lane.b32.xlu0 %v2932_v17, %s4810_s26  ;;  %v4526_v28 = vpop.permute.xlu0 %4525 }
 0x593   :  { %v4527_v26 = vunpack.i.l.bf16 %v4526_v28  ;;  %v4528_v57 = vunpack.i.h.bf16 %v4526_v28 }
 0x594   :  { %4590 = vrot.lane.b32.xlu1 %v4589_v40, %s4810_s26 }
 0x595   :  { %v2884_v53 = vsel %vm1251_vm2, %v4523_v5, %v4527_v26  ;;  %v2885_v1 = vsel %vm1251_vm2, %v4527_v26, %v4528_v57 }
 0x596   :  { %3037 = vrot.lane.b32.xlu0 %v2934_v0, %s4810_s26  ;;  %v4614_v15 = vpack.i.bf16 %v2884_v53, %v6639_v23  ;;  %v2919_v42 = vpop.permute.xlu0 %2918  ;;  %v4624_v23 = vpack.i.bf16 %v2885_v1, %v6651_v14 }
 0x597   :  { %v2939_v29 = vsel %vm865_vm1, %v2917_v8, %v2919_v42 }
 0x598   :  { %4595 = vrot.lane.b32.xlu1 %v4594_v12, %s4810_s26 }
 0x59a   :  { %4600 = vrot.lane.b32.xlu0 %v4599_v10, %s4810_s26  ;;  %v2936_v10 = vsel %vm865_vm1, %v2911_v41, %v2913_v47 }
 0x59c   :  { %3035 = vrot.lane.b32.xlu1 %v2933_v20, %s4810_s26 }
 0x59e   :  { %3039 = vrot.lane.b32.xlu0 %v2935_v25, %s4810_s26 }
 0x5a0   :  { %4605 = vrot.lane.b32.xlu1 %v4604_v37, %s4810_s26 }
 0x5a2   :  { %3041 = vrot.lane.b32.xlu0 %v2936_v10, %s4810_s26 }
 0x5a4   :  { %4610 = vrot.lane.b32.xlu1 %v4609_v18, %s4810_s26 }
 0x5a6   :  { %3045 = vrot.lane.b32.xlu0 %v2938_v4, %s4810_s26 }
 0x5a8   :  { %4615 = vrot.lane.b32.xlu1 %v4614_v15, %s4810_s26 }
 0x5aa   :  { %4620 = vrot.lane.b32.xlu0 %v4619_v63, %s4810_s26 }
 0x5ac   :  { %3043 = vrot.lane.b32.xlu1 %v2937_v3, %s4810_s26 }
 0x5ae   :  { %3047 = vrot.lane.b32.xlu0 %v2939_v29, %s4810_s26 }
 0x5b0   :  { %4625 = vrot.lane.b32.xlu1 %v4624_v23, %s4810_s26 }
 0x5d2   :  { %v4541_v9 = vpop.permute.xlu0 %4540 }
 0x5d3   :  { %v4543_v24 = vunpack.i.h.bf16 %v4541_v9  ;;  %v4542_v14 = vunpack.i.l.bf16 %v4541_v9 }
 0x5d5   :  { %v3088_v16 = vsel %vm1461_vm3, %v5949_v36, %v4543_v24  ;;  %v3071_v17 = vsel %vm1461_vm3, %v5945_v62, %v4542_v14 }
 0x5d6   :  { %v4176_v12 = vpack.c.bf16 %v3088_v16, %v5945_v62 }
 0x5dc   :  { %v6774_v27 = vpop.permute.xlu0 %2922 }
 0x5dd   :  { %v2945_v9 = vsel %vm865_vm1, %v6774_v27, %v5847_v30 }
 0x5de   :  { %v4531_v49 = vpop.permute.xlu1 %4530 }
 0x5df   :  { %v4532_v50 = vunpack.i.l.bf16 %v4531_v49  ;;  %v4533_v38 = vunpack.i.h.bf16 %v4531_v49 }
 0x5e0   :  { %v4551_v19 = vpop.permute.xlu0 %4550 }
 0x5e1   :  { %v2886_v43 = vsel %vm1251_vm2, %v4528_v57, %v4532_v50  ;;  %v4553_v2 = vunpack.i.h.bf16 %v4551_v19  ;;  %v4552_v44 = vunpack.i.l.bf16 %v4551_v19  ;;  %v2944_v20 = vsel %vm1251_vm2, %v4532_v50, %v4533_v38 }
 0x5e2   :  { %v4629_v22 = vpack.i.bf16 %v4532_v50, %v2886_v43  ;;  %v6777_v59 = vpop.permute.xlu1 %4535  ;;  %v4634_v25 = vpack.i.bf16 %v2944_v20, %v6681_v58  ;;  %v2946_v18 = vsel %vm1251_vm2, %v4533_v38, %v5824_v54 }
 0x5e3   :  { %v3107_v41 = vsel %vm1461_vm3, %v4552_v44, %v4553_v2  ;;  %v3106_v56 = vsel %vm1461_vm3, %v5964_v7, %v4552_v44  ;;  %v4537_v21 = vunpack.i.l.bf16 %v6777_v59  ;;  %v4538_v8 = vunpack.i.h.bf16 %v6777_v59 }
 0x5e4   :  { %v6779_v39 = vpop.permute.xlu0 %3021  ;;  %4630 = vrot.lane.b32.xlu1 %v4629_v22, %s4810_s26  ;;  %v4180_v37 = vpack.c.bf16 %v3071_v17, %v3106_v56 }
 0x5e5   :  { %v3128_v53 = vsel %vm1461_vm3, %v4537_v21, %v4553_v2  ;;  %v3108_v4 = vsel %vm1461_vm3, %v4553_v2, %v6779_v39 }
 0x5e6   :  { %v4546_v60 = vpop.permute.xlu1 %4545 }
 0x5e7   :  { %v4548_v6 = vunpack.i.h.bf16 %v4546_v60  ;;  %v4547_v13 = vunpack.i.l.bf16 %v4546_v60 }
 0x5e8   :  { %v6784_v34 = vpop.permute.xlu0 %4565 }
 0x5e9   :  { %v3089_v40 = vsel %vm1461_vm3, %v4543_v24, %v4547_v13  ;;  %v6790_v45 = vsel %vm1461_vm3, %v4542_v14, %v4548_v6  ;;  %v4567_v26 = vunpack.i.l.bf16 %v6784_v34  ;;  %v4568_v15 = vunpack.i.h.bf16 %v6784_v34 }
 0x5ea   :  { %v2921_v48 = vpop.permute.xlu1 %2920  ;;  %v4174_v0 = vpack.c.bf16 %v3089_v40, %v3071_v17  ;;  %v4178_v55 = vpack.c.bf16 %v6790_v45, %v3107_v41  ;;  %v3073_v23 = vsel %vm1461_vm3, %v4548_v6, %v4538_v8 }
 0x5eb   :  { %v2940_v47 = vsel %vm865_vm1, %v2919_v42, %v2921_v48  ;;  %v2941_v52 = vsel %vm865_vm1, %v2921_v48, %v6774_v27  ;;  %v4196_v6 = vpack.c.bf16 %v3073_v23, %v3108_v4  ;;  %v6842_v48 = vld [vmem:[#allocation7] sm:$0xff] }
 0x5ec   :  { %3051 = vrot.lane.b32.xlu0 %v2941_v52, %s4810_s26  ;;  %v6801_v5 = vpop.permute.xlu0 %3069  ;;  %4175 = vmatprep.subr.bf16.mxu1 %v4174_v0 }
 0x5ed   :  { %3049 = vrot.lane.b32.xlu1 %v2940_v47, %s4810_s26  ;;  %4177 = vmatpush1.bf16.msra.mxu1 %v4176_v12  ;;  %v3134_v0 = vsel %vm1461_vm3, %v6801_v5, %v6779_v39 }
 0x5ee   :  { %4179 = vmatprep.subr.bf16.mxu1 %v4178_v55  ;;  %v4556_v28 = vpop.permute.xlu1 %4555 }
 0x5ef   :  { %v4558_v51 = vunpack.i.h.bf16 %v4556_v28  ;;  %v4557_v32 = vunpack.i.l.bf16 %v4556_v28 }
 0x5f0   :  { %3059 = vrot.lane.b32.xlu0 %v4533_v38, %s4810_s26  ;;  %v6809_v10 = vpop.permute.xlu0 %4570 }
 0x5f1   :  { %v3125_v58 = vsel %vm1461_vm3, %v4558_v51, %v4547_v13  ;;  %4635 = vrot.lane.b32.xlu1 %v4634_v25, %s4810_s26  ;;  %4181 = vmatpush1.bf16.msra.mxu1 %v4180_v37  ;;  %v3090_v42 = vsel %vm1461_vm3, %v4547_v13, %v4557_v32  ;;  %v3091_v54 = vsel %vm1461_vm3, %v4557_v32, %v4567_v26  ;;  %v4572_v43 = vunpack.i.l.bf16 %v6809_v10 }
 0x5f2   :  { %v4184_v57 = vpack.c.bf16 %v3128_v53, %v3125_v58  ;;  %v4561_v63 = vpop.permute.xlu1 %4560  ;;  %v4182_v1 = vpack.c.bf16 %v3108_v4, %v3090_v42  ;;  %v4192_v29 = vpack.c.bf16 %v3090_v42, %v6790_v45  ;;  %v4186_v50 = vpack.c.bf16 %v3091_v54, %v3073_v23 }
 0x5f3   :  { %v4562_v3 = vunpack.i.l.bf16 %v4561_v63  ;;  %v3131_v19 = vsel %vm1461_vm3, %v4568_v15, %v4557_v32  ;;  %v4563_v22 = vunpack.i.h.bf16 %v4561_v63  ;;  %v4573_v60 = vunpack.i.h.bf16 %v6809_v10 }
 0x5f4   :  { %3067 = vrot.lane.b32.xlu0 %v2946_v18, %s4810_s26  ;;  %v3026_v49 = vpop.permute.xlu0 %3025  ;;  %4183 = vmatprep.subr.bf16.mxu1 %v4182_v1  ;;  %v4188_v14 = vpack.c.bf16 %v3131_v19, %v6790_v45  ;;  %v3092_v13 = vsel %vm1461_vm3, %v4567_v26, %v4572_v43 }
 0x5f5   :  { %3063 = vrot.lane.b32.xlu1 %v2945_v9, %s4810_s26  ;;  %4191 = vmatprep.subr.bf16.mxu0 %v4186_v50  ;;  %v3074_v27 = vsel %vm1461_vm3, %v4538_v8, %v4562_v3  ;;  %v3075_v16 = vsel %vm1461_vm3, %v4562_v3, %v4563_v22  ;;  %v3093_v45 = vsel %vm1461_vm3, %v4572_v43, %v4573_v60 }
 0x5f6   :  { %4185 = vmatpush1.bf16.msra.mxu1 %v4184_v57  ;;  %v3024_v59 = vpop.permute.xlu1 %3023  ;;  %4193 = vmatpush1.bf16.msra.mxu0 %v4192_v29  ;;  %v4202_v12 = vpack.c.bf16 %v3093_v45, %v3075_v16  ;;  %v4204_v41 = vpack.c.bf16 %v3092_v13, %v3074_v27 }
 0x5f7   :  { %v3110_v24 = vsel %vm1461_vm3, %v3024_v59, %v3026_v49  ;;  %4187 = vmatprep.subr.bf16.mxu1 %v4186_v50  ;;  %v3109_v30 = vsel %vm1461_vm3, %v6779_v39, %v3024_v59 }
 0x5f8   :  { %v3030_v2 = vpop.permute.xlu0 %3029  ;;  %v4194_v44 = vpack.c.bf16 %v3074_v27, %v3109_v30  ;;  %v4198_v34 = vpack.c.bf16 %v3110_v24, %v3092_v13  ;;  %v4200_v52 = vpack.c.bf16 %v3109_v30, %v3091_v54  ;;  %v4212_v5 = vpack.c.bf16 %v3075_v16, %v3110_v24 }
 0x5fa   :  { %4189 = vmatpush1.bf16.msra.mxu1 %v4188_v14  ;;  %v4576_v38 = vpop.permute.xlu1 %4575  ;;  %4195 = vmatprep.subr.bf16.mxu0 %v4194_v44 }
 0x5fb   :  { %v4577_v17 = vunpack.i.l.bf16 %v4576_v38  ;;  %3220 = vmatprep.subr.mxu1 %v3109_v30  ;;  %4197 = vmatpush1.bf16.msra.mxu0 %v4196_v6  ;;  %v4578_v47 = vunpack.i.h.bf16 %v4576_v38 }
 0x5fc   :  { %v6839_v40 = vpop.permute.xlu0 %4580  ;;  %4199 = vmatprep.subr.bf16.mxu0 %v4198_v34 }
 0x5fd   :  { %v3076_v55 = vsel %vm1461_vm3, %v4563_v22, %v4577_v17  ;;  %v3094_v37 = vsel %vm1461_vm3, %v4573_v60, %v4578_v47  ;;  %v4582_v18 = vunpack.i.l.bf16 %v6839_v40  ;;  %v4583_v29 = vunpack.i.h.bf16 %v6839_v40 }
 0x5fe   :  { %3221 = vmatpush1.msra.mxu1 %v3134_v0  ;;  %v3028_v20 = vpop.permute.xlu1 %3027  ;;  %v4220_v1 = vpack.c.bf16 %v3094_v37, %v3076_v55 }
 0x5ff   :  { %v3111_v56 = vsel %vm1461_vm3, %v3026_v49, %v3028_v20  ;;  %4207 = vmatprep.subr.bf16.mxu1 %v4202_v12  ;;  %4021 = vmatmul.mubr.msk.f32.vlgmr.msra.gmra.mrb[8].mxu1 %vm1593_vm4, %v6842_v48  ;;  %v3112_v21 = vsel %vm1461_vm3, %v3028_v20, %v3030_v2 }
 0x600   :  { %4201 = vmatpush1.bf16.msra.mxu0 %v4200_v52  ;;  %4209 = vmatpush1.bf16.msra.mxu1 %v4204_v41  ;;  %v3032_v28 = vpop.permute.xlu0 %3031  ;;  %v4210_v39 = vpack.c.bf16 %v3076_v55, %v3111_v56  ;;  %v4214_v26 = vpack.c.bf16 %v3112_v21, %v3094_v37  ;;  %v4216_v4 = vpack.c.bf16 %v3111_v56, %v3093_v45 }
 0x601   :  { %4203 = vmatprep.subr.bf16.mxu0 %v4202_v12  ;;  %3410 = vmatprep.mubr.f32.mxu1 %v7238_v35  ;;  %v3113_v3 = vsel %vm1461_vm3, %v3030_v2, %v3032_v28 }
 0x602   :  { %v4586_v25 = vpop.permute.xlu1 %4585  ;;  %4211 = vmatprep.subr.bf16.mxu1 %v4210_v39 }
 0x603   :  { %v4588_v51 = vunpack.i.h.bf16 %v4586_v25  ;;  %v4587_v32 = vunpack.i.l.bf16 %v4586_v25 }
 0x604   :  { %4205 = vmatpush1.bf16.msra.mxu0 %v4204_v41  ;;  %4213 = vmatpush1.bf16.msra.mxu1 %v4212_v5  ;;  %v3034_v10 = vpop.permute.xlu0 %3033 }
 0x605   :  { %3291 = vmatprep.subr.mxu0 %v3111_v56  ;;  %4215 = vmatprep.subr.bf16.mxu1 %v4214_v26  ;;  %v3077_v8 = vsel %vm1461_vm3, %v4577_v17, %v4587_v32  ;;  %v3095_v53 = vsel %vm1461_vm3, %v4578_v47, %v4588_v51  ;;  %v3078_v63 = vsel %vm1461_vm3, %v4587_v32, %v4582_v18 }
 0x606   :  { %v4591_v58 = vpop.permute.xlu1 %4590  ;;  %v4218_v15 = vpack.c.bf16 %v3095_v53, %v3077_v8  ;;  %v4226_v9 = vpack.c.bf16 %v3078_v63, %v3113_v3  ;;  %v3114_v22 = vsel %vm1461_vm3, %v3032_v28, %v3034_v10  ;;  %v4228_v59 = vpack.c.bf16 %v3077_v8, %v3112_v21 }
 0x607   :  { %v4592_v57 = vunpack.i.l.bf16 %v4591_v58  ;;  %v4593_v42 = vunpack.i.h.bf16 %v4591_v58  ;;  %v4232_v16 = vpack.c.bf16 %v3113_v3, %v3095_v53 }
 0x608   :  { %3292 = vmatpush1.msra.mxu0 %v3110_v24  ;;  %4217 = vmatpush1.bf16.msra.mxu1 %v4216_v4  ;;  %v6858_v54 = vpop.permute.xlu0 %3037  ;;  %v3079_v24 = vsel %vm1461_vm3, %v4582_v18, %v4583_v29 }
 0x609   :  { %4219 = vmatprep.subr.bf16.mxu1 %v4218_v15  ;;  %4223 = vmatprep.subr.bf16.mxu0 %v4218_v15  ;;  %v3096_v50 = vsel %vm1461_vm3, %v4588_v51, %v4592_v57  ;;  %v3097_v43 = vsel %vm1461_vm3, %v4592_v57, %v4593_v42  ;;  %v4244_v0 = vpack.c.bf16 %v3079_v24, %v3114_v22 }
 0x60a   :  { %4022 = vmatmul.mubr.msk.f32.vlgmr.msra.gmra.mrb[10].mxu0 %vm1593_vm4, %v6842_v48  ;;  %v4596_v23 = vpop.permute.xlu1 %4595  ;;  %v4230_v27 = vpack.c.bf16 %v3114_v22, %v3096_v50  ;;  %v4234_v60 = vpack.c.bf16 %v3097_v43, %v3079_v24  ;;  %v4236_v6 = vpack.c.bf16 %v3096_v50, %v3078_v63 }
 0x60b   :  { %4225 = vmatpush1.bf16.msra.mxu0 %v4220_v1  ;;  %v4597_v49 = vunpack.i.l.bf16 %v4596_v23  ;;  %3481 = vmatprep.mubr.f32.mxu0 %v7238_v35  ;;  %v4598_v44 = vunpack.i.h.bf16 %v4596_v23 }
 0x60c   :  { %4227 = vmatprep.subr.bf16.mxu0 %v4226_v9  ;;  %4221 = vmatpush1.bf16.msra.mxu1 %v4220_v1  ;;  %v6866_v19 = vpop.permute.xlu0 %4600 }
 0x60d   :  { %3362 = vmatprep.subr.mxu1 %v3113_v3  ;;  %v3080_v2 = vsel %vm1461_vm3, %v4583_v29, %v4597_v49  ;;  %v3098_v12 = vsel %vm1461_vm3, %v4593_v42, %v4598_v44  ;;  %v4602_v56 = vunpack.i.l.bf16 %v6866_v19  ;;  %v4603_v26 = vunpack.i.h.bf16 %v6866_v19 }
 0x60e   :  { %v3036_v30 = vpop.permute.xlu1 %3035  ;;  %v4252_v32 = vpack.c.bf16 %v3098_v12, %v3080_v2 }
 0x60f   :  { %4229 = vmatpush1.bf16.msra.mxu0 %v4228_v59  ;;  %v3115_v14 = vsel %vm1461_vm3, %v3034_v10, %v3036_v30  ;;  %v3116_v38 = vsel %vm1461_vm3, %v3036_v30, %v6858_v54  ;;  %v3083_v63 = vsel %vm1461_vm3, %v4602_v56, %v4603_v26 }
 0x610   :  { %4231 = vmatprep.subr.bf16.mxu0 %v4230_v27  ;;  %3363 = vmatpush1.msra.mxu1 %v3112_v21  ;;  %v4242_v13 = vpack.c.bf16 %v3080_v2, %v3115_v14  ;;  %v3040_v34 = vpop.permute.xlu0 %3039  ;;  %v4246_v47 = vpack.c.bf16 %v3116_v38, %v3098_v12  ;;  %v4248_v55 = vpack.c.bf16 %v3115_v14, %v3097_v43 }
 0x611   :  { %4239 = vmatprep.subr.bf16.mxu1 %v4234_v60  ;;  %4023 = vmatmul.mubr.msk.f32.vlgmr.msra.gmra.mrb[10].mxu1 %vm1593_vm4, %v6842_v48  ;;  %v3117_v51 = vsel %vm1461_vm3, %v6858_v54, %v3040_v34 }
 0x612   :  { %4241 = vmatpush1.bf16.msra.mxu1 %v4236_v6  ;;  %v4606_v17 = vpop.permute.xlu1 %4605  ;;  %3552 = vmatprep.mubr.f32.mxu1 %v7238_v35 }
 0x613   :  { %4233 = vmatpush1.bf16.msra.mxu0 %v4232_v16  ;;  %v4608_v40 = vunpack.i.h.bf16 %v4606_v17  ;;  %v4607_v45 = vunpack.i.l.bf16 %v4606_v17  ;;  %4243 = vmatprep.subr.bf16.mxu1 %v4242_v13 }
 0x614   :  { %4235 = vmatprep.subr.bf16.mxu0 %v4234_v60  ;;  %v3042_v21 = vpop.permute.xlu0 %3041 }
 0x615   :  { %v3081_v41 = vsel %vm1461_vm3, %v4597_v49, %v4607_v45  ;;  %v3099_v20 = vsel %vm1461_vm3, %v4598_v44, %v4608_v40  ;;  %v3082_v5 = vsel %vm1461_vm3, %v4607_v45, %v4602_v56  ;;  %v3118_v15 = vsel %vm1461_vm3, %v3040_v34, %v3042_v21 }
 0x616   :  { %4245 = vmatpush1.bf16.msra.mxu1 %v4244_v0  ;;  %v4611_v52 = vpop.permute.xlu1 %4610  ;;  %v4250_v39 = vpack.c.bf16 %v3099_v20, %v3081_v41  ;;  %v4258_v10 = vpack.c.bf16 %v3082_v5, %v3117_v51  ;;  %v4260_v57 = vpack.c.bf16 %v3081_v41, %v3116_v38  ;;  %v4264_v49 = vpack.c.bf16 %v3117_v51, %v3099_v20 }
 0x617   :  { %4237 = vmatpush1.bf16.msra.mxu0 %v4236_v6  ;;  %4247 = vmatprep.subr.bf16.mxu1 %v4246_v47  ;;  %v4612_v28 = vunpack.i.l.bf16 %v4611_v52  ;;  %v4613_v25 = vunpack.i.h.bf16 %v4611_v52  ;;  %v4276_v24 = vpack.c.bf16 %v3083_v63, %v3118_v15 }
 0x618   :  { %3433 = vmatprep.subr.mxu0 %v3115_v14  ;;  %v3046_v8 = vpop.permute.xlu0 %3045 }
 0x619   :  { %v3100_v18 = vsel %vm1461_vm3, %v4608_v40, %v4612_v28  ;;  %v3101_v58 = vsel %vm1461_vm3, %v4612_v28, %v4613_v25 }
 0x61a   :  { %4249 = vmatpush1.bf16.msra.mxu1 %v4248_v55  ;;  %v4616_v37 = vpop.permute.xlu1 %4615  ;;  %v4262_v54 = vpack.c.bf16 %v3118_v15, %v3100_v18  ;;  %v4266_v3 = vpack.c.bf16 %v3101_v58, %v3083_v63  ;;  %v4268_v29 = vpack.c.bf16 %v3100_v18, %v3082_v5 }
 0x61b   :  { %3434 = vmatpush1.msra.mxu0 %v3114_v22  ;;  %4251 = vmatprep.subr.bf16.mxu1 %v4250_v39  ;;  %v4617_v53 = vunpack.i.l.bf16 %v4616_v37  ;;  %v4618_v1 = vunpack.i.h.bf16 %v4616_v37 }
 0x61c   :  { %4255 = vmatprep.subr.bf16.mxu0 %v4250_v39  ;;  %4024 = vmatmul.mubr.msk.f32.vlgmr.msra.gmra.mrb[12].mxu0 %vm1593_vm4, %v6842_v48  ;;  %v6897_v19 = vpop.permute.xlu0 %4620 }
 0x61d   :  { %4257 = vmatpush1.bf16.msra.mxu0 %v4252_v32  ;;  %3623 = vmatprep.mubr.f32.mxu0 %v7238_v35  ;;  %v3084_v9 = vsel %vm1461_vm3, %v4603_v26, %v4617_v53  ;;  %v3102_v30 = vsel %vm1461_vm3, %v4613_v25, %v4618_v1  ;;  %v4622_v2 = vunpack.i.l.bf16 %v6897_v19  ;;  %v4623_v45 = vunpack.i.h.bf16 %v6897_v19 }
 0x61e   :  { %4259 = vmatprep.subr.bf16.mxu0 %v4258_v10  ;;  %4253 = vmatpush1.bf16.msra.mxu1 %v4252_v32  ;;  %v3044_v4 = vpop.permute.xlu1 %3043  ;;  %v4284_v34 = vpack.c.bf16 %v3102_v30, %v3084_v9 }
 0x61f   :  { %3504 = vmatprep.subr.mxu1 %v3117_v51  ;;  %v3119_v42 = vsel %vm1461_vm3, %v3042_v21, %v3044_v4  ;;  %v3120_v43 = vsel %vm1461_vm3, %v3044_v4, %v3046_v8  ;;  %v3087_v41 = vsel %vm1461_vm3, %v4622_v2, %v4623_v45 }
 0x620   :  { %v4274_v50 = vpack.c.bf16 %v3084_v9, %v3119_v42  ;;  %v4278_v27 = vpack.c.bf16 %v3120_v43, %v3102_v30  ;;  %v4280_v44 = vpack.c.bf16 %v3119_v42, %v3101_v58  ;;  %v3048_v6 = vpop.permute.xlu0 %3047 }
 0x621   :  { %4261 = vmatpush1.bf16.msra.mxu0 %v4260_v57 }
 0x622   :  { %4263 = vmatprep.subr.bf16.mxu0 %v4262_v54  ;;  %3505 = vmatpush1.msra.mxu1 %v3116_v38  ;;  %v4626_v23 = vpop.permute.xlu1 %4625  ;;  %v3121_v38 = vsel %vm1461_vm3, %v3046_v8, %v3048_v6 }
 0x623   :  { %4271 = vmatprep.subr.bf16.mxu1 %v4266_v3  ;;  %4025 = vmatmul.mubr.msk.f32.vlgmr.msra.gmra.mrb[12].mxu1 %vm1593_vm4, %v6842_v48  ;;  %v4628_v22 = vunpack.i.h.bf16 %v4626_v23  ;;  %v4627_v59 = vunpack.i.l.bf16 %v4626_v23 }
 0x624   :  { %4273 = vmatpush1.bf16.msra.mxu1 %v4268_v29  ;;  %3694 = vmatprep.mubr.f32.mxu1 %v7238_v35 }
 0x625   :  { %4265 = vmatpush1.bf16.msra.mxu0 %v4264_v49  ;;  %4275 = vmatprep.subr.bf16.mxu1 %v4274_v50  ;;  %v3085_v14 = vsel %vm1461_vm3, %v4617_v53, %v4627_v59  ;;  %v3103_v60 = vsel %vm1461_vm3, %v4618_v1, %v4628_v22  ;;  %v3086_v16 = vsel %vm1461_vm3, %v4627_v59, %v4622_v2 }
 0x626   :  { %4267 = vmatprep.subr.bf16.mxu0 %v4266_v3  ;;  %v4282_v13 = vpack.c.bf16 %v3103_v60, %v3085_v14  ;;  %v4290_v17 = vpack.c.bf16 %v3086_v16, %v3121_v38  ;;  %v4292_v40 = vpack.c.bf16 %v3085_v14, %v3120_v43  ;;  %v4296_v5 = vpack.c.bf16 %v3121_v38, %v3103_v60 }
 0x628   :  { %4277 = vmatpush1.bf16.msra.mxu1 %v4276_v24 }
 0x629   :  { %4269 = vmatpush1.bf16.msra.mxu0 %v4268_v29  ;;  %4279 = vmatprep.subr.bf16.mxu1 %v4278_v27 }
 0x62a   :  { %3575 = vmatprep.subr.mxu0 %v3119_v42 }
 0x62c   :  { %4281 = vmatpush1.bf16.msra.mxu1 %v4280_v44 }
 0x62d   :  { %3576 = vmatpush1.msra.mxu0 %v3118_v15  ;;  %4283 = vmatprep.subr.bf16.mxu1 %v4282_v13 }
 0x62e   :  { %4287 = vmatprep.subr.bf16.mxu0 %v4282_v13  ;;  %4026 = vmatmul.mubr.msk.f32.vlgmr.msra.gmra.mrb[14].mxu0 %vm1593_vm4, %v6842_v48 }
 0x62f   :  { %4289 = vmatpush1.bf16.msra.mxu0 %v4284_v34  ;;  %3765 = vmatprep.mubr.f32.mxu0 %v7238_v35 }
 0x630   :  { %4291 = vmatprep.subr.bf16.mxu0 %v4290_v17  ;;  %4285 = vmatpush1.bf16.msra.mxu1 %v4284_v34 }
 0x631   :  { %3646 = vmatprep.subr.mxu1 %v3121_v38 }
 0x633   :  { %4293 = vmatpush1.bf16.msra.mxu0 %v4292_v40 }
 0x634   :  { %3647 = vmatpush1.msra.mxu1 %v3120_v43 }
 0x635   :  { %4027 = vmatmul.mubr.msk.f32.vlgmr.msra.gmra.mrb[14].mxu1 %vm1593_vm4, %v6842_v48 }
 0x636   :  { %3836 = vmatprep.mubr.f32.mxu1 %v7238_v35 }
 0x656   :  { %v4631_v0 = vpop.permute.xlu1 %4630 }
 0x657   :  { %v4633_v12 = vunpack.i.h.bf16 %v4631_v0  ;;  %v4632_v47 = vunpack.i.l.bf16 %v4631_v0 }
 0x659   :  { %v3104_v52 = vsel %vm1461_vm3, %v4628_v22, %v4632_v47  ;;  %v3105_v20 = vsel %vm1461_vm3, %v4632_v47, %v4633_v12 }
 0x65a   :  { %v4300_v56 = vpack.c.bf16 %v3104_v52, %v3086_v16  ;;  %v4302_v55 = vpack.c.bf16 %v3105_v20, %v3087_v41 }
 0x65c   :  { %4303 = vmatprep.subr.bf16.mxu1 %v4302_v55 }
 0x65d   :  { %4305 = vmatpush1.bf16.msra.mxu1 %v4300_v56 }
 0x65e   :  { %v3052_v21 = vpop.permute.xlu0 %3051 }
 0x65f   :  { %v3050_v28 = vpop.permute.xlu1 %3049 }
 0x660   :  { %v3122_v39 = vsel %vm1461_vm3, %v3048_v6, %v3050_v28  ;;  %v3123_v18 = vsel %vm1461_vm3, %v3050_v28, %v3052_v21 }
 0x661   :  { %v4294_v35 = vpack.c.bf16 %v3122_v39, %v3104_v52  ;;  %v4308_v63 = vpack.c.bf16 %v3087_v41, %v3122_v39 }
 0x662   :  { %v3060_v25 = vpop.permute.xlu0 %3059 }
 0x663   :  { %v4636_v37 = vpop.permute.xlu1 %4635  ;;  %4295 = vmatprep.subr.bf16.mxu0 %v4294_v35 }
 0x664   :  { %v4638_v51 = vunpack.i.h.bf16 %v4636_v37  ;;  %v4637_v32 = vunpack.i.l.bf16 %v4636_v37  ;;  %4297 = vmatpush1.bf16.msra.mxu0 %v4296_v5 }
 0x666   :  { %v3124_v26 = vsel %vm1461_vm3, %v4623_v45, %v4637_v32  ;;  %v3126_v10 = vsel %vm1461_vm3, %v4632_v47, %v4638_v51  ;;  %v3068_v4 = vpop.permute.xlu0 %3067  ;;  %v3127_v58 = vsel %vm1461_vm3, %v4638_v51, %v3060_v25  ;;  %v3130_v3 = vsel %vm1461_vm3, %v4637_v32, %v5945_v62  ;;  %v7362_v47 = vld [vmem:[#allocation109_spill] sm:$0xff]  ;;  %v7364_v25 = vld [vmem:[#allocation111_spill] sm:$0xff]  ;;  %v7365_v32 = vld [vmem:[#allocation112_spill] sm:$0xff] }
 0x667   :  { %v3064_v8 = vpop.permute.xlu1 %3063  ;;  %v4298_v53 = vpack.c.bf16 %v3126_v10, %v3087_v41  ;;  %v4306_v57 = vpack.c.bf16 %v3124_v26, %v3123_v18  ;;  %v3133_v54 = vsel %vm1461_vm3, %v3068_v4, %v5949_v36  ;;  %v4312_v1 = vpack.c.bf16 %v3123_v18, %v3126_v10 }
 0x668   :  { %v3129_v15 = vsel %vm1461_vm3, %v3052_v21, %v3064_v8  ;;  %v3132_v29 = vsel %vm1461_vm3, %v4638_v51, %v3068_v4  ;;  %v4314_v23 = vpack.c.bf16 %v3133_v54, %v3130_v3  ;;  %v3135_v36 = vsel %vm1461_vm3, %v3064_v8, %v5964_v7  ;;  %v7367_v54 = vld [vmem:[#allocation114_spill] sm:$0xff] }
 0x669   :  { %v4310_v42 = vpack.c.bf16 %v3129_v15, %v3127_v58  ;;  %4299 = vmatprep.subr.bf16.mxu0 %v4298_v53  ;;  %4307 = vmatprep.subr.bf16.mxu1 %v4306_v57  ;;  %v4316_v9 = vpack.c.bf16 %v3132_v29, %v3124_v26  ;;  %v7366_v57 = vld [vmem:[#allocation113_spill] sm:$0xff] }
 0x66a   :  { %4301 = vmatpush1.bf16.msra.mxu0 %v4300_v56  ;;  %4309 = vmatpush1.bf16.msra.mxu1 %v4308_v63 }
 0x66b   :  { %3717 = vmatprep.subr.mxu0 %v3123_v18  ;;  %4311 = vmatprep.subr.bf16.mxu1 %v4310_v42 }
 0x66e   :  { %3718 = vmatpush1.msra.mxu0 %v3122_v39  ;;  %4313 = vmatpush1.bf16.msra.mxu1 %v4312_v1 }
 0x66f   :  { %4028 = vmatmul.mubr.msk.f32.vlgmr.msra.gmra.mrb[16].mxu0 %vm1593_vm4, %v6842_v48  ;;  %4315 = vmatprep.subr.bf16.mxu1 %v4314_v23 }
 0x672   :  { %4317 = vmatpush1.bf16.msra.mxu1 %v4316_v9 }
 0x673   :  { %3788 = vmatprep.subr.mxu1 %v3135_v36 }
 0x676   :  { %3789 = vmatpush1.msra.mxu1 %v3129_v15 }
 0x677   :  { %4029 = vmatmul.mubr.msk.f32.vlgmr.msra.gmra.mrb[16].mxu1 %vm1593_vm4, %v6842_v48 }
 0x6d2   :  { %v6934_v62 = vpop.f32.mrb[8].mxu1 }
 0x6d3   :  { %v3843_v49 = vmul.f32 %v6934_v62, %v6082_v31  ;;  %v6938_v50 = vpop.f32.mrb[9].mxu1 }
 0x6d4   :  { %v3844_v19 = vmul.f32 %v6938_v50, %v6085_v11 }
 0x6d5   :  { %v3881_v43 = vmul.f32 %v3843_v49, %v6934_v62 }
 0x6d6   :  { %v3861_v22 = vadd.f32 %v3844_v19, %v3843_v49  ;;  %v3882_v7 = vmul.f32 %v3844_v19, %v6938_v50 }
 0x6d8   :  { %v3899_v59 = vadd.f32 %v3882_v7, %v3881_v43  ;;  %v7368_v43 = vld [vmem:[#allocation115_spill] sm:$0xff] }
 0x6dd   :  { %v6944_v24 = vpop.f32.mrb[10].mxu0 }
 0x6de   :  { %v3845_v48 = vmul.f32 %v6944_v24, %v6098_v46  ;;  %v6948_v30 = vpop.f32.mrb[11].mxu0  ;;  %v7361_v46 = vld [vmem:[#allocation108_spill] sm:$0xff] }
 0x6df   :  { %v3846_v31 = vmul.f32 %v6948_v30, %v6101_v33 }
 0x6e0   :  { %v3862_v27 = vadd.f32 %v3861_v22, %v3845_v48  ;;  %v3883_v14 = vmul.f32 %v3845_v48, %v6944_v24 }
 0x6e1   :  { %v3884_v11 = vmul.f32 %v3846_v31, %v6948_v30 }
 0x6e2   :  { %v3900_v60 = vadd.f32 %v3899_v59, %v3883_v14  ;;  %v3863_v2 = vadd.f32 %v3862_v27, %v3846_v31  ;;  %v7369_v59 = vld [vmem:[#allocation116_spill] sm:$0xff] }
 0x6e4   :  { %v3901_v44 = vadd.f32 %v3900_v60, %v3884_v11  ;;  %v6954_v6 = vpop.f32.mrb[10].mxu1 }
 0x6e5   :  { %v3847_v13 = vmul.f32 %v6954_v6, %v6113_v61  ;;  %v6958_v16 = vpop.f32.mrb[11].mxu1  ;;  %v7363_v61 = vld [vmem:[#allocation110_spill] sm:$0xff] }
 0x6e6   :  { %v3848_v38 = vmul.f32 %v6958_v16, %v7361_v46 }
 0x6e7   :  { %v3864_v34 = vadd.f32 %v3863_v2, %v3847_v13  ;;  %v3885_v33 = vmul.f32 %v3847_v13, %v6954_v6  ;;  %v7370_v13 = vld [vmem:[#allocation117_spill] sm:$0xff] }
 0x6e8   :  { %v3886_v17 = vmul.f32 %v3848_v38, %v6958_v16 }
 0x6e9   :  { %v3902_v40 = vadd.f32 %v3901_v44, %v3885_v33  ;;  %v3865_v45 = vadd.f32 %v3864_v34, %v3848_v38  ;;  %v7371_v34 = vld [vmem:[#allocation118_spill] sm:$0xff] }
 0x6eb   :  { %v3903_v0 = vadd.f32 %v3902_v40, %v3886_v17 }
 0x6ef   :  { %v6964_v12 = vpop.f32.mrb[12].mxu0 }
 0x6f0   :  { %v3849_v52 = vmul.f32 %v6964_v12, %v7362_v47  ;;  %v6968_v41 = vpop.f32.mrb[13].mxu0 }
 0x6f1   :  { %v3850_v20 = vmul.f32 %v6968_v41, %v7363_v61 }
 0x6f2   :  { %v3866_v56 = vadd.f32 %v3865_v45, %v3849_v52  ;;  %v3887_v55 = vmul.f32 %v3849_v52, %v6964_v12 }
 0x6f3   :  { %v3888_v21 = vmul.f32 %v3850_v20, %v6968_v41 }
 0x6f4   :  { %v3904_v28 = vadd.f32 %v3903_v0, %v3887_v55  ;;  %v3867_v39 = vadd.f32 %v3866_v56, %v3850_v20  ;;  %v7372_v20 = vld [vmem:[#allocation119_spill] sm:$0xff] }
 0x6f6   :  { %v3905_v35 = vadd.f32 %v3904_v28, %v3888_v21  ;;  %v6974_v5 = vpop.f32.mrb[12].mxu1  ;;  %v7373_v21 = vld [vmem:[#allocation120_spill] sm:$0xff] }
 0x6f7   :  { %v3851_v37 = vmul.f32 %v6974_v5, %v7364_v25  ;;  %v6978_v51 = vpop.f32.mrb[13].mxu1 }
 0x6f8   :  { %v3852_v26 = vmul.f32 %v6978_v51, %v7365_v32 }
 0x6f9   :  { %v3868_v10 = vadd.f32 %v3867_v39, %v3851_v37  ;;  %v3889_v18 = vmul.f32 %v3851_v37, %v6974_v5 }
 0x6fa   :  { %v3890_v8 = vmul.f32 %v3852_v26, %v6978_v51 }
 0x6fb   :  { %v3906_v53 = vadd.f32 %v3905_v35, %v3889_v18  ;;  %v3869_v4 = vadd.f32 %v3868_v10, %v3852_v26 }
 0x6fd   :  { %v3907_v58 = vadd.f32 %v3906_v53, %v3890_v8 }
 0x701   :  { %v6984_v15 = vpop.f32.mrb[14].mxu0 }
 0x702   :  { %v3853_v63 = vmul.f32 %v6984_v15, %v7366_v57  ;;  %v6988_v42 = vpop.f32.mrb[15].mxu0 }
 0x703   :  { %v3854_v3 = vmul.f32 %v6988_v42, %v7367_v54 }
 0x704   :  { %v3870_v1 = vadd.f32 %v3869_v4, %v3853_v63  ;;  %v3891_v29 = vmul.f32 %v3853_v63, %v6984_v15 }
 0x705   :  { %v3892_v23 = vmul.f32 %v3854_v3, %v6988_v42 }
 0x706   :  { %v3908_v9 = vadd.f32 %v3907_v58, %v3891_v29  ;;  %v3871_v36 = vadd.f32 %v3870_v1, %v3854_v3 }
 0x708   :  { %v3909_v49 = vadd.f32 %v3908_v9, %v3892_v23  ;;  %v6994_v19 = vpop.f32.mrb[14].mxu1 }
 0x709   :  { %v3855_v22 = vmul.f32 %v6994_v19, %v7368_v43  ;;  %v6998_v7 = vpop.f32.mrb[15].mxu1 }
 0x70a   :  { %v3856_v48 = vmul.f32 %v6998_v7, %v7369_v59 }
 0x70b   :  { %v3872_v31 = vadd.f32 %v3871_v36, %v3855_v22  ;;  %v3893_v27 = vmul.f32 %v3855_v22, %v6994_v19 }
 0x70c   :  { %v3894_v14 = vmul.f32 %v3856_v48, %v6998_v7 }
 0x70d   :  { %v3910_v11 = vadd.f32 %v3909_v49, %v3893_v27  ;;  %v3873_v60 = vadd.f32 %v3872_v31, %v3856_v48 }
 0x70f   :  { %v3911_v2 = vadd.f32 %v3910_v11, %v3894_v14 }
 0x742   :  { %v7004_v44 = vpop.f32.mrb[16].mxu0 }
 0x743   :  { %v3857_v46 = vmul.f32 %v7004_v44, %v7370_v13  ;;  %v7008_v38 = vpop.f32.mrb[17].mxu0 }
 0x744   :  { %v3858_v33 = vmul.f32 %v7008_v38, %v7371_v34  ;;  %v4643_v34 = vld [vmem:[#allocation2] sm:$0xff] }
 0x745   :  { %v3874_v17 = vadd.f32 %v3873_v60, %v3857_v46  ;;  %v3895_v40 = vmul.f32 %v3857_v46, %v7004_v44 }
 0x746   :  { %v3896_v45 = vmul.f32 %v3858_v33, %v7008_v38 }
 0x747   :  { %v3912_v0 = vadd.f32 %v3911_v2, %v3895_v40  ;;  %v3875_v47 = vadd.f32 %v3874_v17, %v3858_v33  ;;  %v4644_v17 = vld [vmem:[#allocation2 + $0x8] sm:$0xff] }
 0x749   :  { %v3913_v52 = vadd.f32 %v3912_v0, %v3896_v45  ;;  %v4645_v45 = vld [vmem:[#allocation2 + $0x10] sm:$0xff] }
 0x74a   :  { %v3838_v61 = vpop.f32.mrb[16].mxu1 }
 0x74b   :  { %v3859_v56 = vmul.f32 %v3838_v61, %v7372_v20  ;;  %v3840_v55 = vpop.f32.mrb[17].mxu1 }
 0x74c   :  { %v3860_v28 = vmul.f32 %v3840_v55, %v7373_v21  ;;  %v4649_v21 = vld [vmem:[#allocation2 + $0x30] sm:$0xff] }
 0x74d   :  { %v3876_v39 = vadd.f32 %v3875_v47, %v3859_v56  ;;  %v3897_v35 = vmul.f32 %v3859_v56, %v3838_v61  ;;  %v4646_v47 = vld [vmem:[#allocation2 + $0x18] sm:$0xff]  ;;  %v4648_v56 = vld [vmem:[#allocation2 + $0x28] sm:$0xff] }
 0x74e   :  { %v3898_v25 = vmul.f32 %v3860_v28, %v3840_v55 }
 0x74f   :  { %v3914_v37 = vadd.f32 %v3913_v52, %v3897_v35  ;;  %v3877_v32 = vadd.f32 %v3876_v39, %v3860_v28  ;;  %v4650_v39 = vld [vmem:[#allocation2 + $0x38] sm:$0xff] }
 0x751   :  { %v3915_v26 = vadd.f32 %v3914_v37, %v3898_v25  ;;  %3878 = vadd.xlane.f32.xlu1 %v3877_v32  ;;  %v4651_v25 = vld [vmem:[#allocation2 + $0x40] sm:$0xff]  ;;  %v4652_v32 = vld [vmem:[#allocation2 + $0x48] sm:$0xff] }
 0x753   :  { %3916 = vadd.xlane.f32.xlu0 %v3915_v26 }
 0x7de   :  { %v3879_v10 = vpop.xlane.xlu1 %3878 }
 0x7df   :  { %v3880_v18 = vmul.f32 0.00390625, %v3879_v10  ;;  %v4653_v10 = vld [vmem:[#allocation2 + $0x50] sm:$0xff] }
 0x7e0   :  { %v3917_v8 = vpop.xlane.xlu0 %3916 }
 0x7e1   :  { %v3918_v53 = vmul.f32 0.00390625, %v3917_v8  ;;  %v3919_v4 = vmul.f32 %v3880_v18, %v3880_v18  ;;  %v3921_v63 = vsub.f32 %v6934_v62, %v3880_v18  ;;  %v3922_v54 = vsub.f32 %v6938_v50, %v3880_v18  ;;  %v4654_v8 = vld [vmem:[#allocation2 + $0x58] sm:$0xff] }
 0x7e2   :  { %v3923_v3 = vsub.f32 %v6944_v24, %v3880_v18  ;;  %v3924_v1 = vsub.f32 %v6948_v30, %v3880_v18  ;;  %v3925_v29 = vsub.f32 %v6954_v6, %v3880_v18  ;;  %v3926_v23 = vsub.f32 %v6958_v16, %v3880_v18 }
 0x7e3   :  { %v3920_v58 = vsub.f32 %v3918_v53, %v3919_v4  ;;  %v3927_v9 = vsub.f32 %v6964_v12, %v3880_v18  ;;  %v3928_v36 = vsub.f32 %v6968_v41, %v3880_v18  ;;  %v3929_v49 = vsub.f32 %v6974_v5, %v3880_v18  ;;  %v4655_v4 = vld [vmem:[#allocation2 + $0x60] sm:$0xff] }
 0x7e4   :  { %v3930_v43 = vsub.f32 %v6978_v51, %v3880_v18  ;;  %v3931_v62 = vsub.f32 %v6984_v15, %v3880_v18  ;;  %v3932_v50 = vsub.f32 %v6988_v42, %v3880_v18  ;;  %v3933_v24 = vsub.f32 %v6994_v19, %v3880_v18 }
 0x7e5   :  { %v3939_v57 = vadd.f32 1e-05, %v3920_v58  ;;  %v3934_v30 = vsub.f32 %v6998_v7, %v3880_v18  ;;  %v3935_v6 = vsub.f32 %v7004_v44, %v3880_v18  ;;  %v3936_v16 = vsub.f32 %v7008_v38, %v3880_v18 }
 0x7e6   :  { %v3937_v12 = vsub.f32 %v3838_v61, %v3880_v18  ;;  %v3938_v59 = vsub.f32 %v3840_v55, %v3880_v18  ;;  %v4647_v61 = vld [vmem:[#allocation2 + $0x20] sm:$0xff] }
 0x7e7   :  { %4641 = vrsqrt.f32 %v3939_v57  ;;  %v4656_v57 = vld [vmem:[#allocation2 + $0x68] sm:$0xff] }
 0x7f1   :  { %v4642_v22 = vpop.eup %4641 }
 0x7f2   :  { %v3941_v41 = vmul.f32 %v4642_v22, %v3921_v63  ;;  %v3942_v48 = vmul.f32 %v4642_v22, %v3922_v54  ;;  %v3943_v5 = vmul.f32 %v4642_v22, %v3923_v3  ;;  %v3944_v31 = vmul.f32 %v4642_v22, %v3924_v1  ;;  %v4657_v54 = vld [vmem:[#allocation2 + $0x70] sm:$0xff]  ;;  %v4658_v1 = vld [vmem:[#allocation2 + $0x78] sm:$0xff] }
 0x7f3   :  { %v3945_v51 = vmul.f32 %v4642_v22, %v3925_v29  ;;  %v3946_v27 = vmul.f32 %v4642_v22, %v3926_v23  ;;  %v3947_v15 = vmul.f32 %v4642_v22, %v3927_v9  ;;  %v3948_v14 = vmul.f32 %v4642_v22, %v3928_v36  ;;  %v4659_v23 = vld [vmem:[#allocation2 + $0x80] sm:$0xff]  ;;  %v4660_v36 = vld [vmem:[#allocation2 + $0x88] sm:$0xff] }
 0x7f4   :  { %v3949_v42 = vmul.f32 %v4642_v22, %v3929_v49  ;;  %v3950_v11 = vmul.f32 %v4642_v22, %v3930_v43  ;;  %v3951_v19 = vmul.f32 %v4642_v22, %v3931_v62  ;;  %v3952_v60 = vmul.f32 %v4642_v22, %v3932_v50 }
 0x7f5   :  { %v3953_v7 = vmul.f32 %v4642_v22, %v3933_v24  ;;  %v3954_v2 = vmul.f32 %v4642_v22, %v3934_v30  ;;  %v3955_v13 = vmul.f32 %v4642_v22, %v3935_v6  ;;  %v3956_v44 = vmul.f32 %v4642_v22, %v3936_v16 }
 0x7f6   :  { %v3957_v46 = vmul.f32 %v4642_v22, %v3937_v12  ;;  %v3958_v38 = vmul.f32 %v4642_v22, %v3938_v59  ;;  %v3959_v33 = vadd.f32 %v4643_v34, %v3941_v41  ;;  %v3960_v40 = vadd.f32 %v4644_v17, %v3942_v48 }
 0x7f7   :  { %v3961_v0 = vadd.f32 %v4645_v45, %v3943_v5  ;;  %v3962_v52 = vadd.f32 %v4646_v47, %v3944_v31  ;;  %v3963_v20 = vadd.f32 %v4647_v61, %v3945_v51  ;;  %v3964_v55 = vadd.f32 %v4648_v56, %v3946_v27 }
 0x7f8   :  { %v3965_v28 = vadd.f32 %v4649_v21, %v3947_v15  ;;  %v3966_v35 = vadd.f32 %v4650_v39, %v3948_v14  ;;  %v3967_v37 = vadd.f32 %v4651_v25, %v3949_v42  ;;  %v3968_v26 = vadd.f32 %v4652_v32, %v3950_v11  ;;  %3977 = vst [vmem:[#allocation11] sm:$0xff] %v3959_v33 }
 0x7f9   :  { %3978 = vst [vmem:[#allocation11 + $0x8] sm:$0xff] %v3960_v40  ;;  %v3969_v18 = vadd.f32 %v4653_v10, %v3951_v19  ;;  %v3970_v53 = vadd.f32 %v4654_v8, %v3952_v60  ;;  %v3971_v58 = vadd.f32 %v4655_v4, %v3953_v7  ;;  %v3972_v63 = vadd.f32 %v4656_v57, %v3954_v2 }
 0x7fa   :  { %3979 = vst [vmem:[#allocation11 + $0x10] sm:$0xff] %v3961_v0  ;;  %3980 = vst [vmem:[#allocation11 + $0x18] sm:$0xff] %v3962_v52  ;;  %v3973_v3 = vadd.f32 %v4657_v54, %v3955_v13  ;;  %v3974_v29 = vadd.f32 %v4658_v1, %v3956_v44  ;;  %v3975_v9 = vadd.f32 %v4659_v23, %v3957_v46 }
 0x7fb   :  { %3981 = vst [vmem:[#allocation11 + $0x20] sm:$0xff] %v3963_v20  ;;  %3982 = vst [vmem:[#allocation11 + $0x28] sm:$0xff] %v3964_v55  ;;  %v3976_v49 = vadd.f32 %v4660_v36, %v3958_v38 }
 0x7fc   :  { %3983 = vst [vmem:[#allocation11 + $0x30] sm:$0xff] %v3965_v28  ;;  %3984 = vst [vmem:[#allocation11 + $0x38] sm:$0xff] %v3966_v35 }
 0x7fd   :  { %3985 = vst [vmem:[#allocation11 + $0x40] sm:$0xff] %v3967_v37  ;;  %3986 = vst [vmem:[#allocation11 + $0x48] sm:$0xff] %v3968_v26 }
 0x7fe   :  { %3987 = vst [vmem:[#allocation11 + $0x50] sm:$0xff] %v3969_v18  ;;  %3988 = vst [vmem:[#allocation11 + $0x58] sm:$0xff] %v3970_v53 }
 0x7ff   :  { %3989 = vst [vmem:[#allocation11 + $0x60] sm:$0xff] %v3971_v58  ;;  %3990 = vst [vmem:[#allocation11 + $0x68] sm:$0xff] %v3972_v63 }
 0x800   :  { %3991 = vst [vmem:[#allocation11 + $0x70] sm:$0xff] %v3973_v3  ;;  %3992 = vst [vmem:[#allocation11 + $0x78] sm:$0xff] %v3974_v29 }
 0x801   :  { %3993 = vst [vmem:[#allocation11 + $0x80] sm:$0xff] %v3975_v9  ;;  %3994 = vst [vmem:[#allocation11 + $0x88] sm:$0xff] %v3976_v49 }
 0x802   :  { %4782 = shalt.err (!%p4779_p2)
}
 0x803   :  { %s4783_s30 = scalar_lea.hbm %s7052_s5, 2304 }
 0x804   :  { %p4784_p3 = scmp.ne.s32.totalorder %s7052_s5, %s4783_s30  ;;  %p4787_p4 = scmp.lt.u32.totalorder %s4783_s30, %s7052_s5 }
 0x806   :  { %p4789_p5 = pnand %p4787_p4, %p4784_p3 }
 0x808   :  { %4792 = shalt.err (!%p4789_p5)
}
 0x809   :  { %4004 = dma.vmem_to_hbm [thread:$0]  %s4002_s3, 2304, %s7052_s5, [#allocation4]  }
 0x80a   :  { %4799 = dma.done.wait [#allocation4], 2304  }
 0x80b   :  { %4800 = vsyncadd [#allocation4], 4294964992 }
 0x80c   :  { %4008 = vsyncpa [#allocation3], 1 }
 0x80d   :  { %4009 = vsyncpa [#allocation6], 1 }
 0x80e   :  { %4010 = vsyncpa [#allocation9], 1 }
 0x80f   :  { %4011 = vsyncpa [#allocation4], 1 }

</bundles_post_ra>
